<compile_context>
chip_gen: v7x
topology: tpu7x:2x2x1
jax: 0.10.0
libtpu: 0.0.40
codegen_flags: <defaults>
</compile_context>

<pallas_src>
import functools

import numpy as np

import jax
import jax.numpy as jnp
from jax.experimental import pallas as pl
from jax.experimental.pallas import tpu as pltpu


def _round_up(n, m):
    return ((n + m - 1) // m) * m


# ---------------------------------------------------------------------------
# Fused kernel: `blk` images per grid step, everything VMEM-resident.
#   x_ref   : (32*blk, 32)   rows = (in_width, image), lanes = in_height
#   out_ref : (blk, 10)      logits for the images of this block
# ---------------------------------------------------------------------------
def _lenet_kernel(x_ref, a1_ref, b1_ref, s1e_ref, s1o_ref,
                  a2_ref, b2_ref, s2e_ref, s2o_ref,
                  f1_ref, g1_ref, f2_ref, g2_ref, f3_ref, g3_ref,
                  out_ref, pw1_ref, pw2_ref, *, blk):
    f32 = jnp.float32
    B = blk

    # ---- conv1 (1->6, 5x5 valid): banded matmuls over row-shifted input slices.
    acc = jnp.dot(x_ref[0:28 * B, :], a1_ref[0], preferred_element_type=f32)
    for j in range(1, 5):
        acc += jnp.dot(x_ref[j * B:(j + 28) * B, :], a1_ref[j],
                       preferred_element_type=f32)
    y1 = jnp.maximum(acc + b1_ref[...], 0.0)            # (28B, 168) lanes=(oc, oh)

    # ---- pool1, width half: max of adjacent width row-blocks (VPU, via scratch).
    for w in range(14):
        pw1_ref[w * B:(w + 1) * B, :] = jnp.maximum(
            y1[(2 * w) * B:(2 * w + 1) * B, :],
            y1[(2 * w + 1) * B:(2 * w + 2) * B, :])
    # ---- pool1, height half: even/odd lane-selection matmuls.
    pw1 = pw1_ref[...]                                   # (14B, 168)
    p1 = jnp.maximum(jnp.dot(pw1, s1e_ref[...], preferred_element_type=f32),
                     jnp.dot(pw1, s1o_ref[...], preferred_element_type=f32))  # (14B, 84)

    # ---- conv2 (6->16, 3x3 valid).
    acc = jnp.dot(p1[0:12 * B, :], a2_ref[0], preferred_element_type=f32)
    for j in range(1, 3):
        acc += jnp.dot(p1[j * B:(j + 12) * B, :], a2_ref[j],
                       preferred_element_type=f32)
    y2 = jnp.maximum(acc + b2_ref[...], 0.0)             # (12B, 192) lanes=(oc, oh)

    # ---- pool2 (same scheme).
    for w in range(6):
        pw2_ref[w * B:(w + 1) * B, :] = jnp.maximum(
            y2[(2 * w) * B:(2 * w + 1) * B, :],
            y2[(2 * w + 1) * B:(2 * w + 2) * B, :])
    pw2 = pw2_ref[...]                                   # (6B, 192)
    p2 = jnp.maximum(jnp.dot(pw2, s2e_ref[...], preferred_element_type=f32),
                     jnp.dot(pw2, s2o_ref[...], preferred_element_type=f32))  # (6B, 96)

    # ---- FC head, batched over the whole block (rows = images).
    h = jnp.dot(p2[0:B, :], f1_ref[0], preferred_element_type=f32)
    for w in range(1, 6):
        h += jnp.dot(p2[w * B:(w + 1) * B, :], f1_ref[w],
                     preferred_element_type=f32)
    h = jnp.maximum(h + g1_ref[...], 0.0)                # (B, 120)
    h = jnp.maximum(jnp.dot(h, f2_ref[...], preferred_element_type=f32)
                    + g2_ref[...], 0.0)                  # (B, 84)
    out_ref[...] = (jnp.dot(h, f3_ref[...], preferred_element_type=f32)
                    + g3_ref[...])                       # (B, 10)


# ---------------------------------------------------------------------------
# Forward wrapper: one pallas_call for the whole network.
# ---------------------------------------------------------------------------
def lenet_forward(packed, x, block_b=32):
    batch = x.shape[0]
    assert x.shape[1:] == (1, 32, 32), x.shape

    blk = _round_up(min(max(int(block_b), 8), max(batch, 8)), 8)
    padded = _round_up(batch, blk)
    g = padded // blk
    if padded != batch:
        x = jnp.pad(x, ((0, padded - batch), (0, 0), (0, 0), (0, 0)))

    # Host-side layout plumbing: rows = (block, width, image), lanes = height.
    xt = jnp.transpose(x.reshape(g, blk, 32, 32), (0, 3, 1, 2))
    xt = xt.reshape(g * 32 * blk, 32)

    def full_spec(a):
        return pl.BlockSpec(a.shape, lambda i, _n=a.ndim: (0,) * _n)

    weights = (packed["A1"], packed["b1"], packed["S1E"], packed["S1O"],
               packed["A2"], packed["b2"], packed["S2E"], packed["S2O"],
               packed["F1"], packed["g1"], packed["F2"], packed["g2"],
               packed["F3"], packed["g3"])

    out = pl.pallas_call(
        functools.partial(_lenet_kernel, blk=blk),
        out_shape=jax.ShapeDtypeStruct((padded, 10), jnp.float32),
        grid=(g,),
        in_specs=[pl.BlockSpec((32 * blk, 32), lambda i: (i, 0))]
                 + [full_spec(a) for a in weights],
        out_specs=pl.BlockSpec((blk, 10), lambda i: (i, 0)),
        scratch_shapes=[pltpu.VMEM((14 * blk, 168), jnp.float32),
                        pltpu.VMEM((6 * blk, 192), jnp.float32)],
        compiler_params=pltpu.CompilerParams(
            dimension_semantics=("parallel",),
            vmem_limit_bytes=32 * 1024 * 1024),
    )(xt, *weights)
    return out[:batch]


# ---------------------------------------------------------------------------
# Host-side (one-time) parameter packing from torch-layout params.
# ---------------------------------------------------------------------------
def pack_params(params):
    w1 = np.asarray(params["conv1_w"], np.float32)   # (6, 1, 5, 5)
    b1 = np.asarray(params["conv1_b"], np.float32)
    w2 = np.asarray(params["conv2_w"], np.float32)   # (16, 6, 3, 3)
    b2 = np.asarray(params["conv2_b"], np.float32)
    f1 = np.asarray(params["fc1_w"], np.float32)     # (120, 576)
    g1 = np.asarray(params["fc1_b"], np.float32)
    f2 = np.asarray(params["fc2_w"], np.float32)     # (84, 120)
    g2 = np.asarray(params["fc2_b"], np.float32)
    f3 = np.asarray(params["fc3_w"], np.float32)     # (10, 84)
    g3 = np.asarray(params["fc3_b"], np.float32)

    def band_t(w, h_in):
        # A_j[c*h_in + h, oc*oh + r] = w[oc, c, h - r, j]  for 0 <= h - r < kh.
        oc, cin, kh, kw = w.shape
        oh = h_in - kh + 1
        a = np.zeros((kw, cin * h_in, oc * oh), np.float32)
        for j in range(kw):
            for o in range(oc):
                for c in range(cin):
                    for r in range(oh):
                        a[j, c * h_in + r:c * h_in + r + kh, o * oh + r] = w[o, c, :, j]
        return a

    def hpool_sel(c, h):
        # even/odd-height lane selection: S[c*h + 2r(+1), c*(h/2) + r] = 1.
        ho = h // 2
        se = np.zeros((c * h, c * ho), np.float32)
        so = np.zeros((c * h, c * ho), np.float32)
        for ci in range(c):
            for r in range(ho):
                se[ci * h + 2 * r, ci * ho + r] = 1.0
                so[ci * h + 2 * r + 1, ci * ho + r] = 1.0
        return se, so

    s1e, s1o = hpool_sel(6, 28)      # (168, 84)
    s2e, s2o = hpool_sel(16, 12)     # (192, 96)

    # fc1 columns are indexed c*36 + h*6 + w (torch .view order); regroup per w.
    f1w = np.ascontiguousarray(
        f1.reshape(120, 16, 6, 6).transpose(3, 1, 2, 0).reshape(6, 96, 120))

    j = jnp.asarray
    return dict(
        A1=j(band_t(w1, 32)), b1=j(np.repeat(b1, 28)[None, :]),
        S1E=j(s1e), S1O=j(s1o),
        A2=j(band_t(w2, 14)), b2=j(np.repeat(b2, 12)[None, :]),
        S2E=j(s2e), S2O=j(s2o),
        F1=j(f1w), g1=j(g1[None, :]),
        F2=j(f2.T), g2=j(g2[None, :]),
        F3=j(f3.T), g3=j(g3[None, :]),
    )


def init_params(key):
    """Deterministic PyTorch-style (uniform +/- 1/sqrt(fan_in)) init, torch layout."""
    ks = jax.random.split(key, 10)

    def u(k, shape, fan_in):
        bound = 1.0 / float(fan_in) ** 0.5
        return jax.random.uniform(k, shape, jnp.float32, -bound, bound)

    return dict(
        conv1_w=u(ks[0], (6, 1, 5, 5), 1 * 5 * 5),
        conv1_b=u(ks[1], (6,), 1 * 5 * 5),
        conv2_w=u(ks[2], (16, 6, 3, 3), 6 * 3 * 3),
        conv2_b=u(ks[3], (16,), 6 * 3 * 3),
        fc1_w=u(ks[4], (120, 16 * 6 * 6), 16 * 6 * 6),
        fc1_b=u(ks[5], (120,), 16 * 6 * 6),
        fc2_w=u(ks[6], (84, 120), 120),
        fc2_b=u(ks[7], (84,), 120),
        fc3_w=u(ks[8], (10, 84), 84),
        fc3_b=u(ks[9], (10,), 84),
    )


# ---------------------------------------------------------------------------
# Pure-numpy (float64) reference of the PyTorch module for a correctness check.
# ---------------------------------------------------------------------------
def lenet_reference_np(params, x):
    p = {k: np.asarray(v, np.float64) for k, v in params.items()}
    x = np.asarray(x, np.float64)

    def conv(x, w, b):
        bsz, _, hh, ww = x.shape
        oc, _, kh, kw = w.shape
        oh, ow = hh - kh + 1, ww - kw + 1
        out = np.zeros((bsz, oc, oh, ow), np.float64)
        for i in range(kh):
            for j in range(kw):
                out += np.einsum("bchw,oc->bohw",
                                 x[:, :, i:i + oh, j:j + ow], w[:, :, i, j])
        return out + b[None, :, None, None]

    def pool(x):
        bsz, c, h, w = x.shape
        return x.reshape(bsz, c, h // 2, 2, w // 2, 2).max(axis=(3, 5))

    y = pool(np.maximum(conv(x, p["conv1_w"], p["conv1_b"]), 0.0))
    y = pool(np.maximum(conv(y, p["conv2_w"], p["conv2_b"]), 0.0))
    y = y.reshape(y.shape[0], -1)
    y = np.maximum(y @ p["fc1_w"].T + p["fc1_b"], 0.0)
    y = np.maximum(y @ p["fc2_w"].T + p["fc2_b"], 0.0)
    return y @ p["fc3_w"].T + p["fc3_b"]


if __name__ == "__main__":
    key = jax.random.PRNGKey(0)
    pkey, xkey = jax.random.split(key)
    params = init_params(pkey)
    packed = pack_params(params)          # host-side weight repacking, done once

    # Classic LeNet input: 32x32, 1 channel (so the flatten gives 16*6*6 = 576).
    batch = 16
    x = jax.random.normal(xkey, (batch, 1, 32, 32), dtype=jnp.float32)

    # block_b=8 -> 2 grid steps, exercising the batched grid (and v7x megacore).
    fwd = jax.jit(functools.partial(lenet_forward, block_b=8))
    out = jax.block_until_ready(fwd(packed, x))

    assert out.shape == (batch, 10), out.shape
    assert bool(jnp.all(jnp.isfinite(out)))

    ref = lenet_reference_np(params, np.asarray(x))
    np.testing.assert_allclose(np.asarray(out), ref, rtol=2e-2, atol=2e-2)
    print("KERNEL_OK")
</pallas_src>

<mosaic_0001>
module attributes {stable_mosaic.version = 11 : i64} {
  func.func @_lenet_kernel(%arg0: i32, %arg1: memref<256x32xf32, #tpu.memory_space<vmem>>, %arg2: memref<5x32x168xf32, #tpu.memory_space<vmem>>, %arg3: memref<1x168xf32, #tpu.memory_space<vmem>>, %arg4: memref<168x84xf32, #tpu.memory_space<vmem>>, %arg5: memref<168x84xf32, #tpu.memory_space<vmem>>, %arg6: memref<3x84x192xf32, #tpu.memory_space<vmem>>, %arg7: memref<1x192xf32, #tpu.memory_space<vmem>>, %arg8: memref<192x96xf32, #tpu.memory_space<vmem>>, %arg9: memref<192x96xf32, #tpu.memory_space<vmem>>, %arg10: memref<6x96x120xf32, #tpu.memory_space<vmem>>, %arg11: memref<1x120xf32, #tpu.memory_space<vmem>>, %arg12: memref<120x84xf32, #tpu.memory_space<vmem>>, %arg13: memref<1x84xf32, #tpu.memory_space<vmem>>, %arg14: memref<84x10xf32, #tpu.memory_space<vmem>>, %arg15: memref<1x10xf32, #tpu.memory_space<vmem>>, %arg16: memref<8x10xf32, #tpu.memory_space<vmem>>, %arg17: memref<112x168xf32, #tpu.memory_space<vmem>>, %arg18: memref<48x192xf32, #tpu.memory_space<vmem>>) attributes {dimension_semantics = [#tpu.dimension_semantics<parallel>], iteration_bounds = array<i64: 2>, scalar_prefetch = 0 : i64, scratch_operands = 2 : i64, tpu.core_type = #tpu.core_type<tc>, window_params = [{transform_indices = @transform_0, window_bounds = array<i64: 256, 32>}, {pipeline_mode = #tpu.pipeline_mode<synchronous>, transform_indices = @transform_1, window_bounds = array<i64: 5, 32, 168>}, {pipeline_mode = #tpu.pipeline_mode<synchronous>, transform_indices = @transform_2, window_bounds = array<i64: 1, 168>}, {pipeline_mode = #tpu.pipeline_mode<synchronous>, transform_indices = @transform_3, window_bounds = array<i64: 168, 84>}, {pipeline_mode = #tpu.pipeline_mode<synchronous>, transform_indices = @transform_4, window_bounds = array<i64: 168, 84>}, {pipeline_mode = #tpu.pipeline_mode<synchronous>, transform_indices = @transform_5, window_bounds = array<i64: 3, 84, 192>}, {pipeline_mode = #tpu.pipeline_mode<synchronous>, transform_indices = @transform_6, window_bounds = array<i64: 1, 192>}, {pipeline_mode = #tpu.pipeline_mode<synchronous>, transform_indices = @transform_7, window_bounds = array<i64: 192, 96>}, {pipeline_mode = #tpu.pipeline_mode<synchronous>, transform_indices = @transform_8, window_bounds = array<i64: 192, 96>}, {pipeline_mode = #tpu.pipeline_mode<synchronous>, transform_indices = @transform_9, window_bounds = array<i64: 6, 96, 120>}, {pipeline_mode = #tpu.pipeline_mode<synchronous>, transform_indices = @transform_10, window_bounds = array<i64: 1, 120>}, {pipeline_mode = #tpu.pipeline_mode<synchronous>, transform_indices = @transform_11, window_bounds = array<i64: 120, 84>}, {pipeline_mode = #tpu.pipeline_mode<synchronous>, transform_indices = @transform_12, window_bounds = array<i64: 1, 84>}, {pipeline_mode = #tpu.pipeline_mode<synchronous>, transform_indices = @transform_13, window_bounds = array<i64: 84, 10>}, {pipeline_mode = #tpu.pipeline_mode<synchronous>, transform_indices = @transform_14, window_bounds = array<i64: 1, 10>}, {transform_indices = @transform_15, window_bounds = array<i64: 8, 10>}]} {
    %c0 = arith.constant 0 : index
    %c0_0 = arith.constant 0 : index
    %0 = vector.load %arg1[%c0, %c0_0] : memref<256x32xf32, #tpu.memory_space<vmem>>, vector<224x32xf32>
    %c0_1 = arith.constant 0 : index
    %c0_2 = arith.constant 0 : index
    %c0_3 = arith.constant 0 : index
    %1 = vector.load %arg2[%c0_1, %c0_2, %c0_3] : memref<5x32x168xf32, #tpu.memory_space<vmem>>, vector<1x32x168xf32>
    %2 = vector.shape_cast %1 : vector<1x32x168xf32> to vector<32x168xf32>
    %cst = arith.constant dense<0.000000e+00> : vector<224x168xf32>
    %3 = tpu.matmul %0, %2, %cst {dimension_numbers = #tpu.dot_dimension_numbers<[1], [0], [0], [1], [0, 0, 1, 1], [], []>} : vector<224x32xf32>, vector<32x168xf32>, vector<224x168xf32> -> vector<224x168xf32>
    %c8 = arith.constant 8 : index
    %c0_4 = arith.constant 0 : index
    %4 = vector.load %arg1[%c8, %c0_4] : memref<256x32xf32, #tpu.memory_space<vmem>>, vector<224x32xf32>
    %c1 = arith.constant 1 : index
    %c0_5 = arith.constant 0 : index
    %c0_6 = arith.constant 0 : index
    %5 = vector.load %arg2[%c1, %c0_5, %c0_6] : memref<5x32x168xf32, #tpu.memory_space<vmem>>, vector<1x32x168xf32>
    %6 = vector.shape_cast %5 : vector<1x32x168xf32> to vector<32x168xf32>
    %cst_7 = arith.constant dense<0.000000e+00> : vector<224x168xf32>
    %7 = tpu.matmul %4, %6, %cst_7 {dimension_numbers = #tpu.dot_dimension_numbers<[1], [0], [0], [1], [0, 0, 1, 1], [], []>} : vector<224x32xf32>, vector<32x168xf32>, vector<224x168xf32> -> vector<224x168xf32>
    %8 = arith.addf %3, %7 : vector<224x168xf32>
    %c16 = arith.constant 16 : index
    %c0_8 = arith.constant 0 : index
    %9 = vector.load %arg1[%c16, %c0_8] : memref<256x32xf32, #tpu.memory_space<vmem>>, vector<224x32xf32>
    %c2 = arith.constant 2 : index
    %c0_9 = arith.constant 0 : index
    %c0_10 = arith.constant 0 : index
    %10 = vector.load %arg2[%c2, %c0_9, %c0_10] : memref<5x32x168xf32, #tpu.memory_space<vmem>>, vector<1x32x168xf32>
    %11 = vector.shape_cast %10 : vector<1x32x168xf32> to vector<32x168xf32>
    %cst_11 = arith.constant dense<0.000000e+00> : vector<224x168xf32>
    %12 = tpu.matmul %9, %11, %cst_11 {dimension_numbers = #tpu.dot_dimension_numbers<[1], [0], [0], [1], [0, 0, 1, 1], [], []>} : vector<224x32xf32>, vector<32x168xf32>, vector<224x168xf32> -> vector<224x168xf32>
    %13 = arith.addf %8, %12 : vector<224x168xf32>
    %c24 = arith.constant 24 : index
    %c0_12 = arith.constant 0 : index
    %14 = vector.load %arg1[%c24, %c0_12] : memref<256x32xf32, #tpu.memory_space<vmem>>, vector<224x32xf32>
    %c3 = arith.constant 3 : index
    %c0_13 = arith.constant 0 : index
    %c0_14 = arith.constant 0 : index
    %15 = vector.load %arg2[%c3, %c0_13, %c0_14] : memref<5x32x168xf32, #tpu.memory_space<vmem>>, vector<1x32x168xf32>
    %16 = vector.shape_cast %15 : vector<1x32x168xf32> to vector<32x168xf32>
    %cst_15 = arith.constant dense<0.000000e+00> : vector<224x168xf32>
    %17 = tpu.matmul %14, %16, %cst_15 {dimension_numbers = #tpu.dot_dimension_numbers<[1], [0], [0], [1], [0, 0, 1, 1], [], []>} : vector<224x32xf32>, vector<32x168xf32>, vector<224x168xf32> -> vector<224x168xf32>
    %18 = arith.addf %13, %17 : vector<224x168xf32>
    %c32 = arith.constant 32 : index
    %c0_16 = arith.constant 0 : index
    %19 = vector.load %arg1[%c32, %c0_16] : memref<256x32xf32, #tpu.memory_space<vmem>>, vector<224x32xf32>
    %c4 = arith.constant 4 : index
    %c0_17 = arith.constant 0 : index
    %c0_18 = arith.constant 0 : index
    %20 = vector.load %arg2[%c4, %c0_17, %c0_18] : memref<5x32x168xf32, #tpu.memory_space<vmem>>, vector<1x32x168xf32>
    %21 = vector.shape_cast %20 : vector<1x32x168xf32> to vector<32x168xf32>
    %cst_19 = arith.constant dense<0.000000e+00> : vector<224x168xf32>
    %22 = tpu.matmul %19, %21, %cst_19 {dimension_numbers = #tpu.dot_dimension_numbers<[1], [0], [0], [1], [0, 0, 1, 1], [], []>} : vector<224x32xf32>, vector<32x168xf32>, vector<224x168xf32> -> vector<224x168xf32>
    %23 = arith.addf %18, %22 : vector<224x168xf32>
    %c0_20 = arith.constant 0 : index
    %c0_21 = arith.constant 0 : index
    %24 = vector.load %arg3[%c0_20, %c0_21] : memref<1x168xf32, #tpu.memory_space<vmem>>, vector<1x168xf32>
    %25 = vector.broadcast %24 : vector<1x168xf32> to vector<224x168xf32>
    %26 = arith.addf %23, %25 : vector<224x168xf32>
    %cst_22 = arith.constant 0.000000e+00 : f32
    %27 = vector.broadcast %cst_22 : f32 to vector<224x168xf32>
    %28 = arith.maximumf %26, %27 : vector<224x168xf32>
    %29 = vector.extract_strided_slice %28 {offsets = [0, 0], sizes = [8, 168], strides = [1, 1]} : vector<224x168xf32> to vector<8x168xf32>
    %30 = vector.extract_strided_slice %28 {offsets = [8, 0], sizes = [8, 168], strides = [1, 1]} : vector<224x168xf32> to vector<8x168xf32>
    %31 = arith.maximumf %29, %30 : vector<8x168xf32>
    %c0_23 = arith.constant 0 : index
    %c0_24 = arith.constant 0 : index
    %32 = vector.load %arg17[%c0_23, %c0_24] : memref<112x168xf32, #tpu.memory_space<vmem>>, vector<8x168xf32>
    tpu.vector_store %arg17[%c0_23, %c0_24], %31 {strides = array<i32>} : memref<112x168xf32, #tpu.memory_space<vmem>>, vector<8x168xf32>,
    %33 = vector.extract_strided_slice %28 {offsets = [16, 0], sizes = [8, 168], strides = [1, 1]} : vector<224x168xf32> to vector<8x168xf32>
    %34 = vector.extract_strided_slice %28 {offsets = [24, 0], sizes = [8, 168], strides = [1, 1]} : vector<224x168xf32> to vector<8x168xf32>
    %35 = arith.maximumf %33, %34 : vector<8x168xf32>
    %c8_25 = arith.constant 8 : index
    %c0_26 = arith.constant 0 : index
    %36 = vector.load %arg17[%c8_25, %c0_26] : memref<112x168xf32, #tpu.memory_space<vmem>>, vector<8x168xf32>
    tpu.vector_store %arg17[%c8_25, %c0_26], %35 {strides = array<i32>} : memref<112x168xf32, #tpu.memory_space<vmem>>, vector<8x168xf32>,
    %37 = vector.extract_strided_slice %28 {offsets = [32, 0], sizes = [8, 168], strides = [1, 1]} : vector<224x168xf32> to vector<8x168xf32>
    %38 = vector.extract_strided_slice %28 {offsets = [40, 0], sizes = [8, 168], strides = [1, 1]} : vector<224x168xf32> to vector<8x168xf32>
    %39 = arith.maximumf %37, %38 : vector<8x168xf32>
    %c16_27 = arith.constant 16 : index
    %c0_28 = arith.constant 0 : index
    %40 = vector.load %arg17[%c16_27, %c0_28] : memref<112x168xf32, #tpu.memory_space<vmem>>, vector<8x168xf32>
    tpu.vector_store %arg17[%c16_27, %c0_28], %39 {strides = array<i32>} : memref<112x168xf32, #tpu.memory_space<vmem>>, vector<8x168xf32>,
    %41 = vector.extract_strided_slice %28 {offsets = [48, 0], sizes = [8, 168], strides = [1, 1]} : vector<224x168xf32> to vector<8x168xf32>
    %42 = vector.extract_strided_slice %28 {offsets = [56, 0], sizes = [8, 168], strides = [1, 1]} : vector<224x168xf32> to vector<8x168xf32>
    %43 = arith.maximumf %41, %42 : vector<8x168xf32>
    %c24_29 = arith.constant 24 : index
    %c0_30 = arith.constant 0 : index
    %44 = vector.load %arg17[%c24_29, %c0_30] : memref<112x168xf32, #tpu.memory_space<vmem>>, vector<8x168xf32>
    tpu.vector_store %arg17[%c24_29, %c0_30], %43 {strides = array<i32>} : memref<112x168xf32, #tpu.memory_space<vmem>>, vector<8x168xf32>,
    %45 = vector.extract_strided_slice %28 {offsets = [64, 0], sizes = [8, 168], strides = [1, 1]} : vector<224x168xf32> to vector<8x168xf32>
    %46 = vector.extract_strided_slice %28 {offsets = [72, 0], sizes = [8, 168], strides = [1, 1]} : vector<224x168xf32> to vector<8x168xf32>
    %47 = arith.maximumf %45, %46 : vector<8x168xf32>
    %c32_31 = arith.constant 32 : index
    %c0_32 = arith.constant 0 : index
    %48 = vector.load %arg17[%c32_31, %c0_32] : memref<112x168xf32, #tpu.memory_space<vmem>>, vector<8x168xf32>
    tpu.vector_store %arg17[%c32_31, %c0_32], %47 {strides = array<i32>} : memref<112x168xf32, #tpu.memory_space<vmem>>, vector<8x168xf32>,
    %49 = vector.extract_strided_slice %28 {offsets = [80, 0], sizes = [8, 168], strides = [1, 1]} : vector<224x168xf32> to vector<8x168xf32>
    %50 = vector.extract_strided_slice %28 {offsets = [88, 0], sizes = [8, 168], strides = [1, 1]} : vector<224x168xf32> to vector<8x168xf32>
    %51 = arith.maximumf %49, %50 : vector<8x168xf32>
    %c40 = arith.constant 40 : index
    %c0_33 = arith.constant 0 : index
    %52 = vector.load %arg17[%c40, %c0_33] : memref<112x168xf32, #tpu.memory_space<vmem>>, vector<8x168xf32>
    tpu.vector_store %arg17[%c40, %c0_33], %51 {strides = array<i32>} : memref<112x168xf32, #tpu.memory_space<vmem>>, vector<8x168xf32>,
    %53 = vector.extract_strided_slice %28 {offsets = [96, 0], sizes = [8, 168], strides = [1, 1]} : vector<224x168xf32> to vector<8x168xf32>
    %54 = vector.extract_strided_slice %28 {offsets = [104, 0], sizes = [8, 168], strides = [1, 1]} : vector<224x168xf32> to vector<8x168xf32>
    %55 = arith.maximumf %53, %54 : vector<8x168xf32>
    %c48 = arith.constant 48 : index
    %c0_34 = arith.constant 0 : index
    %56 = vector.load %arg17[%c48, %c0_34] : memref<112x168xf32, #tpu.memory_space<vmem>>, vector<8x168xf32>
    tpu.vector_store %arg17[%c48, %c0_34], %55 {strides = array<i32>} : memref<112x168xf32, #tpu.memory_space<vmem>>, vector<8x168xf32>,
    %57 = vector.extract_strided_slice %28 {offsets = [112, 0], sizes = [8, 168], strides = [1, 1]} : vector<224x168xf32> to vector<8x168xf32>
    %58 = vector.extract_strided_slice %28 {offsets = [120, 0], sizes = [8, 168], strides = [1, 1]} : vector<224x168xf32> to vector<8x168xf32>
    %59 = arith.maximumf %57, %58 : vector<8x168xf32>
    %c56 = arith.constant 56 : index
    %c0_35 = arith.constant 0 : index
    %60 = vector.load %arg17[%c56, %c0_35] : memref<112x168xf32, #tpu.memory_space<vmem>>, vector<8x168xf32>
    tpu.vector_store %arg17[%c56, %c0_35], %59 {strides = array<i32>} : memref<112x168xf32, #tpu.memory_space<vmem>>, vector<8x168xf32>,
    %61 = vector.extract_strided_slice %28 {offsets = [128, 0], sizes = [8, 168], strides = [1, 1]} : vector<224x168xf32> to vector<8x168xf32>
    %62 = vector.extract_strided_slice %28 {offsets = [136, 0], sizes = [8, 168], strides = [1, 1]} : vector<224x168xf32> to vector<8x168xf32>
    %63 = arith.maximumf %61, %62 : vector<8x168xf32>
    %c64 = arith.constant 64 : index
    %c0_36 = arith.constant 0 : index
    %64 = vector.load %arg17[%c64, %c0_36] : memref<112x168xf32, #tpu.memory_space<vmem>>, vector<8x168xf32>
    tpu.vector_store %arg17[%c64, %c0_36], %63 {strides = array<i32>} : memref<112x168xf32, #tpu.memory_space<vmem>>, vector<8x168xf32>,
    %65 = vector.extract_strided_slice %28 {offsets = [144, 0], sizes = [8, 168], strides = [1, 1]} : vector<224x168xf32> to vector<8x168xf32>
    %66 = vector.extract_strided_slice %28 {offsets = [152, 0], sizes = [8, 168], strides = [1, 1]} : vector<224x168xf32> to vector<8x168xf32>
    %67 = arith.maximumf %65, %66 : vector<8x168xf32>
    %c72 = arith.constant 72 : index
    %c0_37 = arith.constant 0 : index
    %68 = vector.load %arg17[%c72, %c0_37] : memref<112x168xf32, #tpu.memory_space<vmem>>, vector<8x168xf32>
    tpu.vector_store %arg17[%c72, %c0_37], %67 {strides = array<i32>} : memref<112x168xf32, #tpu.memory_space<vmem>>, vector<8x168xf32>,
    %69 = vector.extract_strided_slice %28 {offsets = [160, 0], sizes = [8, 168], strides = [1, 1]} : vector<224x168xf32> to vector<8x168xf32>
    %70 = vector.extract_strided_slice %28 {offsets = [168, 0], sizes = [8, 168], strides = [1, 1]} : vector<224x168xf32> to vector<8x168xf32>
    %71 = arith.maximumf %69, %70 : vector<8x168xf32>
    %c80 = arith.constant 80 : index
    %c0_38 = arith.constant 0 : index
    %72 = vector.load %arg17[%c80, %c0_38] : memref<112x168xf32, #tpu.memory_space<vmem>>, vector<8x168xf32>
    tpu.vector_store %arg17[%c80, %c0_38], %71 {strides = array<i32>} : memref<112x168xf32, #tpu.memory_space<vmem>>, vector<8x168xf32>,
    %73 = vector.extract_strided_slice %28 {offsets = [176, 0], sizes = [8, 168], strides = [1, 1]} : vector<224x168xf32> to vector<8x168xf32>
    %74 = vector.extract_strided_slice %28 {offsets = [184, 0], sizes = [8, 168], strides = [1, 1]} : vector<224x168xf32> to vector<8x168xf32>
    %75 = arith.maximumf %73, %74 : vector<8x168xf32>
    %c88 = arith.constant 88 : index
    %c0_39 = arith.constant 0 : index
    %76 = vector.load %arg17[%c88, %c0_39] : memref<112x168xf32, #tpu.memory_space<vmem>>, vector<8x168xf32>
    tpu.vector_store %arg17[%c88, %c0_39], %75 {strides = array<i32>} : memref<112x168xf32, #tpu.memory_space<vmem>>, vector<8x168xf32>,
    %77 = vector.extract_strided_slice %28 {offsets = [192, 0], sizes = [8, 168], strides = [1, 1]} : vector<224x168xf32> to vector<8x168xf32>
    %78 = vector.extract_strided_slice %28 {offsets = [200, 0], sizes = [8, 168], strides = [1, 1]} : vector<224x168xf32> to vector<8x168xf32>
    %79 = arith.maximumf %77, %78 : vector<8x168xf32>
    %c96 = arith.constant 96 : index
    %c0_40 = arith.constant 0 : index
    %80 = vector.load %arg17[%c96, %c0_40] : memref<112x168xf32, #tpu.memory_space<vmem>>, vector<8x168xf32>
    tpu.vector_store %arg17[%c96, %c0_40], %79 {strides = array<i32>} : memref<112x168xf32, #tpu.memory_space<vmem>>, vector<8x168xf32>,
    %81 = vector.extract_strided_slice %28 {offsets = [208, 0], sizes = [8, 168], strides = [1, 1]} : vector<224x168xf32> to vector<8x168xf32>
    %82 = vector.extract_strided_slice %28 {offsets = [216, 0], sizes = [8, 168], strides = [1, 1]} : vector<224x168xf32> to vector<8x168xf32>
    %83 = arith.maximumf %81, %82 : vector<8x168xf32>
    %c104 = arith.constant 104 : index
    %c0_41 = arith.constant 0 : index
    %84 = vector.load %arg17[%c104, %c0_41] : memref<112x168xf32, #tpu.memory_space<vmem>>, vector<8x168xf32>
    tpu.vector_store %arg17[%c104, %c0_41], %83 {strides = array<i32>} : memref<112x168xf32, #tpu.memory_space<vmem>>, vector<8x168xf32>,
    %c0_42 = arith.constant 0 : index
    %c0_43 = arith.constant 0 : index
    %85 = vector.load %arg17[%c0_42, %c0_43] : memref<112x168xf32, #tpu.memory_space<vmem>>, vector<112x168xf32>
    %c0_44 = arith.constant 0 : index
    %c0_45 = arith.constant 0 : index
    %86 = vector.load %arg4[%c0_44, %c0_45] : memref<168x84xf32, #tpu.memory_space<vmem>>, vector<168x84xf32>
    %cst_46 = arith.constant dense<0.000000e+00> : vector<112x84xf32>
    %87 = tpu.matmul %85, %86, %cst_46 {dimension_numbers = #tpu.dot_dimension_numbers<[1], [0], [0], [1], [0, 0, 1, 1], [], []>} : vector<112x168xf32>, vector<168x84xf32>, vector<112x84xf32> -> vector<112x84xf32>
    %c0_47 = arith.constant 0 : index
    %c0_48 = arith.constant 0 : index
    %88 = vector.load %arg5[%c0_47, %c0_48] : memref<168x84xf32, #tpu.memory_space<vmem>>, vector<168x84xf32>
    %cst_49 = arith.constant dense<0.000000e+00> : vector<112x84xf32>
    %89 = tpu.matmul %85, %88, %cst_49 {dimension_numbers = #tpu.dot_dimension_numbers<[1], [0], [0], [1], [0, 0, 1, 1], [], []>} : vector<112x168xf32>, vector<168x84xf32>, vector<112x84xf32> -> vector<112x84xf32>
    %90 = arith.maximumf %87, %89 : vector<112x84xf32>
    %91 = vector.extract_strided_slice %90 {offsets = [0, 0], sizes = [96, 84], strides = [1, 1]} : vector<112x84xf32> to vector<96x84xf32>
    %c0_50 = arith.constant 0 : index
    %c0_51 = arith.constant 0 : index
    %c0_52 = arith.constant 0 : index
    %92 = vector.load %arg6[%c0_50, %c0_51, %c0_52] : memref<3x84x192xf32, #tpu.memory_space<vmem>>, vector<1x84x192xf32>
    %93 = vector.shape_cast %92 : vector<1x84x192xf32> to vector<84x192xf32>
    %cst_53 = arith.constant dense<0.000000e+00> : vector<96x192xf32>
    %94 = tpu.matmul %91, %93, %cst_53 {dimension_numbers = #tpu.dot_dimension_numbers<[1], [0], [0], [1], [0, 0, 1, 1], [], []>} : vector<96x84xf32>, vector<84x192xf32>, vector<96x192xf32> -> vector<96x192xf32>
    %95 = vector.extract_strided_slice %90 {offsets = [8, 0], sizes = [96, 84], strides = [1, 1]} : vector<112x84xf32> to vector<96x84xf32>
    %c1_54 = arith.constant 1 : index
    %c0_55 = arith.constant 0 : index
    %c0_56 = arith.constant 0 : index
    %96 = vector.load %arg6[%c1_54, %c0_55, %c0_56] : memref<3x84x192xf32, #tpu.memory_space<vmem>>, vector<1x84x192xf32>
    %97 = vector.shape_cast %96 : vector<1x84x192xf32> to vector<84x192xf32>
    %cst_57 = arith.constant dense<0.000000e+00> : vector<96x192xf32>
    %98 = tpu.matmul %95, %97, %cst_57 {dimension_numbers = #tpu.dot_dimension_numbers<[1], [0], [0], [1], [0, 0, 1, 1], [], []>} : vector<96x84xf32>, vector<84x192xf32>, vector<96x192xf32> -> vector<96x192xf32>
    %99 = arith.addf %94, %98 : vector<96x192xf32>
    %100 = vector.extract_strided_slice %90 {offsets = [16, 0], sizes = [96, 84], strides = [1, 1]} : vector<112x84xf32> to vector<96x84xf32>
    %c2_58 = arith.constant 2 : index
    %c0_59 = arith.constant 0 : index
    %c0_60 = arith.constant 0 : index
    %101 = vector.load %arg6[%c2_58, %c0_59, %c0_60] : memref<3x84x192xf32, #tpu.memory_space<vmem>>, vector<1x84x192xf32>
    %102 = vector.shape_cast %101 : vector<1x84x192xf32> to vector<84x192xf32>
    %cst_61 = arith.constant dense<0.000000e+00> : vector<96x192xf32>
    %103 = tpu.matmul %100, %102, %cst_61 {dimension_numbers = #tpu.dot_dimension_numbers<[1], [0], [0], [1], [0, 0, 1, 1], [], []>} : vector<96x84xf32>, vector<84x192xf32>, vector<96x192xf32> -> vector<96x192xf32>
    %104 = arith.addf %99, %103 : vector<96x192xf32>
    %c0_62 = arith.constant 0 : index
    %c0_63 = arith.constant 0 : index
    %105 = vector.load %arg7[%c0_62, %c0_63] : memref<1x192xf32, #tpu.memory_space<vmem>>, vector<1x192xf32>
    %106 = vector.broadcast %105 : vector<1x192xf32> to vector<96x192xf32>
    %107 = arith.addf %104, %106 : vector<96x192xf32>
    %cst_64 = arith.constant 0.000000e+00 : f32
    %108 = vector.broadcast %cst_64 : f32 to vector<96x192xf32>
    %109 = arith.maximumf %107, %108 : vector<96x192xf32>
    %110 = vector.extract_strided_slice %109 {offsets = [0, 0], sizes = [8, 192], strides = [1, 1]} : vector<96x192xf32> to vector<8x192xf32>
    %111 = vector.extract_strided_slice %109 {offsets = [8, 0], sizes = [8, 192], strides = [1, 1]} : vector<96x192xf32> to vector<8x192xf32>
    %112 = arith.maximumf %110, %111 : vector<8x192xf32>
    %c0_65 = arith.constant 0 : index
    %c0_66 = arith.constant 0 : index
    %113 = vector.load %arg18[%c0_65, %c0_66] : memref<48x192xf32, #tpu.memory_space<vmem>>, vector<8x192xf32>
    tpu.vector_store %arg18[%c0_65, %c0_66], %112 {strides = array<i32>} : memref<48x192xf32, #tpu.memory_space<vmem>>, vector<8x192xf32>,
    %114 = vector.extract_strided_slice %109 {offsets = [16, 0], sizes = [8, 192], strides = [1, 1]} : vector<96x192xf32> to vector<8x192xf32>
    %115 = vector.extract_strided_slice %109 {offsets = [24, 0], sizes = [8, 192], strides = [1, 1]} : vector<96x192xf32> to vector<8x192xf32>
    %116 = arith.maximumf %114, %115 : vector<8x192xf32>
    %c8_67 = arith.constant 8 : index
    %c0_68 = arith.constant 0 : index
    %117 = vector.load %arg18[%c8_67, %c0_68] : memref<48x192xf32, #tpu.memory_space<vmem>>, vector<8x192xf32>
    tpu.vector_store %arg18[%c8_67, %c0_68], %116 {strides = array<i32>} : memref<48x192xf32, #tpu.memory_space<vmem>>, vector<8x192xf32>,
    %118 = vector.extract_strided_slice %109 {offsets = [32, 0], sizes = [8, 192], strides = [1, 1]} : vector<96x192xf32> to vector<8x192xf32>
    %119 = vector.extract_strided_slice %109 {offsets = [40, 0], sizes = [8, 192], strides = [1, 1]} : vector<96x192xf32> to vector<8x192xf32>
    %120 = arith.maximumf %118, %119 : vector<8x192xf32>
    %c16_69 = arith.constant 16 : index
    %c0_70 = arith.constant 0 : index
    %121 = vector.load %arg18[%c16_69, %c0_70] : memref<48x192xf32, #tpu.memory_space<vmem>>, vector<8x192xf32>
    tpu.vector_store %arg18[%c16_69, %c0_70], %120 {strides = array<i32>} : memref<48x192xf32, #tpu.memory_space<vmem>>, vector<8x192xf32>,
    %122 = vector.extract_strided_slice %109 {offsets = [48, 0], sizes = [8, 192], strides = [1, 1]} : vector<96x192xf32> to vector<8x192xf32>
    %123 = vector.extract_strided_slice %109 {offsets = [56, 0], sizes = [8, 192], strides = [1, 1]} : vector<96x192xf32> to vector<8x192xf32>
    %124 = arith.maximumf %122, %123 : vector<8x192xf32>
    %c24_71 = arith.constant 24 : index
    %c0_72 = arith.constant 0 : index
    %125 = vector.load %arg18[%c24_71, %c0_72] : memref<48x192xf32, #tpu.memory_space<vmem>>, vector<8x192xf32>
    tpu.vector_store %arg18[%c24_71, %c0_72], %124 {strides = array<i32>} : memref<48x192xf32, #tpu.memory_space<vmem>>, vector<8x192xf32>,
    %126 = vector.extract_strided_slice %109 {offsets = [64, 0], sizes = [8, 192], strides = [1, 1]} : vector<96x192xf32> to vector<8x192xf32>
    %127 = vector.extract_strided_slice %109 {offsets = [72, 0], sizes = [8, 192], strides = [1, 1]} : vector<96x192xf32> to vector<8x192xf32>
    %128 = arith.maximumf %126, %127 : vector<8x192xf32>
    %c32_73 = arith.constant 32 : index
    %c0_74 = arith.constant 0 : index
    %129 = vector.load %arg18[%c32_73, %c0_74] : memref<48x192xf32, #tpu.memory_space<vmem>>, vector<8x192xf32>
    tpu.vector_store %arg18[%c32_73, %c0_74], %128 {strides = array<i32>} : memref<48x192xf32, #tpu.memory_space<vmem>>, vector<8x192xf32>,
    %130 = vector.extract_strided_slice %109 {offsets = [80, 0], sizes = [8, 192], strides = [1, 1]} : vector<96x192xf32> to vector<8x192xf32>
    %131 = vector.extract_strided_slice %109 {offsets = [88, 0], sizes = [8, 192], strides = [1, 1]} : vector<96x192xf32> to vector<8x192xf32>
    %132 = arith.maximumf %130, %131 : vector<8x192xf32>
    %c40_75 = arith.constant 40 : index
    %c0_76 = arith.constant 0 : index
    %133 = vector.load %arg18[%c40_75, %c0_76] : memref<48x192xf32, #tpu.memory_space<vmem>>, vector<8x192xf32>
    tpu.vector_store %arg18[%c40_75, %c0_76], %132 {strides = array<i32>} : memref<48x192xf32, #tpu.memory_space<vmem>>, vector<8x192xf32>,
    %c0_77 = arith.constant 0 : index
    %c0_78 = arith.constant 0 : index
    %134 = vector.load %arg18[%c0_77, %c0_78] : memref<48x192xf32, #tpu.memory_space<vmem>>, vector<48x192xf32>
    %c0_79 = arith.constant 0 : index
    %c0_80 = arith.constant 0 : index
    %135 = vector.load %arg8[%c0_79, %c0_80] : memref<192x96xf32, #tpu.memory_space<vmem>>, vector<192x96xf32>
    %cst_81 = arith.constant dense<0.000000e+00> : vector<48x96xf32>
    %136 = tpu.matmul %134, %135, %cst_81 {dimension_numbers = #tpu.dot_dimension_numbers<[1], [0], [0], [1], [0, 0, 1, 1], [], []>} : vector<48x192xf32>, vector<192x96xf32>, vector<48x96xf32> -> vector<48x96xf32>
    %c0_82 = arith.constant 0 : index
    %c0_83 = arith.constant 0 : index
    %137 = vector.load %arg9[%c0_82, %c0_83] : memref<192x96xf32, #tpu.memory_space<vmem>>, vector<192x96xf32>
    %cst_84 = arith.constant dense<0.000000e+00> : vector<48x96xf32>
    %138 = tpu.matmul %134, %137, %cst_84 {dimension_numbers = #tpu.dot_dimension_numbers<[1], [0], [0], [1], [0, 0, 1, 1], [], []>} : vector<48x192xf32>, vector<192x96xf32>, vector<48x96xf32> -> vector<48x96xf32>
    %139 = arith.maximumf %136, %138 : vector<48x96xf32>
    %140 = vector.extract_strided_slice %139 {offsets = [0, 0], sizes = [8, 96], strides = [1, 1]} : vector<48x96xf32> to vector<8x96xf32>
    %c0_85 = arith.constant 0 : index
    %c0_86 = arith.constant 0 : index
    %c0_87 = arith.constant 0 : index
    %141 = vector.load %arg10[%c0_85, %c0_86, %c0_87] : memref<6x96x120xf32, #tpu.memory_space<vmem>>, vector<1x96x120xf32>
    %142 = vector.shape_cast %141 : vector<1x96x120xf32> to vector<96x120xf32>
    %cst_88 = arith.constant dense<0.000000e+00> : vector<8x120xf32>
    %143 = tpu.matmul %140, %142, %cst_88 {dimension_numbers = #tpu.dot_dimension_numbers<[1], [0], [0], [1], [0, 0, 1, 1], [], []>} : vector<8x96xf32>, vector<96x120xf32>, vector<8x120xf32> -> vector<8x120xf32>
    %144 = vector.extract_strided_slice %139 {offsets = [8, 0], sizes = [8, 96], strides = [1, 1]} : vector<48x96xf32> to vector<8x96xf32>
    %c1_89 = arith.constant 1 : index
    %c0_90 = arith.constant 0 : index
    %c0_91 = arith.constant 0 : index
    %145 = vector.load %arg10[%c1_89, %c0_90, %c0_91] : memref<6x96x120xf32, #tpu.memory_space<vmem>>, vector<1x96x120xf32>
    %146 = vector.shape_cast %145 : vector<1x96x120xf32> to vector<96x120xf32>
    %cst_92 = arith.constant dense<0.000000e+00> : vector<8x120xf32>
    %147 = tpu.matmul %144, %146, %cst_92 {dimension_numbers = #tpu.dot_dimension_numbers<[1], [0], [0], [1], [0, 0, 1, 1], [], []>} : vector<8x96xf32>, vector<96x120xf32>, vector<8x120xf32> -> vector<8x120xf32>
    %148 = arith.addf %143, %147 : vector<8x120xf32>
    %149 = vector.extract_strided_slice %139 {offsets = [16, 0], sizes = [8, 96], strides = [1, 1]} : vector<48x96xf32> to vector<8x96xf32>
    %c2_93 = arith.constant 2 : index
    %c0_94 = arith.constant 0 : index
    %c0_95 = arith.constant 0 : index
    %150 = vector.load %arg10[%c2_93, %c0_94, %c0_95] : memref<6x96x120xf32, #tpu.memory_space<vmem>>, vector<1x96x120xf32>
    %151 = vector.shape_cast %150 : vector<1x96x120xf32> to vector<96x120xf32>
    %cst_96 = arith.constant dense<0.000000e+00> : vector<8x120xf32>
    %152 = tpu.matmul %149, %151, %cst_96 {dimension_numbers = #tpu.dot_dimension_numbers<[1], [0], [0], [1], [0, 0, 1, 1], [], []>} : vector<8x96xf32>, vector<96x120xf32>, vector<8x120xf32> -> vector<8x120xf32>
    %153 = arith.addf %148, %152 : vector<8x120xf32>
    %154 = vector.extract_strided_slice %139 {offsets = [24, 0], sizes = [8, 96], strides = [1, 1]} : vector<48x96xf32> to vector<8x96xf32>
    %c3_97 = arith.constant 3 : index
    %c0_98 = arith.constant 0 : index
    %c0_99 = arith.constant 0 : index
    %155 = vector.load %arg10[%c3_97, %c0_98, %c0_99] : memref<6x96x120xf32, #tpu.memory_space<vmem>>, vector<1x96x120xf32>
    %156 = vector.shape_cast %155 : vector<1x96x120xf32> to vector<96x120xf32>
    %cst_100 = arith.constant dense<0.000000e+00> : vector<8x120xf32>
    %157 = tpu.matmul %154, %156, %cst_100 {dimension_numbers = #tpu.dot_dimension_numbers<[1], [0], [0], [1], [0, 0, 1, 1], [], []>} : vector<8x96xf32>, vector<96x120xf32>, vector<8x120xf32> -> vector<8x120xf32>
    %158 = arith.addf %153, %157 : vector<8x120xf32>
    %159 = vector.extract_strided_slice %139 {offsets = [32, 0], sizes = [8, 96], strides = [1, 1]} : vector<48x96xf32> to vector<8x96xf32>
    %c4_101 = arith.constant 4 : index
    %c0_102 = arith.constant 0 : index
    %c0_103 = arith.constant 0 : index
    %160 = vector.load %arg10[%c4_101, %c0_102, %c0_103] : memref<6x96x120xf32, #tpu.memory_space<vmem>>, vector<1x96x120xf32>
    %161 = vector.shape_cast %160 : vector<1x96x120xf32> to vector<96x120xf32>
    %cst_104 = arith.constant dense<0.000000e+00> : vector<8x120xf32>
    %162 = tpu.matmul %159, %161, %cst_104 {dimension_numbers = #tpu.dot_dimension_numbers<[1], [0], [0], [1], [0, 0, 1, 1], [], []>} : vector<8x96xf32>, vector<96x120xf32>, vector<8x120xf32> -> vector<8x120xf32>
    %163 = arith.addf %158, %162 : vector<8x120xf32>
    %164 = vector.extract_strided_slice %139 {offsets = [40, 0], sizes = [8, 96], strides = [1, 1]} : vector<48x96xf32> to vector<8x96xf32>
    %c5 = arith.constant 5 : index
    %c0_105 = arith.constant 0 : index
    %c0_106 = arith.constant 0 : index
    %165 = vector.load %arg10[%c5, %c0_105, %c0_106] : memref<6x96x120xf32, #tpu.memory_space<vmem>>, vector<1x96x120xf32>
    %166 = vector.shape_cast %165 : vector<1x96x120xf32> to vector<96x120xf32>
    %cst_107 = arith.constant dense<0.000000e+00> : vector<8x120xf32>
    %167 = tpu.matmul %164, %166, %cst_107 {dimension_numbers = #tpu.dot_dimension_numbers<[1], [0], [0], [1], [0, 0, 1, 1], [], []>} : vector<8x96xf32>, vector<96x120xf32>, vector<8x120xf32> -> vector<8x120xf32>
    %168 = arith.addf %163, %167 : vector<8x120xf32>
    %c0_108 = arith.constant 0 : index
    %c0_109 = arith.constant 0 : index
    %169 = vector.load %arg11[%c0_108, %c0_109] : memref<1x120xf32, #tpu.memory_space<vmem>>, vector<1x120xf32>
    %170 = vector.broadcast %169 : vector<1x120xf32> to vector<8x120xf32>
    %171 = arith.addf %168, %170 : vector<8x120xf32>
    %cst_110 = arith.constant 0.000000e+00 : f32
    %172 = vector.broadcast %cst_110 : f32 to vector<8x120xf32>
    %173 = arith.maximumf %171, %172 : vector<8x120xf32>
    %c0_111 = arith.constant 0 : index
    %c0_112 = arith.constant 0 : index
    %174 = vector.load %arg12[%c0_111, %c0_112] : memref<120x84xf32, #tpu.memory_space<vmem>>, vector<120x84xf32>
    %cst_113 = arith.constant dense<0.000000e+00> : vector<8x84xf32>
    %175 = tpu.matmul %173, %174, %cst_113 {dimension_numbers = #tpu.dot_dimension_numbers<[1], [0], [0], [1], [0, 0, 1, 1], [], []>} : vector<8x120xf32>, vector<120x84xf32>, vector<8x84xf32> -> vector<8x84xf32>
    %c0_114 = arith.constant 0 : index
    %c0_115 = arith.constant 0 : index
    %176 = vector.load %arg13[%c0_114, %c0_115] : memref<1x84xf32, #tpu.memory_space<vmem>>, vector<1x84xf32>
    %177 = vector.broadcast %176 : vector<1x84xf32> to vector<8x84xf32>
    %178 = arith.addf %175, %177 : vector<8x84xf32>
    %cst_116 = arith.constant 0.000000e+00 : f32
    %179 = vector.broadcast %cst_116 : f32 to vector<8x84xf32>
    %180 = arith.maximumf %178, %179 : vector<8x84xf32>
    %c0_117 = arith.constant 0 : index
    %c0_118 = arith.constant 0 : index
    %181 = vector.load %arg14[%c0_117, %c0_118] : memref<84x10xf32, #tpu.memory_space<vmem>>, vector<84x10xf32>
    %cst_119 = arith.constant dense<0.000000e+00> : vector<8x10xf32>
    %182 = tpu.matmul %180, %181, %cst_119 {dimension_numbers = #tpu.dot_dimension_numbers<[1], [0], [0], [1], [0, 0, 1, 1], [], []>} : vector<8x84xf32>, vector<84x10xf32>, vector<8x10xf32> -> vector<8x10xf32>
    %c0_120 = arith.constant 0 : index
    %c0_121 = arith.constant 0 : index
    %183 = vector.load %arg15[%c0_120, %c0_121] : memref<1x10xf32, #tpu.memory_space<vmem>>, vector<1x10xf32>
    %184 = vector.broadcast %183 : vector<1x10xf32> to vector<8x10xf32>
    %185 = arith.addf %182, %184 : vector<8x10xf32>
    %c0_122 = arith.constant 0 : index
    %c0_123 = arith.constant 0 : index
    %186 = vector.load %arg16[%c0_122, %c0_123] : memref<8x10xf32, #tpu.memory_space<vmem>>, vector<8x10xf32>
    tpu.vector_store %arg16[%c0_122, %c0_123], %185 {strides = array<i32>} : memref<8x10xf32, #tpu.memory_space<vmem>>, vector<8x10xf32>,
    return
  }
  func.func @transform_0(%arg0: i32) -> (i32, i32) {
    %c0_i32 = arith.constant 0 : i32
    %c0_i32_0 = arith.constant 0 : i32
    return %arg0, %c0_i32 : i32, i32
  }
  func.func @transform_1(%arg0: i32) -> (i32, i32, i32) {
    %c0_i32 = arith.constant 0 : i32
    %c0_i32_0 = arith.constant 0 : i32
    %c0_i32_1 = arith.constant 0 : i32
    %c0_i32_2 = arith.constant 0 : i32
    return %c0_i32, %c0_i32_0, %c0_i32_1 : i32, i32, i32
  }
  func.func @transform_2(%arg0: i32) -> (i32, i32) {
    %c0_i32 = arith.constant 0 : i32
    %c0_i32_0 = arith.constant 0 : i32
    %c0_i32_1 = arith.constant 0 : i32
    return %c0_i32, %c0_i32_0 : i32, i32
  }
  func.func @transform_3(%arg0: i32) -> (i32, i32) {
    %c0_i32 = arith.constant 0 : i32
    %c0_i32_0 = arith.constant 0 : i32
    %c0_i32_1 = arith.constant 0 : i32
    return %c0_i32, %c0_i32_0 : i32, i32
  }
  func.func @transform_4(%arg0: i32) -> (i32, i32) {
    %c0_i32 = arith.constant 0 : i32
    %c0_i32_0 = arith.constant 0 : i32
    %c0_i32_1 = arith.constant 0 : i32
    return %c0_i32, %c0_i32_0 : i32, i32
  }
  func.func @transform_5(%arg0: i32) -> (i32, i32, i32) {
    %c0_i32 = arith.constant 0 : i32
    %c0_i32_0 = arith.constant 0 : i32
    %c0_i32_1 = arith.constant 0 : i32
    %c0_i32_2 = arith.constant 0 : i32
    return %c0_i32, %c0_i32_0, %c0_i32_1 : i32, i32, i32
  }
  func.func @transform_6(%arg0: i32) -> (i32, i32) {
    %c0_i32 = arith.constant 0 : i32
    %c0_i32_0 = arith.constant 0 : i32
    %c0_i32_1 = arith.constant 0 : i32
    return %c0_i32, %c0_i32_0 : i32, i32
  }
  func.func @transform_7(%arg0: i32) -> (i32, i32) {
    %c0_i32 = arith.constant 0 : i32
    %c0_i32_0 = arith.constant 0 : i32
    %c0_i32_1 = arith.constant 0 : i32
    return %c0_i32, %c0_i32_0 : i32, i32
  }
  func.func @transform_8(%arg0: i32) -> (i32, i32) {
    %c0_i32 = arith.constant 0 : i32
    %c0_i32_0 = arith.constant 0 : i32
    %c0_i32_1 = arith.constant 0 : i32
    return %c0_i32, %c0_i32_0 : i32, i32
  }
  func.func @transform_9(%arg0: i32) -> (i32, i32, i32) {
    %c0_i32 = arith.constant 0 : i32
    %c0_i32_0 = arith.constant 0 : i32
    %c0_i32_1 = arith.constant 0 : i32
    %c0_i32_2 = arith.constant 0 : i32
    return %c0_i32, %c0_i32_0, %c0_i32_1 : i32, i32, i32
  }
  func.func @transform_10(%arg0: i32) -> (i32, i32) {
    %c0_i32 = arith.constant 0 : i32
    %c0_i32_0 = arith.constant 0 : i32
    %c0_i32_1 = arith.constant 0 : i32
    return %c0_i32, %c0_i32_0 : i32, i32
  }
  func.func @transform_11(%arg0: i32) -> (i32, i32) {
    %c0_i32 = arith.constant 0 : i32
    %c0_i32_0 = arith.constant 0 : i32
    %c0_i32_1 = arith.constant 0 : i32
    return %c0_i32, %c0_i32_0 : i32, i32
  }
  func.func @transform_12(%arg0: i32) -> (i32, i32) {
    %c0_i32 = arith.constant 0 : i32
    %c0_i32_0 = arith.constant 0 : i32
    %c0_i32_1 = arith.constant 0 : i32
    return %c0_i32, %c0_i32_0 : i32, i32
  }
  func.func @transform_13(%arg0: i32) -> (i32, i32) {
    %c0_i32 = arith.constant 0 : i32
    %c0_i32_0 = arith.constant 0 : i32
    %c0_i32_1 = arith.constant 0 : i32
    return %c0_i32, %c0_i32_0 : i32, i32
  }
  func.func @transform_14(%arg0: i32) -> (i32, i32) {
    %c0_i32 = arith.constant 0 : i32
    %c0_i32_0 = arith.constant 0 : i32
    %c0_i32_1 = arith.constant 0 : i32
    return %c0_i32, %c0_i32_0 : i32, i32
  }
  func.func @transform_15(%arg0: i32) -> (i32, i32) {
    %c0_i32 = arith.constant 0 : i32
    %c0_i32_0 = arith.constant 0 : i32
    return %arg0, %c0_i32 : i32, i32
  }
}

</mosaic_0001>

<bundles_post_ra>
// kernel: lenet_forward.1
= control target key start
LH: loop header
LB: loop body
LE: loop exit
PB: predicated region body
PF: predicated region fallthrough
CT: control target
= control target key end

     0   :  { %s8365_s0 = inlined_call_operand.vmem [shape: f32[512,32], index: 0, kind: input, shape index: {}]   ;;  %s8366_s1 = inlined_call_operand.hbm [shape: f32[5,32,168], index: 1, kind: input, shape index: {}]   ;;  %s8367_s2 = inlined_call_operand.vmem [shape: f32[1,168], index: 2, kind: input, shape index: {}]   ;;  %s8368_s3 = inlined_call_operand.hbm [shape: f32[168,84], index: 3, kind: input, shape index: {}]   ;;  %s8369_s4 = inlined_call_operand.hbm [shape: f32[168,84], index: 4, kind: input, shape index: {}]   ;;  %s8370_s5 = inlined_call_operand.vmem [shape: f32[3,84,192], index: 5, kind: input, shape index: {}]   ;;  %s8371_s6 = inlined_call_operand.vmem [shape: f32[1,192], index: 6, kind: input, shape index: {}]   ;;  %s8372_s7 = inlined_call_operand.vmem [shape: f32[192,96], index: 7, kind: input, shape index: {}]   ;;  %s8373_s8 = inlined_call_operand.hbm [shape: f32[192,96], index: 8, kind: input, shape index: {}]   ;;  %s8374_s9 = inlined_call_operand.vmem [shape: f32[6,96,120], index: 9, kind: input, shape index: {}]   ;;  %s8375_s10 = inlined_call_operand.vmem [shape: f32[1,120], index: 10, kind: input, shape index: {}]   ;;  %s8376_s11 = inlined_call_operand.vmem [shape: f32[120,84], index: 11, kind: input, shape index: {}]   ;;  %s8377_s12 = inlined_call_operand.vmem [shape: f32[1,84], index: 12, kind: input, shape index: {}]   ;;  %s8378_s13 = inlined_call_operand.vmem [shape: f32[84,10], index: 13, kind: input, shape index: {}]   ;;  %s8379_s14 = inlined_call_operand.vmem [shape: f32[1,10], index: 14, kind: input, shape index: {}]   ;;  %s8380_s15 = inlined_call_operand.hbm [shape: f32[16,10], index: 15, kind: output, shape index: {}]  }
   0x1   :  { %8397 = sst [smem:[#allocation24_spill]] %s8368_s3 }
   0x2   :  { %8398 = sst [smem:[#allocation25_spill]] %s8377_s12 }
   0x3   :  { %8399 = sst [smem:[#allocation26_spill]] %s8379_s14 }
   0x4   :  { %8400 = sst [smem:[#allocation27_spill]] %s8380_s15 }
   0x5   :  { %20 = vsyncpa [#allocation5], 0 }
   0x6   :  { %21 = vsyncpa [#allocation8], 0 }
   0x7   :  { %22 = vsyncpa [#allocation11], 0 }
   0x8   :  { %23 = vsyncpa [#allocation6], 0 }
   0x9   :  { %25 = vsyncpa [#allocation6 + $0x1], 0  ;;  %s6419_s18 = smov 0   ;;  %s6421_s19 = smov 0  }
   0xa   :  { %s6423_s20 = smov 0   ;;  %s6425_s21 = smov 0  }
   0xb LB: > { %8401 = sst [smem:[#allocation17_spill]] %s6313_s18  ;;  %s6440_s22 = sadd.s32 4294967295, %s6325_s21   ;;  %s6325_s21 = sphi %s6425_s21, %s8433_s21   ;;  %s6321_s20 = sphi %s6423_s20, %s8435_s20   ;;  %s6317_s19 = sphi %s6421_s19, %s8437_s19   ;;  %s6313_s18 = sphi %s6419_s18, %s8436_s18  }
   0xc   : > { %8402 = sst [smem:[#allocation18_spill]] %s6321_s20  ;;  %s4721_s23 = sadd.s32 4294967294, %s6325_s21  }
   0xd   : > { %8403 = sst [smem:[#allocation19_spill]] %s6325_s21  ;;  %s6444_s24 = sadd.s32 1, %s6325_s21  }
   0xe   : > { %8404 = sst [smem:[#allocation20_spill]] %s6444_s24  ;;  %s358_s25 = sadd.s32 1, %s6321_s20 }
   0xf   : > { %s355_s26 = ssub.s32 %s6325_s21, %s6444_s24  ;;  %p368_p0 = scmp.ne.s32.totalorder %s6321_s20, %s6317_s19 }
  0x10   : > { %p356_p1 = scmp.eq.s32.totalorder %s355_s26, 0  ;;  %p369_p2 = scmp.eq.s32.totalorder %s6440_s22, 1 }
  0x11   : > { %p374_p3 = scmp.ne.s32.totalorder %s6317_s19, %s6313_s18  ;;  %p375_p4 = scmp.eq.s32.totalorder %s4721_s23, 1 }
  0x12   : > { %s6455_s27 = scalar_select %p356_p1, %s6321_s20, %s358_s25  }
  0x13   : > { %p6457_p5 = por %p369_p2, %p368_p0  ;;  %p6461_p6 = por %p375_p4, %p374_p3 }
  0x14   : > { %8405 = sst [smem:[#allocation21_spill]] %s6455_s27  ;;  %p4722_p7 = scmp.ge.s32.totalorder %s6325_s21, 1 }
  0x15   : > { %s8406_s28 = scalar_select %p6457_p5, 1, 0 }
  0x16   : > { %s8408_s29 = scalar_select %p6461_p6, 1, 0 }
  0x17   : > { %8407 = sst [smem:[#allocation22_spill]] %s8406_s28  ;;  %p382_p8 = scmp.lt.s32.totalorder %s6325_s21, 3 }
  0x18   : > { %8409 = sst [smem:[#allocation23_spill]] %s8408_s29  ;;  %p8387_p9 = scmp.eq.s32.totalorder %s6440_s22, 0 }
  0x19   : > { %p6468_p10 = pnand %p4722_p7, %p382_p8  ;;  %s6327_s16 = smov [#allocation7]  }
  0x1a   : > { %s410_s17 = sshll.u32 %s6327_s16, 4  ;;  %s6328_s25 = smov [#allocation4]   ;;  %s411_s17 = int_to_ptr.vmem [resolvable:$true] %s410_s17 }
  0x1b   : > { %s8410_s30 = scalar_select %p6468_p10, 1, 0 }
  0x1c   : > { %p6070_p11 = pneg %p6468_p10  ;;  %s394_s26 = sshll.u32 %s6328_s25, 4  ;;  %s6480_s26 = int_to_ptr.vmem [resolvable:$true] %s394_s26 }
  0x1d   : > { %s8412_s3 = sld [smem:[#allocation24_spill]] }
  0x1e   : > { %p6476_p12 = pnand %p8387_p9, %p6070_p11 }
  0x20   : > { %p6490_p0 = pneg %p6476_p12 }
  0x23   : > { %s6139_s24 = scalar_lea.hbm %s8412_s3, 2688 }
  0x24   : > { %p6140_p13 = scmp.ne.s32.totalorder %s8412_s3, %s6139_s24  ;;  %p6146_p3 = scmp.lt.u32.totalorder %s6139_s24, %s8412_s3 }
  0x26   : > { %p6142_p1 = pnand %p6490_p0, %p6140_p13 }
  0x28   : > { %p6143_p2 = pneg %p6142_p1 }
  0x2a   : > { %p6148_p4 = pnand %p6146_p3, %p6143_p2 }
  0x2c   : > { %6151 = shalt.err (!%p6148_p4)
}
  0x2d   : > { %s6152_s20 = scalar_lea.vmem %s411_s17, 2688  ;;  %p6160_p9 = scmp.lt.s32.totalorder %s411_s17, %s411_s17 }
  0x2e   : > { %p6153_p7 = scmp.ne.s32.totalorder %s411_s17, %s6152_s20  ;;  %p6161_p6 = scmp.lt.s32.totalorder %s6152_s20, %s6152_s20 }
  0x30   : > { %p6155_p8 = pnand %p6153_p7, %p6490_p0  ;;  %p6162_p5 = por %p6161_p6, %p6160_p9 }
  0x32   : > { %p6156_p11 = pneg %p6155_p8 }
  0x34   : > { %p6163_p10 = pnand %p6162_p5, %p6156_p11 }
  0x36   : > { %6166 = shalt.err (!%p6163_p10)
}
  0x37   : > { %s8393_s18 = smov 128   ;;  %s8395_s27 = smov 8  }
  0x38   : > { %6076 = dma.hbm_to_vmem [thread:$0]  (!%p6476_p12), %s8412_s3, 2688, %s411_s17, [#allocation8], %s8393_s18, %s8393_s18, %s8395_s27  }
  0x39   : > { %s6167_s15 = scalar_lea.hbm %s8366_s1, 5120 }
  0x3a   : > { %p6168_p5 = scmp.ne.s32.totalorder %s8366_s1, %s6167_s15  ;;  %p6174_p10 = scmp.lt.u32.totalorder %s6167_s15, %s8366_s1 }
  0x3c   : > { %p6170_p6 = pnand %p6168_p5, %p6490_p0 }
  0x3e   : > { %p6171_p9 = pneg %p6170_p6 }
  0x40   : > { %p6176_p13 = pnand %p6174_p10, %p6171_p9 }
  0x42   : > { %6179 = shalt.err (!%p6176_p13)
}
  0x43   : > { %s6180_s17 = scalar_lea.vmem %s6480_s26, 5120  ;;  %p6188_p4 = scmp.lt.s32.totalorder %s6480_s26, %s6480_s26 }
  0x44   : > { %p6181_p1 = scmp.ne.s32.totalorder %s6480_s26, %s6180_s17  ;;  %p6189_p7 = scmp.lt.s32.totalorder %s6180_s17, %s6180_s17 }
  0x46   : > { %p6183_p2 = pnand %p6181_p1, %p6490_p0  ;;  %p6190_p8 = por %p6189_p7, %p6188_p4 }
  0x48   : > { %p6184_p3 = pneg %p6183_p2 }
  0x4a   : > { %p6191_p11 = pnand %p6190_p8, %p6184_p3 }
  0x4c   : > { %6194 = shalt.err (!%p6191_p11)
}
  0x4d   : > { %s6331_s14 = smov 256   ;;  %s6332_s12 = smov 16  }
  0x4e   : > { %6073 = dma.hbm_to_vmem [thread:$0]  (!%p6476_p12), %s8366_s1, 5120, %s6480_s26, [#allocation5], %s6331_s14, %s6331_s14, %s6332_s12  }
  0x4f   : > { %s6333_s21 = smov [#allocation9]   ;;  %s6334_s29 = smov [#allocation10]  }
  0x50   : > { %s423_s24 = sshll.u32 %s6333_s21, 4  ;;  %s445_s25 = sshll.u32 %s6334_s29, 4  ;;  %s424_s24 = int_to_ptr.vmem [resolvable:$true] %s423_s24  ;;  %s6532_s25 = int_to_ptr.vmem [resolvable:$true] %s445_s25 }
  0x51   : > { %s6195_s18 = scalar_lea.hbm %s8369_s4, 2688 }
  0x52   : > { %p6196_p5 = scmp.ne.s32.totalorder %s8369_s4, %s6195_s18  ;;  %p6202_p10 = scmp.lt.u32.totalorder %s6195_s18, %s8369_s4 }
  0x54   : > { %p6198_p6 = pnand %p6196_p5, %p6490_p0 }
  0x56   : > { %p6199_p9 = pneg %p6198_p6 }
  0x58   : > { %p6204_p13 = pnand %p6202_p10, %p6199_p9 }
  0x5a   : > { %6207 = shalt.err (!%p6204_p13)
}
  0x5b   : > { %s6208_s14 = scalar_lea.vmem %s424_s24, 2688  ;;  %p6216_p4 = scmp.lt.s32.totalorder %s424_s24, %s424_s24 }
  0x5c   : > { %p6209_p1 = scmp.ne.s32.totalorder %s424_s24, %s6208_s14  ;;  %p6217_p7 = scmp.lt.s32.totalorder %s6208_s14, %s6208_s14 }
  0x5e   : > { %p6211_p2 = pnand %p6209_p1, %p6490_p0  ;;  %p6218_p8 = por %p6217_p7, %p6216_p4 }
  0x60   : > { %p6212_p3 = pneg %p6211_p2 }
  0x62   : > { %p6219_p11 = pnand %p6218_p8, %p6212_p3 }
  0x64   : > { %6222 = shalt.err (!%p6219_p11)
}
  0x65   : > { %s8414_s3 = smov 8   ;;  %s8415_s27 = smov 128  }
  0x66   : > { %6079 = dma.hbm_to_vmem [thread:$0]  (!%p6476_p12), %s8369_s4, 2688, %s424_s24, [#allocation8], %s8415_s27, %s8415_s27, %s8414_s3  }
  0x67   : > { %s6223_s29 = scalar_lea.hbm %s8373_s8, 3072 }
  0x68   : > { %p6224_p5 = scmp.ne.s32.totalorder %s8373_s8, %s6223_s29  ;;  %p6230_p10 = scmp.lt.u32.totalorder %s6223_s29, %s8373_s8 }
  0x6a   : > { %p6226_p6 = pnand %p6224_p5, %p6490_p0 }
  0x6c   : > { %p6227_p9 = pneg %p6226_p6 }
  0x6e   : > { %p6232_p13 = pnand %p6230_p10, %p6227_p9 }
  0x70   : > { %6235 = shalt.err (!%p6232_p13)
}
  0x71   : > { %s6236_s24 = scalar_lea.vmem %s6532_s25, 3072  ;;  %p6244_p4 = scmp.lt.s32.totalorder %s6532_s25, %s6532_s25 }
  0x72   : > { %p6237_p1 = scmp.ne.s32.totalorder %s6532_s25, %s6236_s24  ;;  %p6245_p7 = scmp.lt.s32.totalorder %s6236_s24, %s6236_s24 }
  0x74   : > { %p6239_p2 = pnand %p6237_p1, %p6490_p0  ;;  %p6246_p8 = por %p6245_p7, %p6244_p4 }
  0x76   : > { %p6240_p3 = pneg %p6239_p2 }
  0x78   : > { %p6247_p11 = pnand %p6246_p8, %p6240_p3 }
  0x7a   : > { %6250 = shalt.err (!%p6247_p11)
}
  0x7b   : > { %6082 = dma.hbm_to_vmem [thread:$0]  (!%p6476_p12), %s8373_s8, 3072, %s6532_s25, [#allocation11], %s8415_s27, %s8415_s27, %s8414_s3  }
  0x7c   : > { %p8416_p5 = scmp.ne.s32.totalorder %s8410_s30, 0 }
  0x7d   : > { %p8417_p0 = scmp.eq.s32.totalorder (!%p8416_p5), %s6440_s22, 0 }
  0x7e   : > { %488 = sbr.rel (%p8416_p5) target bundleno = 2533 (0x9e5), region = 80 }
  0x85   : > { %6296 = dma.done.wait (%p8417_p0), [#allocation5], 5120   ;;  %p8418_p6 = pmov %p8417_p0 }
  0x86   : > { %p8419_p9 = pmov %p8417_p0 }
  0x87   : > { %6298 = vsyncadd (%p8418_p6), [#allocation5], 4294962176 }
  0x88   : > { %6300 = dma.done.wait (%p8419_p9), [#allocation8], 5376   ;;  %p8420_p10 = pmov %p8417_p0 }
  0x89   : > { %p8421_p13 = pmov %p8417_p0 }
  0x8a   : > { %6302 = vsyncadd (%p8420_p10), [#allocation8], 4294961920 }
  0x8b   : > { %6304 = dma.done.wait (%p8421_p13), [#allocation11], 3072   ;;  %p8422_p12 = pmov %p8417_p0 }
  0x8c   : > { %s4734_s30 = sshll.u32 %s6440_s22, 5  ;;  %v6335_v0 = vmov 0.0   ;;  %v593_v1 = vld [vmem:[#allocation4 + $0x48] sm:$0xff]  ;;  %v595_v2 = vld [vmem:[#allocation4 + $0x58] sm:$0xff]  ;;  %v592_v3 = vld [vmem:[#allocation4 + $0x40] sm:$0xff]  ;;  %vm600_vm0 = vcmask 261120  }
  0x8d   : > { %6306 = vsyncadd (%p8422_p12), [#allocation11], 4294964224  ;;  %749 = vmatprep.mubr.f32.mxu0 %v6335_v0  ;;  %p549_p1 = scmp.lt.s32.totalorder %s4734_s30, 63  ;;  %v5404_v4 = vpack.c.bf16 %v595_v2, %v593_v1  ;;  %v594_v5 = vld [vmem:[#allocation4 + $0x50] sm:$0xff]  ;;  %v597_v6 = vld [vmem:[#allocation4 + $0x68] sm:$0xff]  ;;  %vm2511_vm1 = vcmask 326656  }
  0x8e   : > { %v599_v7 = vld [vmem:[#allocation4 + $0x78] sm:$0xff]  ;;  %v5406_v8 = vpack.c.bf16 %v594_v5, %v592_v3  ;;  %v596_v10 = vld [vmem:[#allocation4 + $0x60] sm:$0xff]  ;;  %v598_v11 = vld [vmem:[#allocation4 + $0x70] sm:$0xff]  ;;  %vm3043_vm2 = vcmask 1043456   ;;  %vm3006_vm3 = vcmask 687104   ;;  %vm3589_vm4 = vcmask 523264  }
  0x8f   : > { %s8439_s30 = smov (!%p549_p1, %s4734_s30), 63  ;;  %v5408_v9 = vpack.c.bf16 %v599_v7, %v597_v6  ;;  %5405 = vmatprep.subr.bf16.mxu0 %v5404_v4  ;;  %v583_v12 = vld [vmem:[#allocation4 + $0x8] sm:$0xff]  ;;  %v585_v13 = vld [vmem:[#allocation4 + $0x18] sm:$0xff]  ;;  %v5410_v14 = vpack.c.bf16 %v598_v11, %v596_v10  ;;  %v582_v16 = vld [vmem:[#allocation4] sm:$0xff]  ;;  %vm6337_vm5 = vmmov 0   ;;  %vm3910_vm6 = vcmask 785408  }
  0x90   : > { %s4735_s23 = sshll.u32 %s8439_s30, 3  ;;  %5407 = vmatpush1.bf16.msra.mxu0 %v5406_v8  ;;  %v5412_v15 = vpack.c.bf16 %v585_v13, %v583_v12  ;;  %v584_v17 = vld [vmem:[#allocation4 + $0x10] sm:$0xff]  ;;  %v587_v20 = vld [vmem:[#allocation4 + $0x28] sm:$0xff]  ;;  %v589_v21 = vld [vmem:[#allocation4 + $0x38] sm:$0xff]  ;;  %vm4436_vm7 = vcmask 982016   ;;  %s8423_s14 = sld [smem:[#allocation25_spill]] }
  0x91   : > { %5409 = vmatprep.subr.bf16.mxu0 %v5408_v9  ;;  %s6600_s3 = scalar_lea.vmem %s8365_s0, %s4735_s23  ;;  %v5414_v19 = vpack.c.bf16 %v584_v17, %v582_v16  ;;  %v586_v22 = vld [vmem:[#allocation4 + $0x20] sm:$0xff]  ;;  %v5416_v23 = vpack.c.bf16 %v589_v21, %v587_v20  ;;  %v588_v24 = vld [vmem:[#allocation4 + $0x30] sm:$0xff]  ;;  %v1184_v27 = vld [vmem:[#allocation4 + $0x88] sm:$0xff]  ;;  %s545_s12 = sand.u32 1, %s6317_s19   ;;  %vm4605_vm8 = vcmask 80896  }
  0x92   : > { %v6603_v18 = vld [vmem:[%s6600_s3 + $0x8] sm:$0xff]  ;;  %v6609_v25 = vld [vmem:[%s6600_s3 + $0x10] sm:$0xff]  ;;  %v5418_v26 = vpack.c.bf16 %v588_v24, %v586_v22  ;;  %v1186_v28 = vld [vmem:[#allocation4 + $0x98] sm:$0xff]  ;;  %s8424_s30 = sld [smem:[#allocation22_spill]]  ;;  %s4733_s23 = sshll.u32 %s545_s12, 3 }
  0x93   : > { %v6615_v29 = vld [vmem:[%s6600_s3 + $0x18] sm:$0xff]  ;;  %v5420_v30 = vpack.c.bf16 %v1186_v28, %v1184_v27  ;;  %v6621_v31 = vld [vmem:[%s6600_s3 + $0x20] sm:$0xff]  ;;  %v6627_v32 = vld [vmem:[%s6600_s3 + $0x28] sm:$0xff]  ;;  %s5075_s27 = sshll.u32 %s6440_s22, 7  ;;  %s547_s18 = scalar_lea.vmem [#allocation12], %s4733_s23 }
  0x94   : > { %5411 = vmatpush1.bf16.msra.mxu0 %v5410_v14  ;;  %v6633_v33 = vld [vmem:[%s6600_s3 + $0x30] sm:$0xff]  ;;  %v6639_v34 = vld [vmem:[%s6600_s3 + $0x38] sm:$0xff]  ;;  %v6645_v35 = vld [vmem:[%s6600_s3 + $0x40] sm:$0xff]  ;;  %s4621_s28 = sshll.u32 %s547_s18, 4  ;;  %s8426_s20 = sld [smem:[#allocation27_spill]]  ;;  %s8325_s28 = int_to_ptr.vmem [resolvable:$true] %s4621_s28 }
  0x95   : > { %5413 = vmatprep.subr.bf16.mxu0 %v5412_v15  ;;  %v6651_v36 = vld [vmem:[%s6600_s3 + $0x48] sm:$0xff]  ;;  %v6657_v37 = vld [vmem:[%s6600_s3 + $0x50] sm:$0xff]  ;;  %v6663_v38 = vld [vmem:[%s6600_s3 + $0x58] sm:$0xff]  ;;  %s4608_s26 = scalar_lea.sflag [#allocation6], %s545_s12  ;;  %s6251_s24 = scalar_lea.vmem %s8325_s28, 128 }
  0x96   : > { %v6669_v39 = vld [vmem:[%s6600_s3 + $0x60] sm:$0xff]  ;;  %v6675_v40 = vld [vmem:[%s6600_s3 + $0x68] sm:$0xff]  ;;  %v6681_v41 = vld [vmem:[%s6600_s3 + $0x70] sm:$0xff]  ;;  %p6252_p2 = scmp.ne.s32.totalorder %s8325_s28, %s6251_s24  ;;  %s6338_s22 = smov [#allocation12]  }
  0x97   : > { %4736 = vmatmul.mubr.msk.f32.vlgmr.msra.gmra.mrb[0].mxu0 %vm600_vm0, %v6603_v18  ;;  %v6687_v42 = vld [vmem:[%s6600_s3 + $0x78] sm:$0xff]  ;;  %v6693_v43 = vld [vmem:[%s6600_s3 + $0x80] sm:$0xff]  ;;  %v6699_v44 = vld [vmem:[%s6600_s3 + $0x88] sm:$0xff] }
  0x98   : > { %5415 = vmatpush1.bf16.msra.mxu0 %v5414_v19  ;;  %755 = vmatprep.mubr.f32.mxu0 %v6335_v0  ;;  %v6705_v45 = vld [vmem:[%s6600_s3 + $0x90] sm:$0xff]  ;;  %v6711_v46 = vld [vmem:[%s6600_s3 + $0x98] sm:$0xff]  ;;  %v6717_v47 = vld [vmem:[%s6600_s3 + $0xa0] sm:$0xff]  ;;  %p8428_p3 = scmp.ne.s32.totalorder %s8424_s30, 0 }
  0x99   : > { %5417 = vmatprep.subr.bf16.mxu0 %v5416_v23  ;;  %v6723_v48 = vld [vmem:[%s6600_s3 + $0xa8] sm:$0xff]  ;;  %v6729_v49 = vld [vmem:[%s6600_s3 + $0xb0] sm:$0xff]  ;;  %v6735_v50 = vld [vmem:[%s6600_s3 + $0xb8] sm:$0xff] }
  0x9a   : > { %v6741_v51 = vld [vmem:[%s6600_s3 + $0xc0] sm:$0xff]  ;;  %v6747_v52 = vld [vmem:[%s6600_s3 + $0xc8] sm:$0xff]  ;;  %v6753_v53 = vld [vmem:[%s6600_s3 + $0xd0] sm:$0xff]  ;;  %s8427_s17 = smov %s8426_s20  ;;  %s8323_s15 = scalar_lea.hbm %s8426_s20, %s5075_s27 }
  0x9b   : > { %4737 = vmatmul.mubr.msk.f32.gmra.mrb[2].mxu0 %vm600_vm0, %v6609_v25  ;;  %v6759_v54 = vld [vmem:[%s6600_s3 + $0xd8] sm:$0xff]  ;;  %v6765_v55 = vld [vmem:[%s6600_s3 + $0xe0] sm:$0xff]  ;;  %v1185_v57 = vld [vmem:[#allocation4 + $0x90] sm:$0xff]  ;;  %p6253_p4 = pnand %p6252_p2, %p8428_p3 }
  0x9c   : > { %761 = vmatprep.mubr.f32.mxu0 %v6335_v0  ;;  %5419 = vmatpush1.bf16.msra.mxu0 %v5418_v26  ;;  %v1183_v56 = vld [vmem:[#allocation4 + $0x80] sm:$0xff]  ;;  %v1188_v58 = vld [vmem:[#allocation4 + $0xa8] sm:$0xff]  ;;  %v1190_v59 = vld [vmem:[#allocation4 + $0xb8] sm:$0xff] }
  0x9d   : > { %5421 = vmatprep.subr.bf16.mxu0 %v5420_v30  ;;  %v554_v60 = vld [vmem:[%s6600_s3] sm:$0xff]  ;;  %v5422_v61 = vpack.c.bf16 %v1185_v57, %v1183_v56  ;;  %v5424_v62 = vpack.c.bf16 %v1190_v59, %v1188_v58  ;;  %v1189_v1 = vld [vmem:[#allocation4 + $0xb0] sm:$0xff]  ;;  %v1594_v2 = vld [vmem:[#allocation4 + $0xc8] sm:$0xff]  ;;  %v6336_v56 = vmov 0.0|0.0   ;;  %p6254_p7 = pneg %p6253_p4 }
  0x9e   : > { %v1187_v63 = vld [vmem:[#allocation4 + $0xa0] sm:$0xff]  ;;  %v1596_v3 = vld [vmem:[#allocation4 + $0xd8] sm:$0xff]  ;;  %v1595_v7 = vld [vmem:[#allocation4 + $0xd0] sm:$0xff]  ;;  %5444 = vmatprep.subr.bf16.mxu1 %v6336_v56 }
  0x9f   : > { %4738 = vmatmul.mubr.msk.f32.gmra.mrb[4].mxu0 %vm600_vm0, %v6615_v29  ;;  %v5426_v4 = vpack.c.bf16 %v1189_v1, %v1187_v63  ;;  %v5428_v5 = vpack.c.bf16 %v1596_v3, %v1594_v2  ;;  %v1593_v6 = vld [vmem:[#allocation4 + $0xc0] sm:$0xff]  ;;  %v1598_v8 = vld [vmem:[#allocation4 + $0xe8] sm:$0xff]  ;;  %v1600_v9 = vld [vmem:[#allocation4 + $0xf8] sm:$0xff] }
  0xa0   : > { %767 = vmatprep.mubr.f32.mxu0 %v6335_v0  ;;  %v5430_v10 = vpack.c.bf16 %v1595_v7, %v1593_v6  ;;  %v5432_v11 = vpack.c.bf16 %v1600_v9, %v1598_v8  ;;  %v1597_v12 = vld [vmem:[#allocation4 + $0xe0] sm:$0xff]  ;;  %v1599_v13 = vld [vmem:[#allocation4 + $0xf0] sm:$0xff]  ;;  %v2004_v14 = vld [vmem:[#allocation4 + $0x108] sm:$0xff] }
  0xa1   : > { %v2006_v15 = vld [vmem:[#allocation4 + $0x118] sm:$0xff]  ;;  %v5434_v16 = vpack.c.bf16 %v1599_v13, %v1597_v12  ;;  %v2003_v19 = vld [vmem:[#allocation4 + $0x100] sm:$0xff]  ;;  %v2005_v20 = vld [vmem:[#allocation4 + $0x110] sm:$0xff] }
  0xa2   : > { %v5436_v17 = vpack.c.bf16 %v2006_v15, %v2004_v14  ;;  %v2008_v21 = vld [vmem:[#allocation4 + $0x128] sm:$0xff]  ;;  %v2010_v22 = vld [vmem:[#allocation4 + $0x138] sm:$0xff]  ;;  %v5438_v23 = vpack.c.bf16 %v2005_v20, %v2003_v19  ;;  %v2009_v26 = vld [vmem:[#allocation4 + $0x130] sm:$0xff] }
  0xa3   : > { %4739 = vmatmul.mubr.msk.f32.gmra.mrb[6].mxu0 %vm600_vm0, %v6621_v31  ;;  %v5440_v24 = vpack.c.bf16 %v2010_v22, %v2008_v21  ;;  %v2593_v28 = vld [vmem:[#allocation7] sm:$0xff]  ;;  %v2595_v30 = vld [vmem:[#allocation7 + $0x10] sm:$0xff]  ;;  %v2596_v58 = vld [vmem:[#allocation7 + $0x18] sm:$0xff] }
  0xa4   : > { %773 = vmatprep.mubr.f32.mxu0 %v6335_v0  ;;  %v5448_v59 = vpack.c.bf16 %v2596_v58, %v2595_v30  ;;  %v2599_v63 = vld [vmem:[#allocation7 + $0x30] sm:$0xff]  ;;  %v2600_v1 = vld [vmem:[#allocation7 + $0x38] sm:$0xff]  ;;  %v2601_v3 = vld [vmem:[#allocation7 + $0x40] sm:$0xff] }
  0xa5   : > { %v5454_v2 = vpack.c.bf16 %v2600_v1, %v2599_v63  ;;  %v2791_v30 = vld [vmem:[#allocation9] sm:$0xff] }
  0xa7   : > { %4740 = vmatmul.mubr.msk.f32.gmra.mrb[8].mxu0 %vm600_vm0, %v6627_v32 }
  0xa8   : > { %779 = vmatprep.mubr.f32.mxu0 %v6335_v0 }
  0xab   : > { %4741 = vmatmul.mubr.msk.f32.gmra.mrb[10].mxu0 %vm600_vm0, %v6633_v33 }
  0xac   : > { %785 = vmatprep.mubr.f32.mxu0 %v6335_v0 }
  0xaf   : > { %4742 = vmatmul.mubr.msk.f32.gmra.mrb[12].mxu0 %vm600_vm0, %v6639_v34 }
  0xb0   : > { %791 = vmatprep.mubr.f32.mxu0 %v6335_v0 }
  0xb3   : > { %4743 = vmatmul.mubr.msk.f32.gmra.mrb[14].mxu0 %vm600_vm0, %v6645_v35 }
  0xb4   : > { %797 = vmatprep.mubr.f32.mxu0 %v6335_v0 }
  0xb7   : > { %4744 = vmatmul.mubr.msk.f32.gmra.mrb[16].mxu0 %vm600_vm0, %v6651_v36 }
  0xb8   : > { %803 = vmatprep.mubr.f32.mxu0 %v6335_v0 }
  0xbb   : > { %4745 = vmatmul.mubr.msk.f32.gmra.mrb[18].mxu0 %vm600_vm0, %v6657_v37 }
  0xbc   : > { %809 = vmatprep.mubr.f32.mxu0 %v6335_v0 }
  0xbf   : > { %4746 = vmatmul.mubr.msk.f32.gmra.mrb[20].mxu0 %vm600_vm0, %v6663_v38 }
  0xc0   : > { %815 = vmatprep.mubr.f32.mxu0 %v6335_v0 }
  0xc3   : > { %4747 = vmatmul.mubr.msk.f32.gmra.mrb[22].mxu0 %vm600_vm0, %v6669_v39 }
  0xc4   : > { %821 = vmatprep.mubr.f32.mxu0 %v6335_v0 }
  0xc7   : > { %4748 = vmatmul.mubr.msk.f32.gmra.mrb[24].mxu0 %vm600_vm0, %v6675_v40 }
  0xc8   : > { %827 = vmatprep.mubr.f32.mxu0 %v6335_v0 }
  0xcb   : > { %4749 = vmatmul.mubr.msk.f32.gmra.mrb[26].mxu0 %vm600_vm0, %v6681_v41 }
  0xcc   : > { %833 = vmatprep.mubr.f32.mxu0 %v6335_v0 }
  0xcf   : > { %4750 = vmatmul.mubr.msk.f32.gmra.mrb[28].mxu0 %vm600_vm0, %v6687_v42 }
  0xd0   : > { %839 = vmatprep.mubr.f32.mxu0 %v6335_v0 }
  0xd3   : > { %4751 = vmatmul.mubr.msk.f32.gmra.mrb[30].mxu0 %vm600_vm0, %v6693_v43 }
  0xd4   : > { %845 = vmatprep.mubr.f32.mxu0 %v6335_v0 }
  0xd7   : > { %4752 = vmatmul.mubr.msk.f32.gmra.mrb[32].mxu0 %vm600_vm0, %v6699_v44 }
  0xd8   : > { %851 = vmatprep.mubr.f32.mxu0 %v6335_v0 }
  0xdb   : > { %4753 = vmatmul.mubr.msk.f32.gmra.mrb[34].mxu0 %vm600_vm0, %v6705_v45 }
  0xdc   : > { %857 = vmatprep.mubr.f32.mxu0 %v6335_v0 }
  0xdf   : > { %4754 = vmatmul.mubr.msk.f32.gmra.mrb[36].mxu0 %vm600_vm0, %v6711_v46 }
  0xe0   : > { %863 = vmatprep.mubr.f32.mxu0 %v6335_v0 }
  0xe3   : > { %4755 = vmatmul.mubr.msk.f32.gmra.mrb[38].mxu0 %vm600_vm0, %v6717_v47 }
  0xe4   : > { %869 = vmatprep.mubr.f32.mxu0 %v6335_v0 }
  0xe7   : > { %4756 = vmatmul.mubr.msk.f32.gmra.mrb[40].mxu0 %vm600_vm0, %v6723_v48 }
  0xe8   : > { %875 = vmatprep.mubr.f32.mxu0 %v6335_v0 }
  0xeb   : > { %4757 = vmatmul.mubr.msk.f32.gmra.mrb[42].mxu0 %vm600_vm0, %v6729_v49 }
  0xec   : > { %881 = vmatprep.mubr.f32.mxu0 %v6335_v0 }
  0xef   : > { %4758 = vmatmul.mubr.msk.f32.gmra.mrb[44].mxu0 %vm600_vm0, %v6735_v50 }
  0xf0   : > { %887 = vmatprep.mubr.f32.mxu0 %v6335_v0 }
  0xf3   : > { %4759 = vmatmul.mubr.msk.f32.gmra.mrb[46].mxu0 %vm600_vm0, %v6741_v51 }
  0xf4   : > { %893 = vmatprep.mubr.f32.mxu0 %v6335_v0 }
  0xf7   : > { %4760 = vmatmul.mubr.msk.f32.gmra.mrb[48].mxu0 %vm600_vm0, %v6747_v52 }
  0xf8   : > { %899 = vmatprep.mubr.f32.mxu0 %v6335_v0 }
  0xfb   : > { %4761 = vmatmul.mubr.msk.f32.gmra.mrb[50].mxu0 %vm600_vm0, %v6753_v53 }
  0xfc   : > { %905 = vmatprep.mubr.f32.mxu0 %v6335_v0 }
  0xff   : > { %4762 = vmatmul.mubr.msk.f32.gmra.mrb[52].mxu0 %vm600_vm0, %v6759_v54 }
 0x100   : > { %911 = vmatprep.mubr.f32.mxu0 %v6335_v0 }
 0x103   : > { %4763 = vmatmul.mubr.msk.f32.gmra.mrb[54].mxu0 %vm600_vm0, %v6765_v55 }
 0x104   : > { %985 = vmatprep.mubr.f32.mxu0 %v6335_v0 }
 0x107   : > { %4764 = vmatmul.mubr.msk.f32.vlgmr.msra.gmra.mrb[0].mxu0 %vm600_vm0, %v554_v60  ;;  %v2597_v60 = vld [vmem:[#allocation7 + $0x20] sm:$0xff] }
 0x108   : > { %5423 = vmatpush1.bf16.msra.mxu0 %v5422_v61  ;;  %991 = vmatprep.mubr.f32.mxu0 %v6335_v0  ;;  %v2598_v61 = vld [vmem:[#allocation7 + $0x28] sm:$0xff] }
 0x109   : > { %5425 = vmatprep.subr.bf16.mxu0 %v5424_v62  ;;  %v5451_v62 = vpack.c.bf16 %v2598_v61, %v2597_v60 }
 0x10b   : > { %4765 = vmatmul.mubr.msk.f32.gmra.mrb[2].mxu0 %vm600_vm0, %v6603_v18  ;;  %v6936_v18 = vld [vmem:[%s6600_s3 + $0xe8] sm:$0xff] }
 0x10c   : > { %997 = vmatprep.mubr.f32.mxu0 %v6335_v0  ;;  %5427 = vmatpush1.bf16.msra.mxu0 %v5426_v4  ;;  %v2602_v4 = vld [vmem:[#allocation7 + $0x48] sm:$0xff] }
 0x10d   : > { %5429 = vmatprep.subr.bf16.mxu0 %v5428_v5  ;;  %v7027_v5 = vld [vmem:[%s6600_s3 + $0xf0] sm:$0xff]  ;;  %v5457_v6 = vpack.c.bf16 %v2602_v4, %v2601_v3  ;;  %v2793_v4 = vld [vmem:[#allocation9 + $0x10] sm:$0xff] }
 0x10f   : > { %4766 = vmatmul.mubr.msk.f32.gmra.mrb[4].mxu0 %vm600_vm0, %v6609_v25 }
 0x110   : > { %1003 = vmatprep.mubr.f32.mxu0 %v6335_v0 }
 0x113   : > { %4767 = vmatmul.mubr.msk.f32.gmra.mrb[6].mxu0 %vm600_vm0, %v6615_v29 }
 0x114   : > { %1009 = vmatprep.mubr.f32.mxu0 %v6335_v0 }
 0x117   : > { %4768 = vmatmul.mubr.msk.f32.gmra.mrb[8].mxu0 %vm600_vm0, %v6621_v31 }
 0x118   : > { %1015 = vmatprep.mubr.f32.mxu0 %v6335_v0 }
 0x11b   : > { %4769 = vmatmul.mubr.msk.f32.gmra.mrb[10].mxu0 %vm600_vm0, %v6627_v32 }
 0x11c   : > { %1021 = vmatprep.mubr.f32.mxu0 %v6335_v0 }
 0x11f   : > { %4770 = vmatmul.mubr.msk.f32.gmra.mrb[12].mxu0 %vm600_vm0, %v6633_v33 }
 0x120   : > { %1027 = vmatprep.mubr.f32.mxu0 %v6335_v0 }
 0x123   : > { %4771 = vmatmul.mubr.msk.f32.gmra.mrb[14].mxu0 %vm600_vm0, %v6639_v34 }
 0x124   : > { %1033 = vmatprep.mubr.f32.mxu0 %v6335_v0 }
 0x127   : > { %4772 = vmatmul.mubr.msk.f32.gmra.mrb[16].mxu0 %vm600_vm0, %v6645_v35 }
 0x128   : > { %1039 = vmatprep.mubr.f32.mxu0 %v6335_v0 }
 0x12b   : > { %4773 = vmatmul.mubr.msk.f32.gmra.mrb[18].mxu0 %vm600_vm0, %v6651_v36 }
 0x12c   : > { %1045 = vmatprep.mubr.f32.mxu0 %v6335_v0 }
 0x12f   : > { %4774 = vmatmul.mubr.msk.f32.gmra.mrb[20].mxu0 %vm600_vm0, %v6657_v37 }
 0x130   : > { %1051 = vmatprep.mubr.f32.mxu0 %v6335_v0 }
 0x133   : > { %4775 = vmatmul.mubr.msk.f32.gmra.mrb[22].mxu0 %vm600_vm0, %v6663_v38 }
 0x134   : > { %1057 = vmatprep.mubr.f32.mxu0 %v6335_v0 }
 0x137   : > { %4776 = vmatmul.mubr.msk.f32.gmra.mrb[24].mxu0 %vm600_vm0, %v6669_v39 }
 0x138   : > { %1063 = vmatprep.mubr.f32.mxu0 %v6335_v0 }
 0x13b   : > { %4777 = vmatmul.mubr.msk.f32.gmra.mrb[26].mxu0 %vm600_vm0, %v6675_v40 }
 0x13c   : > { %1069 = vmatprep.mubr.f32.mxu0 %v6335_v0 }
 0x13f   : > { %4778 = vmatmul.mubr.msk.f32.gmra.mrb[28].mxu0 %vm600_vm0, %v6681_v41 }
 0x140   : > { %1075 = vmatprep.mubr.f32.mxu0 %v6335_v0 }
 0x143   : > { %4779 = vmatmul.mubr.msk.f32.gmra.mrb[30].mxu0 %vm600_vm0, %v6687_v42 }
 0x144   : > { %1081 = vmatprep.mubr.f32.mxu0 %v6335_v0 }
 0x147   : > { %4780 = vmatmul.mubr.msk.f32.gmra.mrb[32].mxu0 %vm600_vm0, %v6693_v43 }
 0x148   : > { %1087 = vmatprep.mubr.f32.mxu0 %v6335_v0 }
 0x14b   : > { %4781 = vmatmul.mubr.msk.f32.gmra.mrb[34].mxu0 %vm600_vm0, %v6699_v44 }
 0x14c   : > { %1093 = vmatprep.mubr.f32.mxu0 %v6335_v0 }
 0x14f   : > { %4782 = vmatmul.mubr.msk.f32.gmra.mrb[36].mxu0 %vm600_vm0, %v6705_v45 }
 0x150   : > { %1099 = vmatprep.mubr.f32.mxu0 %v6335_v0 }
 0x153   : > { %4783 = vmatmul.mubr.msk.f32.gmra.mrb[38].mxu0 %vm600_vm0, %v6711_v46 }
 0x154   : > { %1105 = vmatprep.mubr.f32.mxu0 %v6335_v0 }
 0x157   : > { %4784 = vmatmul.mubr.msk.f32.gmra.mrb[40].mxu0 %vm600_vm0, %v6717_v47 }
 0x158   : > { %1111 = vmatprep.mubr.f32.mxu0 %v6335_v0 }
 0x15b   : > { %4785 = vmatmul.mubr.msk.f32.gmra.mrb[42].mxu0 %vm600_vm0, %v6723_v48 }
 0x15c   : > { %1117 = vmatprep.mubr.f32.mxu0 %v6335_v0 }
 0x15f   : > { %4786 = vmatmul.mubr.msk.f32.gmra.mrb[44].mxu0 %vm600_vm0, %v6729_v49 }
 0x160   : > { %1123 = vmatprep.mubr.f32.mxu0 %v6335_v0 }
 0x163   : > { %4787 = vmatmul.mubr.msk.f32.gmra.mrb[46].mxu0 %vm600_vm0, %v6735_v50 }
 0x164   : > { %1129 = vmatprep.mubr.f32.mxu0 %v6335_v0 }
 0x167   : > { %4788 = vmatmul.mubr.msk.f32.gmra.mrb[48].mxu0 %vm600_vm0, %v6741_v51 }
 0x168   : > { %1135 = vmatprep.mubr.f32.mxu0 %v6335_v0 }
 0x16b   : > { %4789 = vmatmul.mubr.msk.f32.gmra.mrb[50].mxu0 %vm600_vm0, %v6747_v52 }
 0x16c   : > { %1141 = vmatprep.mubr.f32.mxu0 %v6335_v0 }
 0x16f   : > { %4790 = vmatmul.mubr.msk.f32.gmra.mrb[52].mxu0 %vm600_vm0, %v6753_v53 }
 0x170   : > { %1147 = vmatprep.mubr.f32.mxu0 %v6335_v0 }
 0x173   : > { %4791 = vmatmul.mubr.msk.f32.gmra.mrb[54].mxu0 %vm600_vm0, %v6759_v54 }
 0x174   : > { %1339 = vmatprep.mubr.f32.mxu0 %v6335_v0 }
 0x177   : > { %4792 = vmatmul.mubr.msk.f32.vlgmr.msra.gmra.mrb[0].mxu0 %vm600_vm0, %v6609_v25  ;;  %v2007_v25 = vld [vmem:[#allocation4 + $0x120] sm:$0xff] }
 0x178   : > { %5431 = vmatpush1.bf16.msra.mxu0 %v5430_v10  ;;  %1345 = vmatprep.mubr.f32.mxu0 %v6335_v0  ;;  %v5442_v27 = vpack.c.bf16 %v2009_v26, %v2007_v25 }
 0x179   : > { %5433 = vmatprep.subr.bf16.mxu0 %v5432_v11 }
 0x17b   : > { %4793 = vmatmul.mubr.msk.f32.gmra.mrb[2].mxu0 %vm600_vm0, %v6615_v29 }
 0x17c   : > { %1351 = vmatprep.mubr.f32.mxu0 %v6335_v0  ;;  %5435 = vmatpush1.bf16.msra.mxu0 %v5434_v16 }
 0x17d   : > { %5437 = vmatprep.subr.bf16.mxu0 %v5436_v17 }
 0x17f   : > { %4794 = vmatmul.mubr.msk.f32.gmra.mrb[4].mxu0 %vm600_vm0, %v6621_v31 }
 0x180   : > { %1357 = vmatprep.mubr.f32.mxu0 %v6335_v0 }
 0x183   : > { %4795 = vmatmul.mubr.msk.f32.gmra.mrb[6].mxu0 %vm600_vm0, %v6627_v32 }
 0x184   : > { %1363 = vmatprep.mubr.f32.mxu0 %v6335_v0 }
 0x187   : > { %4796 = vmatmul.mubr.msk.f32.gmra.mrb[8].mxu0 %vm600_vm0, %v6633_v33 }
 0x188   : > { %1369 = vmatprep.mubr.f32.mxu0 %v6335_v0 }
 0x18b   : > { %4797 = vmatmul.mubr.msk.f32.gmra.mrb[10].mxu0 %vm600_vm0, %v6639_v34 }
 0x18c   : > { %1375 = vmatprep.mubr.f32.mxu0 %v6335_v0 }
 0x18f   : > { %4798 = vmatmul.mubr.msk.f32.gmra.mrb[12].mxu0 %vm600_vm0, %v6645_v35 }
 0x190   : > { %1381 = vmatprep.mubr.f32.mxu0 %v6335_v0 }
 0x193   : > { %4799 = vmatmul.mubr.msk.f32.gmra.mrb[14].mxu0 %vm600_vm0, %v6651_v36 }
 0x194   : > { %1387 = vmatprep.mubr.f32.mxu0 %v6335_v0 }
 0x197   : > { %4800 = vmatmul.mubr.msk.f32.gmra.mrb[16].mxu0 %vm600_vm0, %v6657_v37 }
 0x198   : > { %1393 = vmatprep.mubr.f32.mxu0 %v6335_v0 }
 0x19b   : > { %4801 = vmatmul.mubr.msk.f32.gmra.mrb[18].mxu0 %vm600_vm0, %v6663_v38 }
 0x19c   : > { %1399 = vmatprep.mubr.f32.mxu0 %v6335_v0 }
 0x19f   : > { %4802 = vmatmul.mubr.msk.f32.gmra.mrb[20].mxu0 %vm600_vm0, %v6669_v39 }
 0x1a0   : > { %1405 = vmatprep.mubr.f32.mxu0 %v6335_v0 }
 0x1a3   : > { %4803 = vmatmul.mubr.msk.f32.gmra.mrb[22].mxu0 %vm600_vm0, %v6675_v40 }
 0x1a4   : > { %1411 = vmatprep.mubr.f32.mxu0 %v6335_v0 }
 0x1a7   : > { %4804 = vmatmul.mubr.msk.f32.gmra.mrb[24].mxu0 %vm600_vm0, %v6681_v41 }
 0x1a8   : > { %1417 = vmatprep.mubr.f32.mxu0 %v6335_v0 }
 0x1ab   : > { %4805 = vmatmul.mubr.msk.f32.gmra.mrb[26].mxu0 %vm600_vm0, %v6687_v42 }
 0x1ac   : > { %1423 = vmatprep.mubr.f32.mxu0 %v6335_v0 }
 0x1af   : > { %4806 = vmatmul.mubr.msk.f32.gmra.mrb[28].mxu0 %vm600_vm0, %v6693_v43 }
 0x1b0   : > { %1429 = vmatprep.mubr.f32.mxu0 %v6335_v0 }
 0x1b3   : > { %4807 = vmatmul.mubr.msk.f32.gmra.mrb[30].mxu0 %vm600_vm0, %v6699_v44 }
 0x1b4   : > { %1435 = vmatprep.mubr.f32.mxu0 %v6335_v0 }
 0x1b7   : > { %4808 = vmatmul.mubr.msk.f32.gmra.mrb[32].mxu0 %vm600_vm0, %v6705_v45 }
 0x1b8   : > { %1441 = vmatprep.mubr.f32.mxu0 %v6335_v0 }
 0x1bb   : > { %4809 = vmatmul.mubr.msk.f32.gmra.mrb[34].mxu0 %vm600_vm0, %v6711_v46 }
 0x1bc   : > { %1447 = vmatprep.mubr.f32.mxu0 %v6335_v0 }
 0x1bf   : > { %4810 = vmatmul.mubr.msk.f32.gmra.mrb[36].mxu0 %vm600_vm0, %v6717_v47 }
 0x1c0   : > { %1453 = vmatprep.mubr.f32.mxu0 %v6335_v0 }
 0x1c3   : > { %4811 = vmatmul.mubr.msk.f32.gmra.mrb[38].mxu0 %vm600_vm0, %v6723_v48 }
 0x1c4   : > { %1459 = vmatprep.mubr.f32.mxu0 %v6335_v0 }
 0x1c7   : > { %4812 = vmatmul.mubr.msk.f32.gmra.mrb[40].mxu0 %vm600_vm0, %v6729_v49 }
 0x1c8   : > { %1465 = vmatprep.mubr.f32.mxu0 %v6335_v0 }
 0x1cb   : > { %4813 = vmatmul.mubr.msk.f32.gmra.mrb[42].mxu0 %vm600_vm0, %v6735_v50 }
 0x1cc   : > { %1471 = vmatprep.mubr.f32.mxu0 %v6335_v0 }
 0x1cf   : > { %4814 = vmatmul.mubr.msk.f32.gmra.mrb[44].mxu0 %vm600_vm0, %v6741_v51 }
 0x1d0   : > { %1477 = vmatprep.mubr.f32.mxu0 %v6335_v0 }
 0x1d3   : > { %4815 = vmatmul.mubr.msk.f32.gmra.mrb[46].mxu0 %vm600_vm0, %v6747_v52 }
 0x1d4   : > { %1483 = vmatprep.mubr.f32.mxu0 %v6335_v0 }
 0x1d7   : > { %4816 = vmatmul.mubr.msk.f32.gmra.mrb[48].mxu0 %vm600_vm0, %v6753_v53 }
 0x1d8   : > { %1489 = vmatprep.mubr.f32.mxu0 %v6335_v0 }
 0x1db   : > { %4817 = vmatmul.mubr.msk.f32.gmra.mrb[50].mxu0 %vm600_vm0, %v6759_v54 }
 0x1dc   : > { %1495 = vmatprep.mubr.f32.mxu0 %v6335_v0 }
 0x1df   : > { %4818 = vmatmul.mubr.msk.f32.gmra.mrb[52].mxu0 %vm600_vm0, %v6765_v55 }
 0x1e0   : > { %1501 = vmatprep.mubr.f32.mxu0 %v6335_v0 }
 0x1e3   : > { %4819 = vmatmul.mubr.msk.f32.gmra.mrb[54].mxu0 %vm600_vm0, %v6936_v18 }
 0x1e4   : > { %1749 = vmatprep.mubr.f32.mxu0 %v6335_v0 }
 0x1e7   : > { %4820 = vmatmul.mubr.msk.f32.vlgmr.msra.gmra.mrb[0].mxu0 %vm600_vm0, %v6615_v29  ;;  %v2594_v29 = vld [vmem:[#allocation7 + $0x8] sm:$0xff] }
 0x1e8   : > { %5439 = vmatpush1.bf16.msra.mxu0 %v5438_v23  ;;  %1755 = vmatprep.mubr.f32.mxu0 %v6335_v0  ;;  %v5445_v57 = vpack.c.bf16 %v2594_v29, %v2593_v28 }
 0x1e9   : > { %5441 = vmatprep.subr.bf16.mxu0 %v5440_v24 }
 0x1ea   : > { %5446 = vmatpush1.bf16.msra.mxu1 %v5445_v57  ;;  %v2792_v57 = vld [vmem:[#allocation9 + $0x8] sm:$0xff] }
 0x1eb   : > { %4821 = vmatmul.mubr.msk.f32.gmra.mrb[2].mxu0 %vm600_vm0, %v6621_v31  ;;  %5447 = vmatprep.subr.bf16.mxu1 %v6336_v56  ;;  %v5475_v1 = vpack.c.bf16 %v2792_v57, %v2791_v30 }
 0x1ec   : > { %1761 = vmatprep.mubr.f32.mxu0 %v6335_v0  ;;  %5443 = vmatpush1.bf16.msra.mxu0 %v5442_v27 }
 0x1ee   : > { %5449 = vmatpush1.bf16.msra.mxu1 %v5448_v59 }
 0x1ef   : > { %4822 = vmatmul.mubr.msk.f32.gmra.mrb[4].mxu0 %vm600_vm0, %v6627_v32  ;;  %5450 = vmatprep.subr.bf16.mxu1 %v6336_v56 }
 0x1f0   : > { %1767 = vmatprep.mubr.f32.mxu0 %v6335_v0 }
 0x1f2   : > { %5452 = vmatpush1.bf16.msra.mxu1 %v5451_v62 }
 0x1f3   : > { %4823 = vmatmul.mubr.msk.f32.gmra.mrb[6].mxu0 %vm600_vm0, %v6633_v33  ;;  %5453 = vmatprep.subr.bf16.mxu1 %v6336_v56 }
 0x1f4   : > { %1773 = vmatprep.mubr.f32.mxu0 %v6335_v0 }
 0x1f6   : > { %5455 = vmatpush1.bf16.msra.mxu1 %v5454_v2 }
 0x1f7   : > { %4824 = vmatmul.mubr.msk.f32.gmra.mrb[8].mxu0 %vm600_vm0, %v6639_v34  ;;  %5456 = vmatprep.subr.bf16.mxu1 %v6336_v56 }
 0x1f8   : > { %1779 = vmatprep.mubr.f32.mxu0 %v6335_v0 }
 0x1fa   : > { %5458 = vmatpush1.bf16.msra.mxu1 %v5457_v6 }
 0x1fb   : > { %4825 = vmatmul.mubr.msk.f32.gmra.mrb[10].mxu0 %vm600_vm0, %v6645_v35  ;;  %5459 = vmatprep.subr.bf16.mxu1 %v6336_v56 }
 0x1fc   : > { %1785 = vmatprep.mubr.f32.mxu0 %v6335_v0 }
 0x1ff   : > { %4826 = vmatmul.mubr.msk.f32.gmra.mrb[12].mxu0 %vm600_vm0, %v6651_v36 }
 0x200   : > { %1791 = vmatprep.mubr.f32.mxu0 %v6335_v0 }
 0x203   : > { %4827 = vmatmul.mubr.msk.f32.gmra.mrb[14].mxu0 %vm600_vm0, %v6657_v37 }
 0x204   : > { %1797 = vmatprep.mubr.f32.mxu0 %v6335_v0 }
 0x207   : > { %4828 = vmatmul.mubr.msk.f32.gmra.mrb[16].mxu0 %vm600_vm0, %v6663_v38 }
 0x208   : > { %1803 = vmatprep.mubr.f32.mxu0 %v6335_v0 }
 0x20b   : > { %4829 = vmatmul.mubr.msk.f32.gmra.mrb[18].mxu0 %vm600_vm0, %v6669_v39 }
 0x20c   : > { %1809 = vmatprep.mubr.f32.mxu0 %v6335_v0 }
 0x20f   : > { %4830 = vmatmul.mubr.msk.f32.gmra.mrb[20].mxu0 %vm600_vm0, %v6675_v40 }
 0x210   : > { %1815 = vmatprep.mubr.f32.mxu0 %v6335_v0 }
 0x213   : > { %4831 = vmatmul.mubr.msk.f32.gmra.mrb[22].mxu0 %vm600_vm0, %v6681_v41 }
 0x214   : > { %1821 = vmatprep.mubr.f32.mxu0 %v6335_v0 }
 0x217   : > { %4832 = vmatmul.mubr.msk.f32.gmra.mrb[24].mxu0 %vm600_vm0, %v6687_v42 }
 0x218   : > { %1827 = vmatprep.mubr.f32.mxu0 %v6335_v0 }
 0x21b   : > { %4833 = vmatmul.mubr.msk.f32.gmra.mrb[26].mxu0 %vm600_vm0, %v6693_v43 }
 0x21c   : > { %1833 = vmatprep.mubr.f32.mxu0 %v6335_v0 }
 0x21f   : > { %4834 = vmatmul.mubr.msk.f32.gmra.mrb[28].mxu0 %vm600_vm0, %v6699_v44 }
 0x220   : > { %1839 = vmatprep.mubr.f32.mxu0 %v6335_v0 }
 0x223   : > { %4835 = vmatmul.mubr.msk.f32.gmra.mrb[30].mxu0 %vm600_vm0, %v6705_v45 }
 0x224   : > { %1845 = vmatprep.mubr.f32.mxu0 %v6335_v0 }
 0x227   : > { %4836 = vmatmul.mubr.msk.f32.gmra.mrb[32].mxu0 %vm600_vm0, %v6711_v46 }
 0x228   : > { %1851 = vmatprep.mubr.f32.mxu0 %v6335_v0 }
 0x22b   : > { %4837 = vmatmul.mubr.msk.f32.gmra.mrb[34].mxu0 %vm600_vm0, %v6717_v47 }
 0x22c   : > { %1857 = vmatprep.mubr.f32.mxu0 %v6335_v0 }
 0x22f   : > { %4838 = vmatmul.mubr.msk.f32.gmra.mrb[36].mxu0 %vm600_vm0, %v6723_v48 }
 0x230   : > { %1863 = vmatprep.mubr.f32.mxu0 %v6335_v0 }
 0x233   : > { %4839 = vmatmul.mubr.msk.f32.gmra.mrb[38].mxu0 %vm600_vm0, %v6729_v49 }
 0x234   : > { %1869 = vmatprep.mubr.f32.mxu0 %v6335_v0 }
 0x237   : > { %4840 = vmatmul.mubr.msk.f32.gmra.mrb[40].mxu0 %vm600_vm0, %v6735_v50 }
 0x238   : > { %1875 = vmatprep.mubr.f32.mxu0 %v6335_v0 }
 0x23b   : > { %4841 = vmatmul.mubr.msk.f32.gmra.mrb[42].mxu0 %vm600_vm0, %v6741_v51 }
 0x23c   : > { %1881 = vmatprep.mubr.f32.mxu0 %v6335_v0 }
 0x23f   : > { %4842 = vmatmul.mubr.msk.f32.gmra.mrb[44].mxu0 %vm600_vm0, %v6747_v52 }
 0x240   : > { %1887 = vmatprep.mubr.f32.mxu0 %v6335_v0 }
 0x243   : > { %4843 = vmatmul.mubr.msk.f32.gmra.mrb[46].mxu0 %vm600_vm0, %v6753_v53 }
 0x244   : > { %1893 = vmatprep.mubr.f32.mxu0 %v6335_v0 }
 0x247   : > { %4844 = vmatmul.mubr.msk.f32.gmra.mrb[48].mxu0 %vm600_vm0, %v6759_v54 }
 0x248   : > { %1899 = vmatprep.mubr.f32.mxu0 %v6335_v0 }
 0x24b   : > { %4845 = vmatmul.mubr.msk.f32.gmra.mrb[50].mxu0 %vm600_vm0, %v6765_v55 }
 0x24c   : > { %1905 = vmatprep.mubr.f32.mxu0 %v6335_v0 }
 0x24f   : > { %4846 = vmatmul.mubr.msk.f32.gmra.mrb[52].mxu0 %vm600_vm0, %v6936_v18 }
 0x250   : > { %1911 = vmatprep.mubr.f32.mxu0 %v6335_v0 }
 0x253   : > { %4847 = vmatmul.mubr.msk.f32.gmra.mrb[54].mxu0 %vm600_vm0, %v7027_v5 }
 0x254   : > { %2159 = vmatprep.mubr.f32.mxu0 %v6335_v0 }
 0x257   : > { %4848 = vmatmul.mubr.msk.f32.vlgmr.msra.gmra.mrb[0].mxu0 %vm600_vm0, %v6621_v31  ;;  %v2603_v31 = vld [vmem:[#allocation7 + $0x50] sm:$0xff] }
 0x258   : > { %2165 = vmatprep.mubr.f32.mxu0 %v6335_v0 }
 0x25b   : > { %4849 = vmatmul.mubr.msk.f32.gmra.mrb[2].mxu0 %vm600_vm0, %v6627_v32  ;;  %v2604_v32 = vld [vmem:[#allocation7 + $0x58] sm:$0xff] }
 0x25c   : > { %2171 = vmatprep.mubr.f32.mxu0 %v6335_v0 }
 0x25f   : > { %4850 = vmatmul.mubr.msk.f32.gmra.mrb[4].mxu0 %vm600_vm0, %v6633_v33  ;;  %v5460_v33 = vpack.c.bf16 %v2604_v32, %v2603_v31 }
 0x260   : > { %2177 = vmatprep.mubr.f32.mxu0 %v6335_v0 }
 0x261   : > { %5461 = vmatpush1.bf16.msra.mxu1 %v5460_v33 }
 0x262   : > { %5462 = vmatprep.subr.bf16.mxu1 %v6336_v56 }
 0x263   : > { %4851 = vmatmul.mubr.msk.f32.gmra.mrb[6].mxu0 %vm600_vm0, %v6639_v34  ;;  %v2605_v34 = vld [vmem:[#allocation7 + $0x60] sm:$0xff] }
 0x264   : > { %2183 = vmatprep.mubr.f32.mxu0 %v6335_v0 }
 0x267   : > { %4852 = vmatmul.mubr.msk.f32.gmra.mrb[8].mxu0 %vm600_vm0, %v6645_v35  ;;  %v2606_v35 = vld [vmem:[#allocation7 + $0x68] sm:$0xff] }
 0x268   : > { %2189 = vmatprep.mubr.f32.mxu0 %v6335_v0 }
 0x26b   : > { %4853 = vmatmul.mubr.msk.f32.gmra.mrb[10].mxu0 %vm600_vm0, %v6651_v36  ;;  %v5463_v36 = vpack.c.bf16 %v2606_v35, %v2605_v34 }
 0x26c   : > { %2195 = vmatprep.mubr.f32.mxu0 %v6335_v0 }
 0x26d   : > { %5464 = vmatpush1.bf16.msra.mxu1 %v5463_v36 }
 0x26e   : > { %5465 = vmatprep.subr.bf16.mxu1 %v6336_v56 }
 0x26f   : > { %4854 = vmatmul.mubr.msk.f32.gmra.mrb[12].mxu0 %vm600_vm0, %v6657_v37  ;;  %v2607_v37 = vld [vmem:[#allocation7 + $0x70] sm:$0xff] }
 0x270   : > { %2201 = vmatprep.mubr.f32.mxu0 %v6335_v0 }
 0x273   : > { %4855 = vmatmul.mubr.msk.f32.gmra.mrb[14].mxu0 %vm600_vm0, %v6663_v38  ;;  %v2608_v38 = vld [vmem:[#allocation7 + $0x78] sm:$0xff] }
 0x274   : > { %2207 = vmatprep.mubr.f32.mxu0 %v6335_v0 }
 0x277   : > { %4856 = vmatmul.mubr.msk.f32.gmra.mrb[16].mxu0 %vm600_vm0, %v6669_v39  ;;  %v5466_v39 = vpack.c.bf16 %v2608_v38, %v2607_v37  ;;  %v2795_v38 = vld [vmem:[#allocation9 + $0x20] sm:$0xff] }
 0x278   : > { %2213 = vmatprep.mubr.f32.mxu0 %v6335_v0 }
 0x279   : > { %5467 = vmatpush1.bf16.msra.mxu1 %v5466_v39  ;;  %v2796_v39 = vld [vmem:[#allocation9 + $0x28] sm:$0xff] }
 0x27a   : > { %5468 = vmatprep.subr.bf16.mxu1 %v6336_v56 }
 0x27b   : > { %4857 = vmatmul.mubr.msk.f32.gmra.mrb[18].mxu0 %vm600_vm0, %v6675_v40  ;;  %v2609_v40 = vld [vmem:[#allocation7 + $0x80] sm:$0xff] }
 0x27c   : > { %2219 = vmatprep.mubr.f32.mxu0 %v6335_v0 }
 0x27f   : > { %4858 = vmatmul.mubr.msk.f32.gmra.mrb[20].mxu0 %vm600_vm0, %v6681_v41  ;;  %v2610_v41 = vld [vmem:[#allocation7 + $0x88] sm:$0xff] }
 0x280   : > { %2225 = vmatprep.mubr.f32.mxu0 %v6335_v0 }
 0x283   : > { %4859 = vmatmul.mubr.msk.f32.gmra.mrb[22].mxu0 %vm600_vm0, %v6687_v42  ;;  %v5469_v42 = vpack.c.bf16 %v2610_v41, %v2609_v40 }
 0x284   : > { %2231 = vmatprep.mubr.f32.mxu0 %v6335_v0 }
 0x285   : > { %5470 = vmatpush1.bf16.msra.mxu1 %v5469_v42 }
 0x286   : > { %5471 = vmatprep.subr.bf16.mxu1 %v6336_v56 }
 0x287   : > { %4860 = vmatmul.mubr.msk.f32.gmra.mrb[24].mxu0 %vm600_vm0, %v6693_v43  ;;  %v2611_v43 = vld [vmem:[#allocation7 + $0x90] sm:$0xff] }
 0x288   : > { %2237 = vmatprep.mubr.f32.mxu0 %v6335_v0 }
 0x28b   : > { %4861 = vmatmul.mubr.msk.f32.gmra.mrb[26].mxu0 %vm600_vm0, %v6699_v44  ;;  %v2612_v44 = vld [vmem:[#allocation7 + $0x98] sm:$0xff] }
 0x28c   : > { %2243 = vmatprep.mubr.f32.mxu0 %v6335_v0 }
 0x28f   : > { %4862 = vmatmul.mubr.msk.f32.gmra.mrb[28].mxu0 %vm600_vm0, %v6705_v45  ;;  %v5472_v45 = vpack.c.bf16 %v2612_v44, %v2611_v43 }
 0x290   : > { %2249 = vmatprep.mubr.f32.mxu0 %v6335_v0 }
 0x291   : > { %5473 = vmatpush1.bf16.msra.mxu1 %v5472_v45 }
 0x292   : > { %2696 = vmatprep.subr.mxu1 %v6335_v0 }
 0x293   : > { %4863 = vmatmul.mubr.msk.f32.gmra.mrb[30].mxu0 %vm600_vm0, %v6711_v46  ;;  %v2613_v46 = vld [vmem:[#allocation7 + $0xa0] sm:$0xff] }
 0x294   : > { %2255 = vmatprep.mubr.f32.mxu0 %v6335_v0 }
 0x295   : > { %2697 = vmatpush1.msra.mxu1 %v2613_v46  ;;  %v5481_v46 = vpack.c.bf16 %v2796_v39, %v2795_v38  ;;  %v2806_v38 = vld [vmem:[#allocation9 + $0x78] sm:$0xff] }
 0x296   : > { %5474 = vmatprep.subr.bf16.mxu1 %v6336_v56 }
 0x297   : > { %4864 = vmatmul.mubr.msk.f32.gmra.mrb[32].mxu0 %vm600_vm0, %v6717_v47  ;;  %v2001_v47 = vld [vmem:[%s6600_s3 + $0xf8] sm:$0xff]  ;;  %s8425_s3 = sld [smem:[#allocation26_spill]] }
 0x298   : > { %2261 = vmatprep.mubr.f32.mxu0 %v6335_v0 }
 0x29b   : > { %4865 = vmatmul.mubr.msk.f32.gmra.mrb[34].mxu0 %vm600_vm0, %v6723_v48  ;;  %v2386_v48 = vlaneseq }
 0x29c   : > { %2267 = vmatprep.mubr.f32.mxu0 %v6335_v0 }
 0x29f   : > { %4866 = vmatmul.mubr.msk.f32.gmra.mrb[36].mxu0 %vm600_vm0, %v6729_v49  ;;  %v7123_v49 = vshrl.u32 %v2386_v48, 7 }
 0x2a0   : > { %2273 = vmatprep.mubr.f32.mxu0 %v6335_v0 }
 0x2a3   : > { %4867 = vmatmul.mubr.msk.f32.gmra.mrb[38].mxu0 %vm600_vm0, %v6735_v50  ;;  %v2388_v50 = vsub.s32 0, %v7123_v49 }
 0x2a4   : > { %2279 = vmatprep.mubr.f32.mxu0 %v6335_v0 }
 0x2a7   : > { %4868 = vmatmul.mubr.msk.f32.gmra.mrb[40].mxu0 %vm600_vm0, %v6741_v51  ;;  %v2384_v51 = vld [vmem:[%s8367_s2] sm:$0x3] }
 0x2a8   : > { %2285 = vmatprep.mubr.f32.mxu0 %v6335_v0 }
 0x2ab   : > { %4869 = vmatmul.mubr.msk.f32.gmra.mrb[42].mxu0 %vm600_vm0, %v6747_v52  ;;  %v2392_v52 = vsub.s32 1, %v7123_v49 }
 0x2ac   : > { %2291 = vmatprep.mubr.f32.mxu0 %v6335_v0 }
 0x2af   : > { %4870 = vmatmul.mubr.msk.f32.gmra.mrb[44].mxu0 %vm600_vm0, %v6753_v53  ;;  %v7132_v53 = vrot.slane %v2384_v51, %v2388_v50 }
 0x2b0   : > { %2297 = vmatprep.mubr.f32.mxu0 %v6335_v0 }
 0x2b3   : > { %4871 = vmatmul.mubr.msk.f32.gmra.mrb[46].mxu0 %vm600_vm0, %v6759_v54 }
 0x2b4   : > { %2303 = vmatprep.mubr.f32.mxu0 %v6335_v0 }
 0x2b7   : > { %4872 = vmatmul.mubr.msk.f32.gmra.mrb[48].mxu0 %vm600_vm0, %v6765_v55  ;;  %v7136_v55 = vrot.slane %v2384_v51, %v2392_v52  ;;  %v2797_v51 = vld [vmem:[#allocation9 + $0x30] sm:$0xff] }
 0x2b8   : > { %2309 = vmatprep.mubr.f32.mxu0 %v6335_v0 }
 0x2bb   : > { %4873 = vmatmul.mubr.msk.f32.gmra.mrb[50].mxu0 %vm600_vm0, %v6936_v18 }
 0x2bc   : > { %2315 = vmatprep.mubr.f32.mxu0 %v6335_v0 }
 0x2bf   : > { %4874 = vmatmul.mubr.msk.f32.gmra.mrb[52].mxu0 %vm600_vm0, %v7027_v5  ;;  %v2794_v5 = vld [vmem:[#allocation9 + $0x18] sm:$0xff] }
 0x2c0   : > { %2321 = vmatprep.mubr.f32.mxu0 %v6335_v0  ;;  %v5478_v35 = vpack.c.bf16 %v2794_v5, %v2793_v4 }
 0x2c3   : > { %4875 = vmatmul.mubr.msk.f32.gmra.mrb[54].mxu0 %vm600_vm0, %v2001_v47 }
 0x32a   : > { %v2161_v54 = vpop.f32.mrb[0].mxu0 }
 0x32b   : > { %v2163_v7 = vpop.f32.mrb[1].mxu0  ;;  %v2396_v8 = vadd.f32 %v7132_v53, %v2161_v54  ;;  %v2798_v54 = vld [vmem:[#allocation9 + $0x38] sm:$0xff] }
 0x32c   : > { %v2397_v9 = vadd.f32 %v7136_v55, %v2163_v7 }
 0x32d   : > { %v2452_v14 = vmax.f32 %v2396_v8, 0.0 }
 0x32e   : > { %v2167_v10 = vpop.f32.mrb[2].mxu0  ;;  %v2453_v16 = vmax.f32 %v2397_v9, 0.0 }
 0x32f   : > { %v2398_v11 = vadd.f32 %v7132_v53, %v2167_v10  ;;  %v2169_v12 = vpop.f32.mrb[3].mxu0 }
 0x330   : > { %v2399_v13 = vadd.f32 %v7136_v55, %v2169_v12  ;;  %v5484_v12 = vpack.c.bf16 %v2798_v54, %v2797_v51  ;;  %v2807_v51 = vld [vmem:[#allocation9 + $0x80] sm:$0xff]  ;;  %v2808_v54 = vld [vmem:[#allocation9 + $0x88] sm:$0xff] }
 0x331   : > { %v2454_v15 = vmax.f32 %v2398_v11, 0.0 }
 0x332   : > { %v2455_v17 = vmax.f32 %v2399_v13, 0.0  ;;  %v2173_v18 = vpop.f32.mrb[4].mxu0 }
 0x333   : > { %v7142_v19 = vmax.f32 %v2452_v14, %v2454_v15  ;;  %v2175_v20 = vpop.f32.mrb[5].mxu0  ;;  %v2400_v22 = vadd.f32 %v7132_v53, %v2173_v18  ;;  %v2799_v15 = vld [vmem:[#allocation9 + $0x40] sm:$0xff] }
 0x334   : > { %v2509_v21 = vmax.f32 %v2453_v16, %v2455_v17  ;;  %v2401_v23 = vadd.f32 %v7136_v55, %v2175_v20  ;;  %v2800_v16 = vld [vmem:[#allocation9 + $0x48] sm:$0xff] }
 0x335   : > { %v2456_v28 = vmax.f32 %v2400_v22, 0.0 }
 0x336   : > { %2512 = vst.msk [vmem:[#allocation2 + $0x8] sm:$0xff] %vm2511_vm1, %v2509_v21  ;;  %v2179_v24 = vpop.f32.mrb[6].mxu0  ;;  %v2457_v58 = vmax.f32 %v2401_v23, 0.0 }
 0x337   : > { %v2402_v25 = vadd.f32 %v7132_v53, %v2179_v24  ;;  %v2181_v26 = vpop.f32.mrb[7].mxu0  ;;  %v5487_v24 = vpack.c.bf16 %v2800_v16, %v2799_v15  ;;  %v2809_v16 = vld [vmem:[#allocation9 + $0x90] sm:$0xff] }
 0x338   : > { %v2403_v27 = vadd.f32 %v7136_v55, %v2181_v26 }
 0x339   : > { %v2458_v29 = vmax.f32 %v2402_v25, 0.0 }
 0x33a   : > { %v2459_v59 = vmax.f32 %v2403_v27, 0.0  ;;  %v2185_v60 = vpop.f32.mrb[8].mxu0  ;;  %v2801_v27 = vld [vmem:[#allocation9 + $0x50] sm:$0xff] }
 0x33b   : > { %v7149_v61 = vmax.f32 %v2456_v28, %v2458_v29  ;;  %v2187_v62 = vpop.f32.mrb[9].mxu0  ;;  %v2404_v2 = vadd.f32 %v7132_v53, %v2185_v60  ;;  %v2802_v28 = vld [vmem:[#allocation9 + $0x58] sm:$0xff] }
 0x33c   : > { %v2514_v63 = vmax.f32 %v2457_v58, %v2459_v59  ;;  %v2405_v6 = vadd.f32 %v7136_v55, %v2187_v62  ;;  %v5490_v60 = vpack.c.bf16 %v2802_v28, %v2801_v27 }
 0x33d   : > { %v7152_v3 = vld [vmem:[#allocation2 + $0x8] sm:$0xff]  ;;  %v2460_v36 = vmax.f32 %v2404_v2, 0.0  ;;  %v2804_v2 = vld [vmem:[#allocation9 + $0x68] sm:$0xff] }
 0x33e   : > { %2516 = vst.msk [vmem:[#allocation2 + $0x18] sm:$0xff] %vm2511_vm1, %v2514_v63  ;;  %v2191_v31 = vpop.f32.mrb[10].mxu0  ;;  %4876 = vmatprep.mubr.msk.f32.mxu1 %vm2511_vm1, %v7152_v3  ;;  %v2461_v40 = vmax.f32 %v2405_v6, 0.0 }
 0x33f   : > { %v2406_v32 = vadd.f32 %v7132_v53, %v2191_v31  ;;  %v2193_v33 = vpop.f32.mrb[11].mxu0  ;;  %2721 = vmatmul.mubr.f32.vlgmr.msra.gmra.mrb[0].mxu1 %v7142_v19 }
 0x340   : > { %v2407_v34 = vadd.f32 %v7136_v55, %v2193_v33  ;;  %5476 = vmatpush1.bf16.msra.mxu1 %v5475_v1  ;;  %v2803_v1 = vld [vmem:[#allocation9 + $0x60] sm:$0xff] }
 0x341   : > { %v2462_v37 = vmax.f32 %v2406_v32, 0.0  ;;  %5477 = vmatprep.subr.bf16.mxu1 %v6336_v56 }
 0x342   : > { %v2463_v41 = vmax.f32 %v2407_v34, 0.0  ;;  %v2197_v42 = vpop.f32.mrb[12].mxu0  ;;  %v5493_v34 = vpack.c.bf16 %v2804_v2, %v2803_v1  ;;  %v2811_v1 = vld [vmem:[#allocation9 + $0xa0] sm:$0xff] }
 0x343   : > { %v7162_v43 = vmax.f32 %v2460_v36, %v2462_v37  ;;  %v2199_v44 = vpop.f32.mrb[13].mxu0  ;;  %v2408_v47 = vadd.f32 %v7132_v53, %v2197_v42  ;;  %v2805_v37 = vld [vmem:[#allocation9 + $0x70] sm:$0xff] }
 0x344   : > { %v2518_v45 = vmax.f32 %v2461_v40, %v2463_v41  ;;  %5479 = vmatpush1.bf16.msra.mxu1 %v5478_v35  ;;  %v2409_v7 = vadd.f32 %v7136_v55, %v2199_v44 }
 0x345   : > { %v7165_v48 = vld [vmem:[#allocation2 + $0x18] sm:$0xff]  ;;  %5480 = vmatprep.subr.bf16.mxu1 %v6336_v56  ;;  %v2464_v13 = vmax.f32 %v2408_v47, 0.0 }
 0x346   : > { %2520 = vst.msk [vmem:[#allocation2 + $0x28] sm:$0xff] %vm2511_vm1, %v2518_v45  ;;  %v2203_v8 = vpop.f32.mrb[14].mxu0  ;;  %4877 = vmatprep.mubr.msk.f32.mxu1 %vm2511_vm1, %v7165_v48  ;;  %v2465_v17 = vmax.f32 %v2409_v7, 0.0  ;;  %v5496_v45 = vpack.c.bf16 %v2806_v38, %v2805_v37 }
 0x347   : > { %v2410_v9 = vadd.f32 %v7132_v53, %v2203_v8  ;;  %v2205_v10 = vpop.f32.mrb[15].mxu0  ;;  %2726 = vmatmul.mubr.f32.gmra.mrb[2].mxu1 %v7149_v61 }
 0x348   : > { %v2411_v11 = vadd.f32 %v7136_v55, %v2205_v10  ;;  %5482 = vmatpush1.bf16.msra.mxu1 %v5481_v46 }
 0x349   : > { %v2466_v14 = vmax.f32 %v2410_v9, 0.0  ;;  %5483 = vmatprep.subr.bf16.mxu1 %v6336_v56 }
 0x34a   : > { %v2467_v18 = vmax.f32 %v2411_v11, 0.0  ;;  %v2209_v20 = vpop.f32.mrb[16].mxu0 }
 0x34b   : > { %v7176_v21 = vmax.f32 %v2464_v13, %v2466_v14  ;;  %v2211_v22 = vpop.f32.mrb[17].mxu0  ;;  %v2412_v25 = vadd.f32 %v7132_v53, %v2209_v20  ;;  %v5499_v13 = vpack.c.bf16 %v2808_v54, %v2807_v51 }
 0x34c   : > { %v2522_v23 = vmax.f32 %v2465_v17, %v2467_v18  ;;  %5485 = vmatpush1.bf16.msra.mxu1 %v5484_v12  ;;  %v2413_v29 = vadd.f32 %v7136_v55, %v2211_v22  ;;  %v2810_v17 = vld [vmem:[#allocation9 + $0x98] sm:$0xff] }
 0x34d   : > { %v7179_v26 = vld [vmem:[#allocation2 + $0x28] sm:$0xff]  ;;  %5486 = vmatprep.subr.bf16.mxu1 %v6336_v56  ;;  %v2468_v62 = vmax.f32 %v2412_v25, 0.0  ;;  %v5502_v25 = vpack.c.bf16 %v2810_v17, %v2809_v16 }
 0x34e   : > { %2524 = vst.msk [vmem:[#allocation2 + $0x38] sm:$0xff] %vm2511_vm1, %v2522_v23  ;;  %v2215_v30 = vpop.f32.mrb[18].mxu0  ;;  %4878 = vmatprep.mubr.msk.f32.mxu1 %vm2511_vm1, %v7179_v26  ;;  %v2469_v4 = vmax.f32 %v2413_v29, 0.0 }
 0x34f   : > { %v2414_v57 = vadd.f32 %v7132_v53, %v2215_v30  ;;  %v2217_v58 = vpop.f32.mrb[19].mxu0  ;;  %2731 = vmatmul.mubr.f32.gmra.mrb[4].mxu1 %v7162_v43 }
 0x350   : > { %v2415_v59 = vadd.f32 %v7136_v55, %v2217_v58  ;;  %5488 = vmatpush1.bf16.msra.mxu1 %v5487_v24 }
 0x351   : > { %v2470_v63 = vmax.f32 %v2414_v57, 0.0  ;;  %5489 = vmatprep.subr.bf16.mxu1 %v6336_v56 }
 0x352   : > { %v2471_v5 = vmax.f32 %v2415_v59, 0.0  ;;  %v2221_v6 = vpop.f32.mrb[20].mxu0 }
 0x353   : > { %v7190_v31 = vmax.f32 %v2468_v62, %v2470_v63  ;;  %v2223_v32 = vpop.f32.mrb[21].mxu0  ;;  %v2416_v35 = vadd.f32 %v7132_v53, %v2221_v6 }
 0x354   : > { %v2526_v33 = vmax.f32 %v2469_v4, %v2471_v5  ;;  %5491 = vmatpush1.bf16.msra.mxu1 %v5490_v60  ;;  %v2417_v39 = vadd.f32 %v7136_v55, %v2223_v32 }
 0x355   : > { %v7193_v36 = vld [vmem:[#allocation2 + $0x38] sm:$0xff]  ;;  %5492 = vmatprep.subr.bf16.mxu1 %v6336_v56  ;;  %v2472_v46 = vmax.f32 %v2416_v35, 0.0 }
 0x356   : > { %2528 = vst.msk [vmem:[#allocation2 + $0x48] sm:$0xff] %vm2511_vm1, %v2526_v33  ;;  %v2227_v40 = vpop.f32.mrb[22].mxu0  ;;  %4879 = vmatprep.mubr.msk.f32.mxu1 %vm2511_vm1, %v7193_v36  ;;  %v2473_v7 = vmax.f32 %v2417_v39, 0.0 }
 0x357   : > { %v2418_v41 = vadd.f32 %v7132_v53, %v2227_v40  ;;  %v2229_v42 = vpop.f32.mrb[23].mxu0  ;;  %2736 = vmatmul.mubr.f32.gmra.mrb[6].mxu1 %v7176_v21 }
 0x358   : > { %v2419_v44 = vadd.f32 %v7136_v55, %v2229_v42  ;;  %5494 = vmatpush1.bf16.msra.mxu1 %v5493_v34 }
 0x359   : > { %v2474_v47 = vmax.f32 %v2418_v41, 0.0  ;;  %5495 = vmatprep.subr.bf16.mxu1 %v6336_v56 }
 0x35a   : > { %v2475_v8 = vmax.f32 %v2419_v44, 0.0  ;;  %v2233_v9 = vpop.f32.mrb[24].mxu0 }
 0x35b   : > { %v7204_v10 = vmax.f32 %v2472_v46, %v2474_v47  ;;  %v2235_v11 = vpop.f32.mrb[25].mxu0  ;;  %v2420_v14 = vadd.f32 %v7132_v53, %v2233_v9 }
 0x35c   : > { %v2530_v12 = vmax.f32 %v2473_v7, %v2475_v8  ;;  %5497 = vmatpush1.bf16.msra.mxu1 %v5496_v45  ;;  %v2421_v18 = vadd.f32 %v7136_v55, %v2235_v11 }
 0x35d   : > { %v7207_v15 = vld [vmem:[#allocation2 + $0x48] sm:$0xff]  ;;  %5498 = vmatprep.subr.bf16.mxu1 %v6336_v56  ;;  %v2476_v27 = vmax.f32 %v2420_v14, 0.0 }
 0x35e   : > { %2532 = vst.msk [vmem:[#allocation2 + $0x58] sm:$0xff] %vm2511_vm1, %v2530_v12  ;;  %v2239_v20 = vpop.f32.mrb[26].mxu0  ;;  %4880 = vmatprep.mubr.msk.f32.mxu1 %vm2511_vm1, %v7207_v15  ;;  %v2477_v29 = vmax.f32 %v2421_v18, 0.0 }
 0x35f   : > { %v2422_v22 = vadd.f32 %v7132_v53, %v2239_v20  ;;  %v2241_v23 = vpop.f32.mrb[27].mxu0  ;;  %2741 = vmatmul.mubr.f32.gmra.mrb[8].mxu1 %v7190_v31 }
 0x360   : > { %v2423_v24 = vadd.f32 %v7136_v55, %v2241_v23  ;;  %5500 = vmatpush1.bf16.msra.mxu1 %v5499_v13 }
 0x361   : > { %v2478_v28 = vmax.f32 %v2422_v22, 0.0  ;;  %5501 = vmatprep.subr.bf16.mxu1 %v6336_v56 }
 0x362   : > { %v2479_v30 = vmax.f32 %v2423_v24, 0.0  ;;  %v2245_v57 = vpop.f32.mrb[28].mxu0 }
 0x363   : > { %v7218_v58 = vmax.f32 %v2476_v27, %v2478_v28  ;;  %v2247_v59 = vpop.f32.mrb[29].mxu0  ;;  %v2424_v62 = vadd.f32 %v7132_v53, %v2245_v57 }
 0x364   : > { %v2534_v60 = vmax.f32 %v2477_v29, %v2479_v30  ;;  %5503 = vmatpush1.bf16.msra.mxu1 %v5502_v25  ;;  %v2425_v2 = vadd.f32 %v7136_v55, %v2247_v59 }
 0x365   : > { %v7221_v63 = vld [vmem:[#allocation2 + $0x58] sm:$0xff]  ;;  %2852 = vmatprep.subr.mxu1 %v6335_v0  ;;  %v2480_v33 = vmax.f32 %v2424_v62, 0.0 }
 0x366   : > { %2536 = vst.msk [vmem:[#allocation2 + $0x68] sm:$0xff] %vm2511_vm1, %v2534_v60  ;;  %v2251_v4 = vpop.f32.mrb[30].mxu0  ;;  %4881 = vmatprep.mubr.msk.f32.mxu1 %vm2511_vm1, %v7221_v63  ;;  %v2481_v35 = vmax.f32 %v2425_v2, 0.0 }
 0x367   : > { %v2426_v5 = vadd.f32 %v7132_v53, %v2251_v4  ;;  %v2253_v6 = vpop.f32.mrb[31].mxu0  ;;  %2746 = vmatmul.mubr.f32.gmra.mrb[10].mxu1 %v7204_v10 }
 0x368   : > { %v2427_v32 = vadd.f32 %v7136_v55, %v2253_v6  ;;  %2853 = vmatpush1.msra.mxu1 %v2811_v1 }
 0x369   : > { %v2482_v34 = vmax.f32 %v2426_v5, 0.0 }
 0x36a   : > { %v2483_v37 = vmax.f32 %v2427_v32, 0.0  ;;  %v2257_v38 = vpop.f32.mrb[32].mxu0 }
 0x36b   : > { %v7231_v39 = vmax.f32 %v2480_v33, %v2482_v34  ;;  %v2259_v40 = vpop.f32.mrb[33].mxu0  ;;  %v2428_v42 = vadd.f32 %v7132_v53, %v2257_v38 }
 0x36c   : > { %v2538_v41 = vmax.f32 %v2481_v35, %v2483_v37  ;;  %v2429_v45 = vadd.f32 %v7136_v55, %v2259_v40 }
 0x36d   : > { %v7234_v44 = vld [vmem:[#allocation2 + $0x68] sm:$0xff]  ;;  %v2484_v7 = vmax.f32 %v2428_v42, 0.0 }
 0x36e   : > { %2540 = vst.msk [vmem:[#allocation2 + $0x78] sm:$0xff] %vm2511_vm1, %v2538_v41  ;;  %v2263_v46 = vpop.f32.mrb[34].mxu0  ;;  %4882 = vmatprep.mubr.msk.f32.mxu1 %vm2511_vm1, %v7234_v44  ;;  %v2485_v9 = vmax.f32 %v2429_v45, 0.0 }
 0x36f   : > { %v2430_v47 = vadd.f32 %v7132_v53, %v2263_v46  ;;  %v2265_v51 = vpop.f32.mrb[35].mxu0  ;;  %2751 = vmatmul.mubr.f32.gmra.mrb[12].mxu1 %v7218_v58 }
 0x370   : > { %v2431_v54 = vadd.f32 %v7136_v55, %v2265_v51 }
 0x371   : > { %v2486_v8 = vmax.f32 %v2430_v47, 0.0 }
 0x372   : > { %v2487_v11 = vmax.f32 %v2431_v54, 0.0  ;;  %v2269_v12 = vpop.f32.mrb[36].mxu0 }
 0x373   : > { %v7243_v13 = vmax.f32 %v2484_v7, %v2486_v8  ;;  %v2271_v14 = vpop.f32.mrb[37].mxu0  ;;  %v2432_v17 = vadd.f32 %v7132_v53, %v2269_v12 }
 0x374   : > { %v2542_v16 = vmax.f32 %v2485_v9, %v2487_v11  ;;  %v2433_v20 = vadd.f32 %v7136_v55, %v2271_v14 }
 0x375   : > { %v7246_v18 = vld [vmem:[#allocation2 + $0x78] sm:$0xff]  ;;  %v2488_v27 = vmax.f32 %v2432_v17, 0.0 }
 0x376   : > { %2544 = vst.msk [vmem:[#allocation2 + $0x88] sm:$0xff] %vm2511_vm1, %v2542_v16  ;;  %v2275_v22 = vpop.f32.mrb[38].mxu0  ;;  %4883 = vmatprep.mubr.msk.f32.mxu1 %vm2511_vm1, %v7246_v18  ;;  %v2489_v29 = vmax.f32 %v2433_v20, 0.0 }
 0x377   : > { %v2434_v23 = vadd.f32 %v7132_v53, %v2275_v22  ;;  %v2277_v24 = vpop.f32.mrb[39].mxu0  ;;  %2756 = vmatmul.mubr.f32.gmra.mrb[14].mxu1 %v7231_v39 }
 0x378   : > { %v2435_v25 = vadd.f32 %v7136_v55, %v2277_v24 }
 0x379   : > { %v2490_v28 = vmax.f32 %v2434_v23, 0.0 }
 0x37a   : > { %v2491_v30 = vmax.f32 %v2435_v25, 0.0  ;;  %v2281_v57 = vpop.f32.mrb[40].mxu0 }
 0x37b   : > { %v7255_v59 = vmax.f32 %v2488_v27, %v2490_v28  ;;  %v2283_v60 = vpop.f32.mrb[41].mxu0  ;;  %v2436_v1 = vadd.f32 %v7132_v53, %v2281_v57 }
 0x37c   : > { %v2546_v62 = vmax.f32 %v2489_v29, %v2491_v30  ;;  %v2437_v4 = vadd.f32 %v7136_v55, %v2283_v60 }
 0x37d   : > { %v7258_v2 = vld [vmem:[#allocation2 + $0x88] sm:$0xff]  ;;  %v2492_v34 = vmax.f32 %v2436_v1, 0.0 }
 0x37e   : > { %2548 = vst.msk [vmem:[#allocation2 + $0x98] sm:$0xff] %vm2511_vm1, %v2546_v62  ;;  %v2287_v5 = vpop.f32.mrb[42].mxu0  ;;  %4884 = vmatprep.mubr.msk.f32.mxu1 %vm2511_vm1, %v7258_v2  ;;  %v2493_v37 = vmax.f32 %v2437_v4, 0.0 }
 0x37f   : > { %v2438_v6 = vadd.f32 %v7132_v53, %v2287_v5  ;;  %v2289_v32 = vpop.f32.mrb[43].mxu0  ;;  %2761 = vmatmul.mubr.f32.gmra.mrb[16].mxu1 %v7243_v13 }
 0x380   : > { %v2439_v33 = vadd.f32 %v7136_v55, %v2289_v32 }
 0x381   : > { %v2494_v35 = vmax.f32 %v2438_v6, 0.0 }
 0x382   : > { %v2495_v38 = vmax.f32 %v2439_v33, 0.0  ;;  %v2293_v40 = vpop.f32.mrb[44].mxu0 }
 0x383   : > { %v7267_v41 = vmax.f32 %v2492_v34, %v2494_v35  ;;  %v2295_v42 = vpop.f32.mrb[45].mxu0  ;;  %v2440_v46 = vadd.f32 %v7132_v53, %v2293_v40 }
 0x384   : > { %v2550_v45 = vmax.f32 %v2493_v37, %v2495_v38  ;;  %v2441_v51 = vadd.f32 %v7136_v55, %v2295_v42 }
 0x385   : > { %v7270_v47 = vld [vmem:[#allocation2 + $0x98] sm:$0xff]  ;;  %v2496_v11 = vmax.f32 %v2440_v46, 0.0 }
 0x386   : > { %2552 = vst.msk [vmem:[#allocation2 + $0xa8] sm:$0xff] %vm2511_vm1, %v2550_v45  ;;  %v2299_v54 = vpop.f32.mrb[46].mxu0  ;;  %4885 = vmatprep.mubr.msk.f32.mxu1 %vm2511_vm1, %v7270_v47  ;;  %v2497_v14 = vmax.f32 %v2441_v51, 0.0 }
 0x387   : > { %v2442_v7 = vadd.f32 %v7132_v53, %v2299_v54  ;;  %v2301_v8 = vpop.f32.mrb[47].mxu0  ;;  %2766 = vmatmul.mubr.f32.gmra.mrb[18].mxu1 %v7255_v59 }
 0x388   : > { %v2443_v9 = vadd.f32 %v7136_v55, %v2301_v8 }
 0x389   : > { %v2498_v12 = vmax.f32 %v2442_v7, 0.0 }
 0x38a   : > { %v2499_v16 = vmax.f32 %v2443_v9, 0.0  ;;  %v2305_v17 = vpop.f32.mrb[48].mxu0 }
 0x38b   : > { %v7279_v20 = vmax.f32 %v2496_v11, %v2498_v12  ;;  %v2307_v22 = vpop.f32.mrb[49].mxu0  ;;  %v2444_v24 = vadd.f32 %v7132_v53, %v2305_v17  ;;  %v4923_v17 = vld [vmem:[%s8370_s5 + $0x148] sm:$0xff] }
 0x38c   : > { %v2554_v23 = vmax.f32 %v2497_v14, %v2499_v16  ;;  %v2445_v27 = vadd.f32 %v7136_v55, %v2307_v22  ;;  %v4921_v16 = vld [vmem:[%s8370_s5 + $0x138] sm:$0xff] }
 0x38d   : > { %v7282_v25 = vld [vmem:[#allocation2 + $0xa8] sm:$0xff]  ;;  %v2500_v60 = vmax.f32 %v2444_v24, 0.0  ;;  %v5520_v22 = vpack.c.bf16 %v4923_v17, %v4921_v16  ;;  %v2969_v17 = vld [vmem:[%s8370_s5 + $0x40] sm:$0xff] }
 0x38e   : > { %2556 = vst.msk [vmem:[#allocation2 + $0xb8] sm:$0xff] %vm2511_vm1, %v2554_v23  ;;  %v2311_v28 = vpop.f32.mrb[50].mxu0  ;;  %4886 = vmatprep.mubr.msk.f32.mxu1 %vm2511_vm1, %v7282_v25  ;;  %v2501_v1 = vmax.f32 %v2445_v27, 0.0  ;;  %v4922_v23 = vld [vmem:[%s8370_s5 + $0x140] sm:$0xff]  ;;  %v4924_v27 = vld [vmem:[%s8370_s5 + $0x150] sm:$0xf] }
 0x38f   : > { %v2446_v29 = vadd.f32 %v7132_v53, %v2311_v28  ;;  %v2313_v30 = vpop.f32.mrb[51].mxu0  ;;  %2771 = vmatmul.mubr.f32.gmra.mrb[20].mxu1 %v7267_v41  ;;  %v2962_v28 = vld [vmem:[%s8370_s5 + $0x8] sm:$0xff] }
 0x390   : > { %v2447_v57 = vadd.f32 %v7136_v55, %v2313_v30 }
 0x391   : > { %v2502_v62 = vmax.f32 %v2446_v29, 0.0  ;;  %v2964_v29 = vld [vmem:[%s8370_s5 + $0x18] sm:$0xff] }
 0x392   : > { %v2503_v4 = vmax.f32 %v2447_v57, 0.0  ;;  %v2317_v5 = vpop.f32.mrb[52].mxu0  ;;  %v5524_v30 = vpack.c.bf16 %v2964_v29, %v2962_v28 }
 0x393   : > { %v7291_v6 = vmax.f32 %v2500_v60, %v2502_v62  ;;  %v2319_v32 = vpop.f32.mrb[53].mxu0  ;;  %v2448_v34 = vadd.f32 %v7132_v53, %v2317_v5 }
 0x394   : > { %v2558_v33 = vmax.f32 %v2501_v1, %v2503_v4  ;;  %v2449_v37 = vadd.f32 %v7136_v55, %v2319_v32 }
 0x395   : > { %v2588_v35 = vld [vmem:[#allocation2 + $0xb8] sm:$0xff]  ;;  %v2504_v46 = vmax.f32 %v2448_v34, 0.0 }
 0x396   : > { %2560 = vst.msk [vmem:[#allocation2 + $0xc8] sm:$0xff] %vm2511_vm1, %v2558_v33  ;;  %v2323_v38 = vpop.f32.mrb[54].mxu0  ;;  %4887 = vmatprep.mubr.msk.f32.mxu1 %vm2511_vm1, %v2588_v35  ;;  %v2505_v54 = vmax.f32 %v2449_v37, 0.0 }
 0x397   : > { %v2450_v40 = vadd.f32 %v7132_v53, %v2323_v38  ;;  %v2325_v42 = vpop.f32.mrb[55].mxu0  ;;  %2776 = vmatmul.mubr.f32.gmra.mrb[22].mxu1 %v7279_v20  ;;  %v4905_v53 = vld [vmem:[%s8370_s5 + $0xb8] sm:$0xff] }
 0x398   : > { %v2451_v45 = vadd.f32 %v7136_v55, %v2325_v42  ;;  %v4907_v55 = vld [vmem:[%s8370_s5 + $0xc8] sm:$0xff] }
 0x399   : > { %v2506_v51 = vmax.f32 %v2450_v40, 0.0 }
 0x39a   : > { %v2507_v7 = vmax.f32 %v2451_v45, 0.0 }
 0x39b   : > { %v2561_v8 = vmax.f32 %v2504_v46, %v2506_v51 }
 0x39c   : > { %v2562_v9 = vmax.f32 %v2505_v54, %v2507_v7 }
 0x39d   : > { %v2590_v11 = vld [vmem:[#allocation2 + $0xc8] sm:$0xff] }
 0x39e   : > { %2564 = vst.msk [vmem:[#allocation2 + $0xd8] sm:$0xff] %vm2511_vm1, %v2562_v9  ;;  %4888 = vmatprep.mubr.msk.f32.mxu1 %vm2511_vm1, %v2590_v11 }
 0x39f   : > { %2781 = vmatmul.mubr.f32.gmra.mrb[24].mxu1 %v7291_v6 }
 0x3a5   : > { %v2592_v12 = vld [vmem:[#allocation2 + $0xd8] sm:$0xff] }
 0x3a6   : > { %4889 = vmatprep.mubr.msk.f32.mxu1 %vm2511_vm1, %v2592_v12 }
 0x3a7   : > { %2786 = vmatmul.mubr.f32.gmra.mrb[26].mxu1 %v2561_v8 }
 0x3a8   : > { %4890 = vmatprep.mubr.msk.f32.mxu1 %vm2511_vm1, %v7152_v3  ;;  %v4906_v3 = vld [vmem:[%s8370_s5 + $0xc0] sm:$0xff] }
 0x3ab   : > { %2877 = vmatmul.mubr.f32.vlgmr.msra.gmra.mrb[28].mxu1 %v7142_v19  ;;  %v4904_v19 = vld [vmem:[%s8370_s5 + $0xb0] sm:$0xff] }
 0x3ac   : > { %4891 = vmatprep.mubr.msk.f32.mxu1 %vm2511_vm1, %v7165_v48  ;;  %v4909_v48 = vld [vmem:[%s8370_s5 + $0xd8] sm:$0xff] }
 0x3af   : > { %2882 = vmatmul.mubr.f32.gmra.mrb[30].mxu1 %v7149_v61  ;;  %v5504_v61 = vpack.c.bf16 %v4907_v55, %v4905_v53 }
 0x3b0   : > { %4892 = vmatprep.mubr.msk.f32.mxu1 %vm2511_vm1, %v7179_v26  ;;  %v4908_v26 = vld [vmem:[%s8370_s5 + $0xd0] sm:$0xff] }
 0x3b1   : > { %5505 = vmatprep.subr.bf16.mxu1 %v5504_v61 }
 0x3b3   : > { %2887 = vmatmul.mubr.f32.gmra.mrb[32].mxu1 %v7162_v43  ;;  %v5506_v43 = vpack.c.bf16 %v4906_v3, %v4904_v19 }
 0x3b4   : > { %4893 = vmatprep.mubr.msk.f32.mxu1 %vm2511_vm1, %v7193_v36  ;;  %v4910_v36 = vld [vmem:[%s8370_s5 + $0xe0] sm:$0xff] }
 0x3b5   : > { %5507 = vmatpush1.bf16.msra.mxu1 %v5506_v43 }
 0x3b7   : > { %2892 = vmatmul.mubr.f32.gmra.mrb[34].mxu1 %v7176_v21  ;;  %v4911_v21 = vld [vmem:[%s8370_s5 + $0xe8] sm:$0xff] }
 0x3b8   : > { %4894 = vmatprep.mubr.msk.f32.mxu1 %vm2511_vm1, %v7207_v15  ;;  %v4913_v15 = vld [vmem:[%s8370_s5 + $0xf8] sm:$0xff] }
 0x3bb   : > { %2897 = vmatmul.mubr.f32.gmra.mrb[36].mxu1 %v7190_v31  ;;  %v5508_v31 = vpack.c.bf16 %v4911_v21, %v4909_v48  ;;  %v2961_v21 = vld [vmem:[%s8370_s5] sm:$0xff] }
 0x3bc   : > { %4895 = vmatprep.mubr.msk.f32.mxu1 %vm2511_vm1, %v7221_v63  ;;  %v4912_v63 = vld [vmem:[%s8370_s5 + $0xf0] sm:$0xff] }
 0x3bd   : > { %5509 = vmatprep.subr.bf16.mxu1 %v5508_v31  ;;  %v2966_v31 = vld [vmem:[%s8370_s5 + $0x28] sm:$0xff] }
 0x3bf   : > { %2902 = vmatmul.mubr.f32.gmra.mrb[38].mxu1 %v7204_v10  ;;  %v5510_v10 = vpack.c.bf16 %v4910_v36, %v4908_v26  ;;  %v2963_v26 = vld [vmem:[%s8370_s5 + $0x10] sm:$0xff]  ;;  %v2968_v36 = vld [vmem:[%s8370_s5 + $0x38] sm:$0xff] }
 0x3c0   : > { %4896 = vmatprep.mubr.msk.f32.mxu1 %vm2511_vm1, %v7234_v44  ;;  %v4914_v44 = vld [vmem:[%s8370_s5 + $0x100] sm:$0xff] }
 0x3c1   : > { %5511 = vmatpush1.bf16.msra.mxu1 %v5510_v10 }
 0x3c3   : > { %2907 = vmatmul.mubr.f32.gmra.mrb[40].mxu1 %v7218_v58  ;;  %v4915_v58 = vld [vmem:[%s8370_s5 + $0x108] sm:$0xff] }
 0x3c4   : > { %4897 = vmatprep.mubr.msk.f32.mxu1 %vm2511_vm1, %v7246_v18  ;;  %v4917_v18 = vld [vmem:[%s8370_s5 + $0x118] sm:$0xff] }
 0x3c7   : > { %2912 = vmatmul.mubr.f32.gmra.mrb[42].mxu1 %v7231_v39  ;;  %v5512_v39 = vpack.c.bf16 %v4915_v58, %v4913_v15  ;;  %v5526_v15 = vpack.c.bf16 %v2963_v26, %v2961_v21  ;;  %v2981_v21 = vld [vmem:[%s8370_s5 + $0xa0] sm:$0xf] }
 0x3c8   : > { %4898 = vmatprep.mubr.msk.f32.mxu1 %vm2511_vm1, %v7258_v2 }
 0x3c9   : > { %5513 = vmatprep.subr.bf16.mxu1 %v5512_v39  ;;  %v5528_v39 = vpack.c.bf16 %v2968_v36, %v2966_v31 }
 0x3cb   : > { %2917 = vmatmul.mubr.f32.gmra.mrb[44].mxu1 %v7243_v13  ;;  %v5514_v13 = vpack.c.bf16 %v4914_v44, %v4912_v63  ;;  %v2965_v44 = vld [vmem:[%s8370_s5 + $0x20] sm:$0xff] }
 0x3cc   : > { %4899 = vmatprep.mubr.msk.f32.mxu1 %vm2511_vm1, %v7270_v47  ;;  %v4918_v47 = vld [vmem:[%s8370_s5 + $0x120] sm:$0xff] }
 0x3cd   : > { %5515 = vmatpush1.bf16.msra.mxu1 %v5514_v13  ;;  %v2967_v13 = vld [vmem:[%s8370_s5 + $0x30] sm:$0xff] }
 0x3cf   : > { %2922 = vmatmul.mubr.f32.gmra.mrb[46].mxu1 %v7255_v59  ;;  %v4919_v59 = vld [vmem:[%s8370_s5 + $0x128] sm:$0xff] }
 0x3d0   : > { %4900 = vmatprep.mubr.msk.f32.mxu1 %vm2511_vm1, %v7282_v25  ;;  %v5516_v2 = vpack.c.bf16 %v4919_v59, %v4917_v18  ;;  %v4925_v25 = vld [vmem:[%s8370_s5 + $0x158] sm:$0xf]  ;;  %v2970_v18 = vld [vmem:[%s8370_s5 + $0x48] sm:$0xff] }
 0x3d1   : > { %v2972_v59 = vld [vmem:[%s8370_s5 + $0x58] sm:$0xff] }
 0x3d2   : > { %5517 = vmatprep.subr.bf16.mxu1 %v5516_v2  ;;  %v5532_v16 = vpack.c.bf16 %v2972_v59, %v2970_v18 }
 0x3d3   : > { %2927 = vmatmul.mubr.f32.gmra.mrb[48].mxu1 %v7267_v41  ;;  %v4916_v41 = vld [vmem:[%s8370_s5 + $0x110] sm:$0xff] }
 0x3d4   : > { %4901 = vmatprep.mubr.msk.f32.mxu1 %vm2511_vm1, %v2588_v35  ;;  %v5518_v14 = vpack.c.bf16 %v4918_v47, %v4916_v41  ;;  %v5530_v41 = vpack.c.bf16 %v2967_v13, %v2965_v44 }
 0x3d6   : > { %5519 = vmatpush1.bf16.msra.mxu1 %v5518_v14 }
 0x3d7   : > { %2932 = vmatmul.mubr.f32.gmra.mrb[50].mxu1 %v7279_v20  ;;  %v4920_v20 = vld [vmem:[%s8370_s5 + $0x130] sm:$0xff]  ;;  %5521 = vmatprep.subr.bf16.mxu1 %v5520_v22  ;;  %v2974_v22 = vld [vmem:[%s8370_s5 + $0x68] sm:$0xff] }
 0x3d8   : > { %4902 = vmatprep.mubr.msk.f32.mxu1 %vm2511_vm1, %v2590_v11  ;;  %v5522_v24 = vpack.c.bf16 %v4922_v23, %v4920_v20  ;;  %v2971_v20 = vld [vmem:[%s8370_s5 + $0x50] sm:$0xff]  ;;  %v2976_v23 = vld [vmem:[%s8370_s5 + $0x78] sm:$0xff] }
 0x3d9   : > { %v5536_v29 = vpack.c.bf16 %v2976_v23, %v2974_v22 }
 0x3da   : > { %5523 = vmatpush1.bf16.msra.mxu1 %v5522_v24 }
 0x3db   : > { %2937 = vmatmul.mubr.f32.gmra.mrb[52].mxu1 %v7291_v6  ;;  %4926 = vmatprep.subr.msk.mxu1 %vm3043_vm2, %v4925_v25  ;;  %v5534_v25 = vpack.c.bf16 %v2971_v20, %v2969_v17  ;;  %v4959_v17 = vld [vmem:[%s8370_s5 + $0x188] sm:$0xff]  ;;  %v4961_v20 = vld [vmem:[%s8370_s5 + $0x198] sm:$0xff] }
 0x3dc   : > { %4903 = vmatprep.mubr.msk.f32.mxu1 %vm2511_vm1, %v2592_v12 }
 0x3de   : > { %4927 = vmatpush1.msk.msra.mxu1 %vm3043_vm2, %v4924_v27 }
 0x3df   : > { %2942 = vmatmul.mubr.f32.gmra.mrb[54].mxu1 %v2561_v8  ;;  %5525 = vmatprep.subr.bf16.mxu1 %v5524_v30  ;;  %v2973_v30 = vld [vmem:[%s8370_s5 + $0x60] sm:$0xff] }
 0x3e0   : > { %3114 = vmatprep.mubr.f32.mxu1 %v6335_v0 }
 0x412   : > { %v7417_v57 = vpop.f32.mrb[0].mxu1 }
 0x413   : > { %v2724_v60 = vpop.f32.mrb[1].mxu1 }
 0x414   : > { %v2975_v60 = vld [vmem:[%s8370_s5 + $0x70] sm:$0xff] }
 0x41a   : > { %v2727_v62 = vpop.f32.mrb[2].mxu1 }
 0x41b   : > { %v2729_v1 = vpop.f32.mrb[3].mxu1 }
 0x41c   : > { %v2980_v1 = vld [vmem:[%s8370_s5 + $0x98] sm:$0xff] }
 0x422   : > { %v2732_v4 = vpop.f32.mrb[4].mxu1 }
 0x423   : > { %v2734_v5 = vpop.f32.mrb[5].mxu1 }
 0x424   : > { %v5538_v5 = vpack.c.bf16 %v2975_v60, %v2973_v30  ;;  %v4963_v30 = vld [vmem:[%s8370_s5 + $0x1a8] sm:$0xff]  ;;  %v4965_v60 = vld [vmem:[%s8370_s5 + $0x1b8] sm:$0xff] }
 0x42a   : > { %v2737_v6 = vpop.f32.mrb[6].mxu1 }
 0x42b   : > { %v2739_v32 = vpop.f32.mrb[7].mxu1 }
 0x432   : > { %v7419_v33 = vpop.f32.mrb[8].mxu1 }
 0x433   : > { %v2744_v34 = vpop.f32.mrb[9].mxu1 }
 0x43a   : > { %v7421_v35 = vpop.f32.mrb[10].mxu1 }
 0x43b   : > { %v2749_v37 = vpop.f32.mrb[11].mxu1 }
 0x43c   : > { %v2977_v37 = vld [vmem:[%s8370_s5 + $0x80] sm:$0xff] }
 0x442   : > { %v7423_v38 = vpop.f32.mrb[12].mxu1 }
 0x443   : > { %v2754_v40 = vpop.f32.mrb[13].mxu1 }
 0x444   : > { %v2979_v40 = vld [vmem:[%s8370_s5 + $0x90] sm:$0xff] }
 0x44a   : > { %v7425_v42 = vpop.f32.mrb[14].mxu1 }
 0x44b   : > { %v2759_v45 = vpop.f32.mrb[15].mxu1 }
 0x452   : > { %v7427_v46 = vpop.f32.mrb[16].mxu1 }
 0x453   : > { %v2764_v51 = vpop.f32.mrb[17].mxu1 }
 0x45a   : > { %v7429_v54 = vpop.f32.mrb[18].mxu1 }
 0x45b   : > { %v2769_v7 = vpop.f32.mrb[19].mxu1 }
 0x462   : > { %v7431_v8 = vpop.f32.mrb[20].mxu1 }
 0x463   : > { %v2774_v9 = vpop.f32.mrb[21].mxu1 }
 0x464   : > { %v2982_v9 = vld [vmem:[%s8370_s5 + $0xa8] sm:$0xf] }
 0x46a   : > { %v7433_v11 = vpop.f32.mrb[22].mxu1 }
 0x46b   : > { %v2779_v12 = vpop.f32.mrb[23].mxu1 }
 0x46c   : > { %v4955_v12 = vld [vmem:[%s8370_s5 + $0x168] sm:$0xff] }
 0x472   : > { %v7435_v53 = vpop.f32.mrb[24].mxu1 }
 0x473   : > { %v2784_v55 = vpop.f32.mrb[25].mxu1 }
 0x474   : > { %v4957_v55 = vld [vmem:[%s8370_s5 + $0x178] sm:$0xff] }
 0x475   : > { %v5544_v26 = vpack.c.bf16 %v4957_v55, %v4955_v12  ;;  %v4975_v55 = vld [vmem:[%s8370_s5 + $0x208] sm:$0xf] }
 0x47a   : > { %v7437_v19 = vpop.f32.mrb[26].mxu1 }
 0x47b   : > { %v2789_v61 = vpop.f32.mrb[27].mxu1 }
 0x47e   : > { %v7439_v3 = vpop.f32.mrb[28].mxu1 }
 0x47f   : > { %v2947_v43 = vmax.f32 %v7417_v57, %v7439_v3  ;;  %v2880_v48 = vpop.f32.mrb[29].mxu1  ;;  %v4967_v57 = vld [vmem:[%s8370_s5 + $0x1c8] sm:$0xff]  ;;  %v4969_v3 = vld [vmem:[%s8370_s5 + $0x1d8] sm:$0xff] }
 0x482   : > { %v2883_v10 = vpop.f32.mrb[30].mxu1 }
 0x483   : > { %v7455_v58 = vmax.f32 %v2727_v62, %v2883_v10  ;;  %v2885_v63 = vpop.f32.mrb[31].mxu1  ;;  %v2978_v62 = vld [vmem:[%s8370_s5 + $0x88] sm:$0xff] }
 0x484   : > { %v5540_v34 = vpack.c.bf16 %v2980_v1, %v2978_v62  ;;  %v5552_v1 = vpack.c.bf16 %v4965_v60, %v4963_v30 }
 0x485   : > { %4928 = vmatmul.mubr.msk.f32.vlgmr.msra.gmra.mrb[56].mxu1 %vm3006_vm3, %v7455_v58 }
 0x486   : > { %v2888_v2 = vpop.f32.mrb[32].mxu1  ;;  %5527 = vmatpush1.bf16.msra.mxu1 %v5526_v15  ;;  %3120 = vmatprep.mubr.f32.mxu1 %v6335_v0 }
 0x487   : > { %v7472_v47 = vmax.f32 %v2732_v4, %v2888_v2  ;;  %v2890_v14 = vpop.f32.mrb[33].mxu1  ;;  %5529 = vmatprep.subr.bf16.mxu1 %v5528_v39 }
 0x489   : > { %4929 = vmatmul.mubr.msk.f32.gmra.mrb[58].mxu1 %vm3006_vm3, %v7472_v47 }
 0x48a   : > { %v2893_v24 = vpop.f32.mrb[34].mxu1  ;;  %3126 = vmatprep.mubr.f32.mxu1 %v6335_v0  ;;  %5531 = vmatpush1.bf16.msra.mxu1 %v5530_v41 }
 0x48b   : > { %v7489_v27 = vmax.f32 %v2737_v6, %v2893_v24  ;;  %v2895_v28 = vpop.f32.mrb[35].mxu1  ;;  %5533 = vmatprep.subr.bf16.mxu1 %v5532_v16  ;;  %v4954_v16 = vld [vmem:[%s8370_s5 + $0x160] sm:$0xff] }
 0x48c   : > { %v4958_v28 = vld [vmem:[%s8370_s5 + $0x180] sm:$0xff] }
 0x48d   : > { %4930 = vmatmul.mubr.msk.f32.gmra.mrb[60].mxu1 %vm3006_vm3, %v7489_v27 }
 0x48e   : > { %v2898_v4 = vpop.f32.mrb[36].mxu1  ;;  %3132 = vmatprep.mubr.f32.mxu1 %v6335_v0  ;;  %5535 = vmatpush1.bf16.msra.mxu1 %v5534_v25  ;;  %v5548_v25 = vpack.c.bf16 %v4961_v20, %v4959_v17  ;;  %v3643_v20 = vld [vmem:[%s8372_s7 + $0xa0] sm:$0xff] }
 0x48f   : > { %v7507_v6 = vmax.f32 %v7419_v33, %v2898_v4  ;;  %v2900_v32 = vpop.f32.mrb[37].mxu1  ;;  %5537 = vmatprep.subr.bf16.mxu1 %v5536_v29  ;;  %v5542_v33 = vpack.c.bf16 %v2979_v40, %v2977_v37  ;;  %v4960_v29 = vld [vmem:[%s8370_s5 + $0x190] sm:$0xff]  ;;  %v4962_v4 = vld [vmem:[%s8370_s5 + $0x1a0] sm:$0xff]  ;;  %v4971_v40 = vld [vmem:[%s8370_s5 + $0x1e8] sm:$0xff] }
 0x490   : > { %v5550_v62 = vpack.c.bf16 %v4960_v29, %v4958_v28  ;;  %v5556_v32 = vpack.c.bf16 %v4969_v3, %v4967_v57  ;;  %v4968_v37 = vld [vmem:[%s8370_s5 + $0x1d0] sm:$0xff]  ;;  %v3526_v28 = vld [vmem:[%s8371_s6] sm:$0x3] }
 0x491   : > { %4931 = vmatmul.mubr.msk.f32.gmra.mrb[62].mxu1 %vm3006_vm3, %v7507_v6  ;;  %v7811_v29 = vrot.slane %v3526_v28, %v2388_v50  ;;  %v7815_v60 = vrot.slane %v3526_v28, %v2392_v52 }
 0x492   : > { %v2903_v45 = vpop.f32.mrb[38].mxu1  ;;  %3138 = vmatprep.mubr.f32.mxu1 %v6335_v0  ;;  %5539 = vmatpush1.bf16.msra.mxu1 %v5538_v5  ;;  %v4964_v5 = vld [vmem:[%s8370_s5 + $0x1b0] sm:$0xff] }
 0x493   : > { %v7519_v51 = vmax.f32 %v7421_v35, %v2903_v45  ;;  %v2905_v7 = vpop.f32.mrb[39].mxu1  ;;  %5541 = vmatprep.subr.bf16.mxu1 %v5540_v34  ;;  %v4966_v34 = vld [vmem:[%s8370_s5 + $0x1c0] sm:$0xff] }
 0x494   : > { %v5558_v45 = vpack.c.bf16 %v4968_v37, %v4966_v34  ;;  %v4970_v7 = vld [vmem:[%s8370_s5 + $0x1e0] sm:$0xff] }
 0x495   : > { %4932 = vmatmul.mubr.msk.f32.gmra.mrb[64].mxu1 %vm3006_vm3, %v7519_v51 }
 0x496   : > { %v2908_v61 = vpop.f32.mrb[40].mxu1  ;;  %3144 = vmatprep.mubr.f32.mxu1 %v6335_v0  ;;  %5543 = vmatpush1.bf16.msra.mxu1 %v5542_v33 }
 0x497   : > { %v7534_v35 = vmax.f32 %v7423_v38, %v2908_v61  ;;  %v2910_v48 = vpop.f32.mrb[41].mxu1  ;;  %4940 = vmatprep.subr.msk.mxu1 %vm3043_vm2, %v2982_v9  ;;  %v4972_v9 = vld [vmem:[%s8370_s5 + $0x1f0] sm:$0xff]  ;;  %v4974_v61 = vld [vmem:[%s8370_s5 + $0x200] sm:$0xf] }
 0x498   : > { %v5562_v12 = vpack.c.bf16 %v4972_v9, %v4970_v7  ;;  %v3623_v48 = vld [vmem:[%s8372_s7] sm:$0xff] }
 0x499   : > { %4933 = vmatmul.mubr.msk.f32.gmra.mrb[66].mxu1 %vm3006_vm3, %v7534_v35 }
 0x49a   : > { %v2913_v31 = vpop.f32.mrb[42].mxu1  ;;  %3150 = vmatprep.mubr.f32.mxu1 %v6335_v0  ;;  %4941 = vmatpush1.msk.msra.mxu1 %vm3043_vm2, %v2981_v21  ;;  %v3624_v21 = vld [vmem:[%s8372_s7 + $0x8] sm:$0xff] }
 0x49b   : > { %v7545_v36 = vmax.f32 %v7425_v42, %v2913_v31  ;;  %v2915_v38 = vpop.f32.mrb[43].mxu1  ;;  %5545 = vmatprep.subr.bf16.mxu1 %v5544_v26  ;;  %v5565_v26 = vpack.c.bf16 %v3624_v21, %v3623_v48  ;;  %v3625_v31 = vld [vmem:[%s8372_s7 + $0x10] sm:$0xff] }
 0x49c   : > { %v3626_v38 = vld [vmem:[%s8372_s7 + $0x18] sm:$0xff]  ;;  %v3760_v21 = vld [vmem:[#allocation10] sm:$0xff] }
 0x49d   : > { %4934 = vmatmul.mubr.msk.f32.gmra.mrb[68].mxu1 %vm3006_vm3, %v7545_v36 }
 0x49e   : > { %v2918_v10 = vpop.f32.mrb[44].mxu1  ;;  %3156 = vmatprep.mubr.f32.mxu1 %v6335_v0 }
 0x49f   : > { %v7551_v15 = vmax.f32 %v7427_v46, %v2918_v10  ;;  %v2920_v63 = vpop.f32.mrb[45].mxu1  ;;  %v5568_v10 = vpack.c.bf16 %v3626_v38, %v3625_v31 }
 0x4a0   : > { %v3627_v63 = vld [vmem:[%s8372_s7 + $0x20] sm:$0xff] }
 0x4a1   : > { %4935 = vmatmul.mubr.msk.f32.gmra.mrb[70].mxu1 %vm3006_vm3, %v7551_v15 }
 0x4a2   : > { %v2923_v39 = vpop.f32.mrb[46].mxu1  ;;  %3162 = vmatprep.mubr.f32.mxu1 %v6335_v0 }
 0x4a3   : > { %v7557_v42 = vmax.f32 %v7429_v54, %v2923_v39  ;;  %v2925_v44 = vpop.f32.mrb[47].mxu1  ;;  %v3628_v39 = vld [vmem:[%s8372_s7 + $0x28] sm:$0xff] }
 0x4a4   : > { %v3629_v44 = vld [vmem:[%s8372_s7 + $0x30] sm:$0xff] }
 0x4a5   : > { %4936 = vmatmul.mubr.msk.f32.gmra.mrb[72].mxu1 %vm3006_vm3, %v7557_v42 }
 0x4a6   : > { %v2928_v13 = vpop.f32.mrb[48].mxu1  ;;  %3168 = vmatprep.mubr.f32.mxu1 %v6335_v0 }
 0x4a7   : > { %v7563_v46 = vmax.f32 %v7431_v8, %v2928_v13  ;;  %v2930_v18 = vpop.f32.mrb[49].mxu1  ;;  %v3630_v13 = vld [vmem:[%s8372_s7 + $0x38] sm:$0xff] }
 0x4a8   : > { %v3631_v18 = vld [vmem:[%s8372_s7 + $0x40] sm:$0xff] }
 0x4a9   : > { %4937 = vmatmul.mubr.msk.f32.gmra.mrb[74].mxu1 %vm3006_vm3, %v7563_v46 }
 0x4aa   : > { %v2933_v59 = vpop.f32.mrb[50].mxu1  ;;  %3174 = vmatprep.mubr.f32.mxu1 %v6335_v0 }
 0x4ab   : > { %v7569_v54 = vmax.f32 %v7433_v11, %v2933_v59  ;;  %v2935_v2 = vpop.f32.mrb[51].mxu1  ;;  %v4956_v11 = vld [vmem:[%s8370_s5 + $0x170] sm:$0xff]  ;;  %v3632_v59 = vld [vmem:[%s8372_s7 + $0x48] sm:$0xff] }
 0x4ac   : > { %v5546_v22 = vpack.c.bf16 %v4956_v11, %v4954_v16  ;;  %v3633_v2 = vld [vmem:[%s8372_s7 + $0x50] sm:$0xff]  ;;  %v3636_v16 = vld [vmem:[%s8372_s7 + $0x68] sm:$0xff]  ;;  %v3642_v11 = vld [vmem:[%s8372_s7 + $0x98] sm:$0xff] }
 0x4ad   : > { %4938 = vmatmul.mubr.msk.f32.gmra.mrb[76].mxu1 %vm3006_vm3, %v7569_v54 }
 0x4ae   : > { %v2938_v41 = vpop.f32.mrb[52].mxu1  ;;  %3180 = vmatprep.mubr.f32.mxu1 %v6335_v0 }
 0x4af   : > { %v7575_v8 = vmax.f32 %v7435_v53, %v2938_v41  ;;  %v2940_v14 = vpop.f32.mrb[53].mxu1  ;;  %v3634_v41 = vld [vmem:[%s8372_s7 + $0x58] sm:$0xff] }
 0x4b0   : > { %v3635_v14 = vld [vmem:[%s8372_s7 + $0x60] sm:$0xff] }
 0x4b1   : > { %4939 = vmatmul.mubr.msk.f32.gmra.mrb[78].mxu1 %vm3006_vm3, %v7575_v8 }
 0x4b2   : > { %v7591_v53 = vpop.f32.mrb[54].mxu1  ;;  %3260 = vmatprep.mubr.f32.mxu1 %v6335_v0 }
 0x4b3   : > { %v2960_v23 = vmax.f32 %v7437_v19, %v7591_v53  ;;  %v2945_v24 = vpop.f32.mrb[55].mxu1  ;;  %v3640_v19 = vld [vmem:[%s8372_s7 + $0x88] sm:$0xff] }
 0x4b4   : > { %v3644_v53 = vld [vmem:[%s8372_s7 + $0xa8] sm:$0xff]  ;;  %v3646_v24 = vld [vmem:[%s8372_s7 + $0xb8] sm:$0xff] }
 0x4b5   : > { %4942 = vmatmul.mubr.msk.f32.vlgmr.msra.gmra.mrb[56].mxu1 %vm3006_vm3, %v2947_v43  ;;  %v5554_v43 = vpack.c.bf16 %v4964_v5, %v4962_v4 }
 0x4b6   : > { %5547 = vmatpush1.bf16.msra.mxu1 %v5546_v22  ;;  %3266 = vmatprep.mubr.f32.mxu1 %v6335_v0  ;;  %v5595_v22 = vpack.c.bf16 %v3644_v53, %v3643_v20 }
 0x4b7   : > { %5549 = vmatprep.subr.bf16.mxu1 %v5548_v25 }
 0x4b9   : > { %4943 = vmatmul.mubr.msk.f32.gmra.mrb[58].mxu1 %vm3006_vm3, %v7455_v58  ;;  %v4973_v58 = vld [vmem:[%s8370_s5 + $0x1f8] sm:$0xff] }
 0x4ba   : > { %3272 = vmatprep.mubr.f32.mxu1 %v6335_v0  ;;  %5551 = vmatpush1.bf16.msra.mxu1 %v5550_v62  ;;  %v5560_v33 = vpack.c.bf16 %v4973_v58, %v4971_v40 }
 0x4bb   : > { %5553 = vmatprep.subr.bf16.mxu1 %v5552_v1 }
 0x4bd   : > { %4944 = vmatmul.mubr.msk.f32.gmra.mrb[60].mxu1 %vm3006_vm3, %v7472_v47 }
 0x4be   : > { %3278 = vmatprep.mubr.f32.mxu1 %v6335_v0  ;;  %5555 = vmatpush1.bf16.msra.mxu1 %v5554_v43 }
 0x4bf   : > { %5557 = vmatprep.subr.bf16.mxu1 %v5556_v32 }
 0x4c1   : > { %4945 = vmatmul.mubr.msk.f32.gmra.mrb[62].mxu1 %vm3006_vm3, %v7489_v27 }
 0x4c2   : > { %3284 = vmatprep.mubr.f32.mxu1 %v6335_v0  ;;  %5559 = vmatpush1.bf16.msra.mxu1 %v5558_v45 }
 0x4c3   : > { %5561 = vmatprep.subr.bf16.mxu1 %v5560_v33 }
 0x4c5   : > { %4946 = vmatmul.mubr.msk.f32.gmra.mrb[64].mxu1 %vm3006_vm3, %v7507_v6 }
 0x4c6   : > { %3290 = vmatprep.mubr.f32.mxu1 %v6335_v0  ;;  %5563 = vmatpush1.bf16.msra.mxu1 %v5562_v12 }
 0x4c7   : > { %4976 = vmatprep.subr.msk.mxu1 %vm3043_vm2, %v4975_v55 }
 0x4c9   : > { %4947 = vmatmul.mubr.msk.f32.gmra.mrb[66].mxu1 %vm3006_vm3, %v7519_v51 }
 0x4ca   : > { %3296 = vmatprep.mubr.f32.mxu1 %v6335_v0  ;;  %4977 = vmatpush1.msk.msra.mxu1 %vm3043_vm2, %v4974_v61 }
 0x4cb   : > { %5564 = vmatprep.subr.bf16.mxu1 %v6336_v56 }
 0x4cd   : > { %4948 = vmatmul.mubr.msk.f32.gmra.mrb[68].mxu1 %vm3006_vm3, %v7534_v35 }
 0x4ce   : > { %3302 = vmatprep.mubr.f32.mxu1 %v6335_v0 }
 0x4d1   : > { %4949 = vmatmul.mubr.msk.f32.gmra.mrb[70].mxu1 %vm3006_vm3, %v7545_v36 }
 0x4d2   : > { %3308 = vmatprep.mubr.f32.mxu1 %v6335_v0 }
 0x4d5   : > { %4950 = vmatmul.mubr.msk.f32.gmra.mrb[72].mxu1 %vm3006_vm3, %v7551_v15 }
 0x4d6   : > { %3314 = vmatprep.mubr.f32.mxu1 %v6335_v0 }
 0x4d9   : > { %4951 = vmatmul.mubr.msk.f32.gmra.mrb[74].mxu1 %vm3006_vm3, %v7557_v42 }
 0x4da   : > { %3320 = vmatprep.mubr.f32.mxu1 %v6335_v0 }
 0x4dd   : > { %4952 = vmatmul.mubr.msk.f32.gmra.mrb[76].mxu1 %vm3006_vm3, %v7563_v46 }
 0x4de   : > { %3326 = vmatprep.mubr.f32.mxu1 %v6335_v0 }
 0x4e1   : > { %4953 = vmatmul.mubr.msk.f32.gmra.mrb[78].mxu1 %vm3006_vm3, %v7569_v54 }
 0x4e2   : > { %3429 = vmatprep.mubr.f32.mxu1 %v6335_v0 }
 0x4e5   : > { %4978 = vmatmul.mubr.msk.f32.vlgmr.msra.gmra.mrb[56].mxu1 %vm3006_vm3, %v7472_v47  ;;  %v5571_v47 = vpack.c.bf16 %v3628_v39, %v3627_v63 }
 0x4e6   : > { %3435 = vmatprep.mubr.f32.mxu1 %v6335_v0  ;;  %5566 = vmatpush1.bf16.msra.mxu1 %v5565_v26  ;;  %v3761_v26 = vld [vmem:[#allocation10 + $0x8] sm:$0xff] }
 0x4e7   : > { %5567 = vmatprep.subr.bf16.mxu1 %v6336_v56 }
 0x4e9   : > { %4979 = vmatmul.mubr.msk.f32.gmra.mrb[58].mxu1 %vm3006_vm3, %v7489_v27  ;;  %v5574_v27 = vpack.c.bf16 %v3630_v13, %v3629_v44  ;;  %v5601_v44 = vpack.c.bf16 %v3761_v26, %v3760_v21 }
 0x4ea   : > { %3441 = vmatprep.mubr.f32.mxu1 %v6335_v0  ;;  %5569 = vmatpush1.bf16.msra.mxu1 %v5568_v10 }
 0x4eb   : > { %5570 = vmatprep.subr.bf16.mxu1 %v6336_v56 }
 0x4ed   : > { %4980 = vmatmul.mubr.msk.f32.gmra.mrb[60].mxu1 %vm3006_vm3, %v7507_v6  ;;  %v5577_v6 = vpack.c.bf16 %v3632_v59, %v3631_v18  ;;  %v3762_v18 = vld [vmem:[#allocation10 + $0x10] sm:$0xff]  ;;  %v3763_v59 = vld [vmem:[#allocation10 + $0x18] sm:$0xff] }
 0x4ee   : > { %3447 = vmatprep.mubr.f32.mxu1 %v6335_v0  ;;  %5572 = vmatpush1.bf16.msra.mxu1 %v5571_v47 }
 0x4ef   : > { %5573 = vmatprep.subr.bf16.mxu1 %v6336_v56 }
 0x4f1   : > { %4981 = vmatmul.mubr.msk.f32.gmra.mrb[62].mxu1 %vm3006_vm3, %v7519_v51  ;;  %v5580_v51 = vpack.c.bf16 %v3634_v41, %v3633_v2 }
 0x4f2   : > { %3453 = vmatprep.mubr.f32.mxu1 %v6335_v0  ;;  %5575 = vmatpush1.bf16.msra.mxu1 %v5574_v27 }
 0x4f3   : > { %5576 = vmatprep.subr.bf16.mxu1 %v6336_v56 }
 0x4f5   : > { %4982 = vmatmul.mubr.msk.f32.gmra.mrb[64].mxu1 %vm3006_vm3, %v7534_v35  ;;  %v5583_v35 = vpack.c.bf16 %v3636_v16, %v3635_v14  ;;  %v5604_v16 = vpack.c.bf16 %v3763_v59, %v3762_v18 }
 0x4f6   : > { %3459 = vmatprep.mubr.f32.mxu1 %v6335_v0  ;;  %5578 = vmatpush1.bf16.msra.mxu1 %v5577_v6 }
 0x4f7   : > { %5579 = vmatprep.subr.bf16.mxu1 %v6336_v56 }
 0x4f9   : > { %4983 = vmatmul.mubr.msk.f32.gmra.mrb[66].mxu1 %vm3006_vm3, %v7545_v36  ;;  %v3637_v36 = vld [vmem:[%s8372_s7 + $0x70] sm:$0xff] }
 0x4fa   : > { %3465 = vmatprep.mubr.f32.mxu1 %v6335_v0  ;;  %5581 = vmatpush1.bf16.msra.mxu1 %v5580_v51 }
 0x4fb   : > { %5582 = vmatprep.subr.bf16.mxu1 %v6336_v56 }
 0x4fd   : > { %4984 = vmatmul.mubr.msk.f32.gmra.mrb[68].mxu1 %vm3006_vm3, %v7551_v15  ;;  %v3638_v15 = vld [vmem:[%s8372_s7 + $0x78] sm:$0xff] }
 0x4fe   : > { %3471 = vmatprep.mubr.f32.mxu1 %v6335_v0  ;;  %5584 = vmatpush1.bf16.msra.mxu1 %v5583_v35 }
 0x4ff   : > { %5585 = vmatprep.subr.bf16.mxu1 %v6336_v56 }
 0x501   : > { %4985 = vmatmul.mubr.msk.f32.gmra.mrb[70].mxu1 %vm3006_vm3, %v7557_v42  ;;  %v5586_v42 = vpack.c.bf16 %v3638_v15, %v3637_v36  ;;  %v3764_v15 = vld [vmem:[#allocation10 + $0x20] sm:$0xff] }
 0x502   : > { %3477 = vmatprep.mubr.f32.mxu1 %v6335_v0 }
 0x503   : > { %5587 = vmatpush1.bf16.msra.mxu1 %v5586_v42  ;;  %v3765_v42 = vld [vmem:[#allocation10 + $0x28] sm:$0xff] }
 0x504   : > { %5588 = vmatprep.subr.bf16.mxu1 %v6336_v56  ;;  %v5607_v20 = vpack.c.bf16 %v3765_v42, %v3764_v15 }
 0x505   : > { %4986 = vmatmul.mubr.msk.f32.gmra.mrb[72].mxu1 %vm3006_vm3, %v7563_v46  ;;  %v3639_v46 = vld [vmem:[%s8372_s7 + $0x80] sm:$0xff] }
 0x506   : > { %3483 = vmatprep.mubr.f32.mxu1 %v6335_v0 }
 0x509   : > { %4987 = vmatmul.mubr.msk.f32.gmra.mrb[74].mxu1 %vm3006_vm3, %v7569_v54  ;;  %v5589_v54 = vpack.c.bf16 %v3640_v19, %v3639_v46 }
 0x50a   : > { %3489 = vmatprep.mubr.f32.mxu1 %v6335_v0 }
 0x50b   : > { %5590 = vmatpush1.bf16.msra.mxu1 %v5589_v54 }
 0x50c   : > { %5591 = vmatprep.subr.bf16.mxu1 %v6336_v56 }
 0x50d   : > { %4988 = vmatmul.mubr.msk.f32.gmra.mrb[76].mxu1 %vm3006_vm3, %v7575_v8  ;;  %v3641_v8 = vld [vmem:[%s8372_s7 + $0x90] sm:$0xff] }
 0x50e   : > { %3495 = vmatprep.mubr.f32.mxu1 %v6335_v0  ;;  %v5592_v17 = vpack.c.bf16 %v3642_v11, %v3641_v8 }
 0x510   : > { %5593 = vmatpush1.bf16.msra.mxu1 %v5592_v17 }
 0x511   : > { %4989 = vmatmul.mubr.msk.f32.gmra.mrb[78].mxu1 %vm3006_vm3, %v2960_v23  ;;  %5594 = vmatprep.subr.bf16.mxu1 %v6336_v56  ;;  %v3645_v23 = vld [vmem:[%s8372_s7 + $0xb0] sm:$0xff] }
 0x512   : > { %v5598_v25 = vpack.c.bf16 %v3646_v24, %v3645_v23  ;;  %v3766_v23 = vld [vmem:[#allocation10 + $0x30] sm:$0xff]  ;;  %v3767_v24 = vld [vmem:[#allocation10 + $0x38] sm:$0xff] }
 0x514   : > { %5596 = vmatpush1.bf16.msra.mxu1 %v5595_v22 }
 0x515   : > { %5597 = vmatprep.subr.bf16.mxu1 %v6336_v56 }
 0x518   : > { %5599 = vmatpush1.bf16.msra.mxu1 %v5598_v25 }
 0x519   : > { %5600 = vmatprep.subr.bf16.mxu1 %v6336_v56 }
 0x5b8   : > { %v3431_v30 = vpop.f32.mrb[56].mxu1 }
 0x5b9   : > { %v3433_v62 = vpop.f32.mrb[57].mxu1  ;;  %v3538_v1 = vadd.f32 %v7811_v29, %v3431_v30 }
 0x5ba   : > { %v3539_v4 = vadd.f32 %v7815_v60, %v3433_v62 }
 0x5bb   : > { %v3562_v32 = vmax.f32 %v3538_v1, 0.0 }
 0x5bc   : > { %v3437_v5 = vpop.f32.mrb[58].mxu1  ;;  %v3563_v50 = vmax.f32 %v3539_v4, 0.0  ;;  %v5610_v4 = vpack.c.bf16 %v3767_v24, %v3766_v23 }
 0x5bd   : > { %v3540_v57 = vadd.f32 %v7811_v29, %v3437_v5  ;;  %v3439_v3 = vpop.f32.mrb[59].mxu1 }
 0x5be   : > { %v3541_v43 = vadd.f32 %v7815_v60, %v3439_v3  ;;  %v3768_v3 = vld [vmem:[#allocation10 + $0x40] sm:$0xff] }
 0x5bf   : > { %v3564_v34 = vmax.f32 %v3540_v57, 0.0 }
 0x5c0   : > { %v3565_v37 = vmax.f32 %v3541_v43, 0.0  ;;  %v3443_v40 = vpop.f32.mrb[60].mxu1  ;;  %v3769_v43 = vld [vmem:[#allocation10 + $0x48] sm:$0xff] }
 0x5c1   : > { %v7821_v58 = vmax.f32 %v3562_v32, %v3564_v34  ;;  %v3445_v49 = vpop.f32.mrb[61].mxu1  ;;  %v3542_v45 = vadd.f32 %v7811_v29, %v3443_v40 }
 0x5c2   : > { %v3587_v52 = vmax.f32 %v3563_v50, %v3565_v37  ;;  %v3543_v33 = vadd.f32 %v7815_v60, %v3445_v49 }
 0x5c3   : > { %v3566_v61 = vmax.f32 %v3542_v45, 0.0 }
 0x5c4   : > { %3590 = vst.msk [vmem:[#allocation3 + $0x8] sm:$0xff] %vm3589_vm4, %v3587_v52  ;;  %v3449_v7 = vpop.f32.mrb[62].mxu1  ;;  %v3567_v31 = vmax.f32 %v3543_v33, 0.0  ;;  %v5613_v52 = vpack.c.bf16 %v3769_v43, %v3768_v3  ;;  %v3782_v3 = vld [vmem:[#allocation10 + $0xb0] sm:$0xff]  ;;  %v3783_v43 = vld [vmem:[#allocation10 + $0xb8] sm:$0xff] }
 0x5c5   : > { %v3544_v9 = vadd.f32 %v7811_v29, %v3449_v7  ;;  %v3451_v12 = vpop.f32.mrb[63].mxu1  ;;  %v3770_v7 = vld [vmem:[#allocation10 + $0x50] sm:$0xff] }
 0x5c6   : > { %v3545_v55 = vadd.f32 %v7815_v60, %v3451_v12 }
 0x5c7   : > { %v3568_v48 = vmax.f32 %v3544_v9, 0.0  ;;  %v3771_v9 = vld [vmem:[#allocation10 + $0x58] sm:$0xff] }
 0x5c8   : > { %v3569_v38 = vmax.f32 %v3545_v55, 0.0  ;;  %v3455_v10 = vpop.f32.mrb[64].mxu1  ;;  %v5616_v26 = vpack.c.bf16 %v3771_v9, %v3770_v7  ;;  %v5011_v7 = vld [vmem:[%s8374_s9 + $0xa8] sm:$0xff] }
 0x5c9   : > { %v7828_v63 = vmax.f32 %v3566_v61, %v3568_v48  ;;  %v3457_v39 = vpop.f32.mrb[65].mxu1  ;;  %v3546_v13 = vadd.f32 %v7811_v29, %v3455_v10  ;;  %v3772_v10 = vld [vmem:[#allocation10 + $0x60] sm:$0xff] }
 0x5ca   : > { %v3592_v47 = vmax.f32 %v3567_v31, %v3569_v38  ;;  %v3547_v6 = vadd.f32 %v7815_v60, %v3457_v39  ;;  %v3773_v39 = vld [vmem:[#allocation10 + $0x68] sm:$0xff] }
 0x5cb   : > { %v7831_v27 = vld [vmem:[#allocation3 + $0x8] sm:$0xff]  ;;  %v3570_v35 = vmax.f32 %v3546_v13, 0.0 }
 0x5cc   : > { %3594 = vst.msk [vmem:[#allocation3 + $0x18] sm:$0xff] %vm3589_vm4, %v3592_v47  ;;  %v3461_v2 = vpop.f32.mrb[66].mxu1  ;;  %4990 = vmatprep.mubr.msk.f32.mxu1 %vm3589_vm4, %v7831_v27  ;;  %v3571_v46 = vmax.f32 %v3547_v6, 0.0 }
 0x5cd   : > { %v3548_v41 = vadd.f32 %v7811_v29, %v3461_v2  ;;  %v3463_v51 = vpop.f32.mrb[67].mxu1  ;;  %3730 = vmatmul.mubr.f32.vlgmr.msra.gmra.mrb[80].mxu1 %v7821_v58  ;;  %v5619_v2 = vpack.c.bf16 %v3773_v39, %v3772_v10 }
 0x5ce   : > { %v3549_v14 = vadd.f32 %v7815_v60, %v3463_v51  ;;  %5602 = vmatpush1.bf16.msra.mxu1 %v5601_v44 }
 0x5cf   : > { %v3572_v36 = vmax.f32 %v3548_v41, 0.0  ;;  %5603 = vmatprep.subr.bf16.mxu1 %v6336_v56 }
 0x5d0   : > { %v3573_v19 = vmax.f32 %v3549_v14, 0.0  ;;  %v3467_v54 = vpop.f32.mrb[68].mxu1  ;;  %v3774_v14 = vld [vmem:[#allocation10 + $0x70] sm:$0xff] }
 0x5d1   : > { %v7841_v8 = vmax.f32 %v3570_v35, %v3572_v36  ;;  %v3469_v11 = vpop.f32.mrb[69].mxu1  ;;  %v3550_v53 = vadd.f32 %v7811_v29, %v3467_v54 }
 0x5d2   : > { %v3596_v17 = vmax.f32 %v3571_v46, %v3573_v19  ;;  %5605 = vmatpush1.bf16.msra.mxu1 %v5604_v16  ;;  %v3551_v25 = vadd.f32 %v7815_v60, %v3469_v11  ;;  %v3775_v16 = vld [vmem:[#allocation10 + $0x78] sm:$0xff] }
 0x5d3   : > { %v7844_v22 = vld [vmem:[#allocation3 + $0x18] sm:$0xff]  ;;  %5606 = vmatprep.subr.bf16.mxu1 %v6336_v56  ;;  %v3574_v5 = vmax.f32 %v3550_v53, 0.0  ;;  %v5622_v19 = vpack.c.bf16 %v3775_v16, %v3774_v14  ;;  %v3886_v14 = vld [vmem:[%s8374_s9 + $0x8] sm:$0xff] }
 0x5d4   : > { %3598 = vst.msk [vmem:[#allocation3 + $0x28] sm:$0xff] %vm3589_vm4, %v3596_v17  ;;  %v3473_v28 = vpop.f32.mrb[70].mxu1  ;;  %4991 = vmatprep.mubr.msk.f32.mxu1 %vm3589_vm4, %v7844_v22  ;;  %v3575_v32 = vmax.f32 %v3551_v25, 0.0  ;;  %v3776_v17 = vld [vmem:[#allocation10 + $0x80] sm:$0xff] }
 0x5d5   : > { %v3552_v30 = vadd.f32 %v7811_v29, %v3473_v28  ;;  %v3475_v62 = vpop.f32.mrb[71].mxu1  ;;  %3735 = vmatmul.mubr.f32.gmra.mrb[82].mxu1 %v7828_v63 }
 0x5d6   : > { %v3553_v1 = vadd.f32 %v7815_v60, %v3475_v62  ;;  %5608 = vmatpush1.bf16.msra.mxu1 %v5607_v20  ;;  %v3777_v20 = vld [vmem:[#allocation10 + $0x88] sm:$0xff]  ;;  %v3779_v62 = vld [vmem:[#allocation10 + $0x98] sm:$0xff] }
 0x5d7   : > { %v3576_v57 = vmax.f32 %v3552_v30, 0.0  ;;  %5609 = vmatprep.subr.bf16.mxu1 %v6336_v56  ;;  %v5625_v28 = vpack.c.bf16 %v3777_v20, %v3776_v17  ;;  %v3778_v30 = vld [vmem:[#allocation10 + $0x90] sm:$0xff] }
 0x5d8   : > { %v3577_v34 = vmax.f32 %v3553_v1, 0.0  ;;  %v3479_v50 = vpop.f32.mrb[72].mxu1  ;;  %v3780_v1 = vld [vmem:[#allocation10 + $0xa0] sm:$0xff]  ;;  %v3889_v20 = vld [vmem:[%s8374_s9 + $0x20] sm:$0xff] }
 0x5d9   : > { %v7855_v37 = vmax.f32 %v3574_v5, %v3576_v57  ;;  %v3481_v40 = vpop.f32.mrb[73].mxu1  ;;  %v3554_v45 = vadd.f32 %v7811_v29, %v3479_v50  ;;  %v5006_v50 = vld [vmem:[%s8374_s9 + $0x80] sm:$0xff] }
 0x5da   : > { %v3600_v49 = vmax.f32 %v3575_v32, %v3577_v34  ;;  %5611 = vmatpush1.bf16.msra.mxu1 %v5610_v4  ;;  %v3555_v12 = vadd.f32 %v7815_v60, %v3481_v40  ;;  %v3781_v4 = vld [vmem:[#allocation10 + $0xa8] sm:$0xff]  ;;  %v5634_v32 = vpack.c.bf16 %v3783_v43, %v3782_v3 }
 0x5db   : > { %v7858_v33 = vld [vmem:[#allocation3 + $0x28] sm:$0xff]  ;;  %5612 = vmatprep.subr.bf16.mxu1 %v6336_v56  ;;  %v3578_v31 = vmax.f32 %v3554_v45, 0.0  ;;  %v5631_v5 = vpack.c.bf16 %v3781_v4, %v3780_v1 }
 0x5dc   : > { %3602 = vst.msk [vmem:[#allocation3 + $0x38] sm:$0xff] %vm3589_vm4, %v3600_v49  ;;  %v3485_v55 = vpop.f32.mrb[74].mxu1  ;;  %4992 = vmatprep.mubr.msk.f32.mxu1 %vm3589_vm4, %v7858_v33  ;;  %v3579_v47 = vmax.f32 %v3555_v12, 0.0  ;;  %v5008_v49 = vld [vmem:[%s8374_s9 + $0x90] sm:$0xff] }
 0x5dd   : > { %v3556_v61 = vadd.f32 %v7811_v29, %v3485_v55  ;;  %v3487_v48 = vpop.f32.mrb[75].mxu1  ;;  %3740 = vmatmul.mubr.f32.gmra.mrb[84].mxu1 %v7841_v8  ;;  %v5012_v12 = vld [vmem:[%s8374_s9 + $0xb0] sm:$0xff]  ;;  %v5013_v55 = vld [vmem:[%s8374_s9 + $0xb8] sm:$0xff] }
 0x5de   : > { %v3557_v21 = vadd.f32 %v7815_v60, %v3487_v48  ;;  %5614 = vmatpush1.bf16.msra.mxu1 %v5613_v52  ;;  %v5009_v52 = vld [vmem:[%s8374_s9 + $0x98] sm:$0xff] }
 0x5df   : > { %v3580_v38 = vmax.f32 %v3556_v61, 0.0  ;;  %5615 = vmatprep.subr.bf16.mxu1 %v6336_v56  ;;  %v5646_v45 = vpack.c.bf16 %v5009_v52, %v5008_v49  ;;  %v5652_v61 = vpack.c.bf16 %v5013_v55, %v5012_v12  ;;  %v5020_v52 = vld [vmem:[%s8374_s9 + $0xe0] sm:$0xff] }
 0x5e0   : > { %v3581_v44 = vmax.f32 %v3557_v21, 0.0  ;;  %v3491_v13 = vpop.f32.mrb[76].mxu1  ;;  %v5024_v55 = vld [vmem:[%s8374_s9 + $0x100] sm:$0xff] }
 0x5e1   : > { %v7869_v18 = vmax.f32 %v3578_v31, %v3580_v38  ;;  %v3493_v59 = vpop.f32.mrb[77].mxu1  ;;  %v3558_v41 = vadd.f32 %v7811_v29, %v3491_v13 }
 0x5e2   : > { %v3604_v6 = vmax.f32 %v3579_v47, %v3581_v44  ;;  %5617 = vmatpush1.bf16.msra.mxu1 %v5616_v26  ;;  %v3559_v35 = vadd.f32 %v7815_v60, %v3493_v59 }
 0x5e3   : > { %v3618_v51 = vld [vmem:[#allocation3 + $0x38] sm:$0xff]  ;;  %5618 = vmatprep.subr.bf16.mxu1 %v6336_v56  ;;  %v3582_v54 = vmax.f32 %v3558_v41, 0.0 }
 0x5e4   : > { %3606 = vst.msk [vmem:[#allocation3 + $0x48] sm:$0xff] %vm3589_vm4, %v3604_v6  ;;  %v3497_v36 = vpop.f32.mrb[78].mxu1  ;;  %4993 = vmatprep.mubr.msk.f32.mxu1 %vm3589_vm4, %v3618_v51  ;;  %v3583_v53 = vmax.f32 %v3559_v35, 0.0 }
 0x5e5   : > { %v3560_v15 = vadd.f32 %v7811_v29, %v3497_v36  ;;  %v3499_v42 = vpop.f32.mrb[79].mxu1  ;;  %3745 = vmatmul.mubr.f32.gmra.mrb[86].mxu1 %v7855_v37 }
 0x5e6   : > { %v3561_v46 = vadd.f32 %v7815_v60, %v3499_v42  ;;  %5620 = vmatpush1.bf16.msra.mxu1 %v5619_v2  ;;  %v5628_v60 = vpack.c.bf16 %v3779_v62, %v3778_v30  ;;  %v3887_v42 = vld [vmem:[%s8374_s9 + $0x10] sm:$0xff]  ;;  %v3892_v30 = vld [vmem:[%s8374_s9 + $0x38] sm:$0xff] }
 0x5e7   : > { %v3584_v11 = vmax.f32 %v3560_v15, 0.0  ;;  %5621 = vmatprep.subr.bf16.mxu1 %v6336_v56 }
 0x5e8   : > { %v3585_v23 = vmax.f32 %v3561_v46, 0.0  ;;  %v3888_v46 = vld [vmem:[%s8374_s9 + $0x18] sm:$0xff] }
 0x5e9   : > { %v3607_v24 = vmax.f32 %v3582_v54, %v3584_v11  ;;  %v5658_v54 = vpack.c.bf16 %v3888_v46, %v3887_v42  ;;  %v5039_v46 = vld [vmem:[%s8374_s9 + $0x170] sm:$0xff] }
 0x5ea   : > { %v3608_v25 = vmax.f32 %v3583_v53, %v3585_v23  ;;  %5623 = vmatpush1.bf16.msra.mxu1 %v5622_v19  ;;  %v3890_v53 = vld [vmem:[%s8374_s9 + $0x28] sm:$0xff] }
 0x5eb   : > { %v3620_v29 = vld [vmem:[#allocation3 + $0x48] sm:$0xff]  ;;  %5624 = vmatprep.subr.bf16.mxu1 %v6336_v56 }
 0x5ec   : > { %3610 = vst.msk [vmem:[#allocation3 + $0x58] sm:$0xff] %vm3589_vm4, %v3608_v25  ;;  %4994 = vmatprep.mubr.msk.f32.mxu1 %vm3589_vm4, %v3620_v29 }
 0x5ed   : > { %3750 = vmatmul.mubr.f32.gmra.mrb[88].mxu1 %v7869_v18 }
 0x5ee   : > { %5626 = vmatpush1.bf16.msra.mxu1 %v5625_v28 }
 0x5ef   : > { %5627 = vmatprep.subr.bf16.mxu1 %v6336_v56 }
 0x5f2   : > { %5629 = vmatpush1.bf16.msra.mxu1 %v5628_v60 }
 0x5f3   : > { %v3622_v57 = vld [vmem:[#allocation3 + $0x58] sm:$0xff]  ;;  %5630 = vmatprep.subr.bf16.mxu1 %v6336_v56 }
 0x5f4   : > { %4995 = vmatprep.mubr.msk.f32.mxu1 %vm3589_vm4, %v3622_v57 }
 0x5f5   : > { %3755 = vmatmul.mubr.f32.gmra.mrb[90].mxu1 %v3607_v24 }
 0x5f6   : > { %5632 = vmatpush1.bf16.msra.mxu1 %v5631_v5  ;;  %4996 = vmatprep.mubr.msk.f32.mxu1 %vm3589_vm4, %v7831_v27  ;;  %v3893_v5 = vld [vmem:[%s8374_s9 + $0x40] sm:$0xff] }
 0x5f7   : > { %5633 = vmatprep.subr.bf16.mxu1 %v6336_v56 }
 0x5fa   : > { %5635 = vmatpush1.bf16.msra.mxu1 %v5634_v32 }
 0x5fb   : > { %5636 = vmatprep.subr.bf16.mxu1 %v6336_v56 }
 0x5fd   : > { %3849 = vmatmul.mubr.f32.vlgmr.msra.gmra.mrb[92].mxu1 %v7821_v58  ;;  %v5002_v58 = vld [vmem:[%s8374_s9 + $0x60] sm:$0xff] }
 0x5fe   : > { %4997 = vmatprep.mubr.msk.f32.mxu1 %vm3589_vm4, %v7844_v22  ;;  %v5005_v22 = vld [vmem:[%s8374_s9 + $0x78] sm:$0xff] }
 0x601   : > { %3854 = vmatmul.mubr.f32.gmra.mrb[94].mxu1 %v7828_v63  ;;  %v5003_v63 = vld [vmem:[%s8374_s9 + $0x68] sm:$0xff] }
 0x602   : > { %4998 = vmatprep.mubr.msk.f32.mxu1 %vm3589_vm4, %v7858_v33  ;;  %v5637_v27 = vpack.c.bf16 %v5003_v63, %v5002_v58  ;;  %v5010_v33 = vld [vmem:[%s8374_s9 + $0xa0] sm:$0xff]  ;;  %v3895_v63 = vld [vmem:[%s8374_s9 + $0x50] sm:$0xff] }
 0x603   : > { %v5649_v9 = vpack.c.bf16 %v5011_v7, %v5010_v33  ;;  %v5022_v7 = vld [vmem:[%s8374_s9 + $0xf0] sm:$0xff] }
 0x604   : > { %5638 = vmatpush3.bf16.msra.mxu1 %v5637_v27  ;;  %v3896_v27 = vld [vmem:[%s8374_s9 + $0x58] sm:$0xff] }
 0x605   : > { %3859 = vmatmul.mubr.f32.gmra.mrb[96].mxu1 %v7841_v8  ;;  %5639 = vmatprep.subr.bf16.mxu1 %v6336_v56  ;;  %v5004_v8 = vld [vmem:[%s8374_s9 + $0x70] sm:$0xff] }
 0x606   : > { %4999 = vmatprep.mubr.msk.f32.mxu1 %vm3589_vm4, %v3618_v51  ;;  %v5640_v34 = vpack.c.bf16 %v5005_v22, %v5004_v8  ;;  %v3885_v51 = vld [vmem:[%s8374_s9] sm:$0xff]  ;;  %v5670_v8 = vpack.c.bf16 %v3896_v27, %v3895_v63 }
 0x607   : > { %v5655_v35 = vpack.c.bf16 %v3886_v14, %v3885_v51  ;;  %v5016_v22 = vld [vmem:[%s8374_s9 + $0xc0] sm:$0xff]  ;;  %v5034_v51 = vld [vmem:[%s8374_s9 + $0x148] sm:$0xff] }
 0x608   : > { %5641 = vmatpush3.bf16.msra.mxu1 %v5640_v34  ;;  %v5017_v34 = vld [vmem:[%s8374_s9 + $0xc8] sm:$0xff]  ;;  %v5055_v27 = vld [vmem:[%s8374_s9 + $0x1e0] sm:$0xff] }
 0x609   : > { %3864 = vmatmul.mubr.f32.gmra.mrb[98].mxu1 %v7855_v37  ;;  %v5007_v37 = vld [vmem:[%s8374_s9 + $0x88] sm:$0xff]  ;;  %5642 = vmatprep.subr.bf16.mxu1 %v6336_v56 }
 0x60a   : > { %5000 = vmatprep.mubr.msk.f32.mxu1 %vm3589_vm4, %v3620_v29  ;;  %v5643_v40 = vpack.c.bf16 %v5007_v37, %v5006_v50  ;;  %v3891_v29 = vld [vmem:[%s8374_s9 + $0x30] sm:$0xff]  ;;  %v5673_v50 = vpack.c.bf16 %v5017_v34, %v5016_v22 }
 0x60b   : > { %v5664_v60 = vpack.c.bf16 %v3892_v30, %v3891_v29  ;;  %v5018_v37 = vld [vmem:[%s8374_s9 + $0xd0] sm:$0xff]  ;;  %v5046_v29 = vld [vmem:[%s8374_s9 + $0x1a0] sm:$0xff]  ;;  %v5047_v30 = vld [vmem:[%s8374_s9 + $0x1a8] sm:$0xff] }
 0x60c   : > { %5644 = vmatpush3.bf16.msra.mxu1 %v5643_v40  ;;  %v5019_v40 = vld [vmem:[%s8374_s9 + $0xd8] sm:$0xff]  ;;  %v5057_v34 = vld [vmem:[%s8374_s9 + $0x1f0] sm:$0xff] }
 0x60d   : > { %3869 = vmatmul.mubr.f32.gmra.mrb[100].mxu1 %v7869_v18  ;;  %5645 = vmatprep.subr.bf16.mxu1 %v6336_v56  ;;  %v5676_v49 = vpack.c.bf16 %v5019_v40, %v5018_v37  ;;  %v5059_v40 = vld [vmem:[%s8374_s9 + $0x200] sm:$0xff] }
 0x60e   : > { %5001 = vmatprep.mubr.msk.f32.mxu1 %vm3589_vm4, %v3622_v57  ;;  %v3894_v57 = vld [vmem:[%s8374_s9 + $0x48] sm:$0xff] }
 0x60f   : > { %v5667_v43 = vpack.c.bf16 %v3894_v57, %v3893_v5  ;;  %v5051_v5 = vld [vmem:[%s8374_s9 + $0x1c8] sm:$0xff] }
 0x610   : > { %5647 = vmatpush3.bf16.msra.mxu1 %v5646_v45  ;;  %v5021_v45 = vld [vmem:[%s8374_s9 + $0xe8] sm:$0xff] }
 0x611   : > { %3874 = vmatmul.mubr.f32.gmra.mrb[102].mxu1 %v3607_v24  ;;  %5648 = vmatprep.subr.bf16.mxu1 %v6336_v56  ;;  %v5661_v24 = vpack.c.bf16 %v3890_v53, %v3889_v20  ;;  %v5679_v33 = vpack.c.bf16 %v5021_v45, %v5020_v52  ;;  %v5044_v53 = vld [vmem:[%s8374_s9 + $0x190] sm:$0xff]  ;;  %v5063_v45 = vld [vmem:[%s8374_s9 + $0x220] sm:$0xff] }
 0x612   : > { %5208 = vmatprep.mubr.msk.f32.mxu1 %vm6337_vm5, %v6335_v0 }
 0x614   : > { %5650 = vmatpush3.bf16.msra.mxu1 %v5649_v9  ;;  %v5023_v9 = vld [vmem:[%s8374_s9 + $0xf8] sm:$0xff] }
 0x615   : > { %5651 = vmatprep.subr.bf16.mxu1 %v6336_v56  ;;  %v5682_v12 = vpack.c.bf16 %v5023_v9, %v5022_v7  ;;  %v5065_v9 = vld [vmem:[%s8374_s9 + $0x230] sm:$0xff] }
 0x618   : > { %5653 = vmatpush3.bf16.msra.mxu1 %v5652_v61  ;;  %v5025_v61 = vld [vmem:[%s8374_s9 + $0x108] sm:$0xff] }
 0x619   : > { %5654 = vmatprep.subr.bf16.mxu1 %v6336_v56 }
 0x6a0   : > { %v7947_v48 = vpop.f32.mrb[80].mxu1 }
 0x6a1   : > { %v3733_v21 = vpop.f32.mrb[81].mxu1 }
 0x6a2   : > { %v5026_v21 = vld [vmem:[%s8374_s9 + $0x110] sm:$0xff] }
 0x6a8   : > { %v3736_v26 = vpop.f32.mrb[82].mxu1 }
 0x6a9   : > { %v3738_v31 = vpop.f32.mrb[83].mxu1 }
 0x6b0   : > { %v7949_v38 = vpop.f32.mrb[84].mxu1 }
 0x6b1   : > { %v3743_v10 = vpop.f32.mrb[85].mxu1 }
 0x6b2   : > { %v5029_v10 = vld [vmem:[%s8374_s9 + $0x120] sm:$0xff] }
 0x6b8   : > { %v7951_v39 = vpop.f32.mrb[86].mxu1 }
 0x6b9   : > { %v3748_v47 = vpop.f32.mrb[87].mxu1 }
 0x6ba   : > { %v5030_v47 = vld [vmem:[%s8374_s9 + $0x128] sm:$0xff] }
 0x6c0   : > { %v7953_v44 = vpop.f32.mrb[88].mxu1 }
 0x6c1   : > { %v3753_v13 = vpop.f32.mrb[89].mxu1 }
 0x6c2   : > { %v5691_v13 = vpack.c.bf16 %v5030_v47, %v5029_v10  ;;  %v4420_v47 = vld [vmem:[%s8376_s11 + $0x30] sm:$0xff] }
 0x6c8   : > { %v7955_v18 = vpop.f32.mrb[90].mxu1 }
 0x6c9   : > { %v3758_v59 = vpop.f32.mrb[91].mxu1 }
 0x6ca   : > { %v5031_v59 = vld [vmem:[%s8374_s9 + $0x130] sm:$0xff] }
 0x6d0   : > { %v3850_v6 = vpop.f32.mrb[92].mxu1 }
 0x6d1   : > { %v3879_v2 = vmax.f32 %v7947_v48, %v3850_v6  ;;  %v3852_v41 = vpop.f32.mrb[93].mxu1  ;;  %v5685_v48 = vpack.c.bf16 %v5025_v61, %v5024_v55  ;;  %v5032_v6 = vld [vmem:[%s8374_s9 + $0x138] sm:$0xff]  ;;  %v4414_v61 = vld [vmem:[%s8376_s11] sm:$0xff] }
 0x6d2   : > { %v5033_v41 = vld [vmem:[%s8374_s9 + $0x140] sm:$0xff] }
 0x6d3   : > { %v5697_v14 = vpack.c.bf16 %v5034_v51, %v5033_v41  ;;  %v4424_v51 = vld [vmem:[%s8376_s11 + $0x50] sm:$0xff] }
 0x6d4   : > { %v3855_v16 = vpop.f32.mrb[94].mxu1 }
 0x6d5   : > { %v3880_v36 = vmax.f32 %v3736_v26, %v3855_v16  ;;  %v3857_v15 = vpop.f32.mrb[95].mxu1  ;;  %v5027_v26 = vld [vmem:[%s8374_s9 + $0x118] sm:$0xff] }
 0x6d6   : > { %v5688_v31 = vpack.c.bf16 %v5027_v26, %v5026_v21  ;;  %v5036_v16 = vld [vmem:[%s8374_s9 + $0x158] sm:$0xff]  ;;  %v5038_v15 = vld [vmem:[%s8374_s9 + $0x168] sm:$0xff]  ;;  %v4416_v26 = vld [vmem:[%s8376_s11 + $0x10] sm:$0xff] }
 0x6d7   : > { %5209 = vmatmul.mubr.msk.f32.vlgmr.msra.gmra.mrb[104].mxu1 %vm3910_vm6, %v3880_v36  ;;  %v5037_v36 = vld [vmem:[%s8374_s9 + $0x160] sm:$0xff] }
 0x6d8   : > { %5656 = vmatpush3.bf16.msra.mxu1 %v5655_v35  ;;  %v7971_v19 = vpop.f32.mrb[96].mxu1  ;;  %5235 = vmatprep.mubr.msk.f32.mxu1 %vm6337_vm5, %v6335_v0  ;;  %v5703_v42 = vpack.c.bf16 %v5038_v15, %v5037_v36  ;;  %v4428_v15 = vld [vmem:[%s8376_s11 + $0x70] sm:$0xff] }
 0x6d9   : > { %v3881_v11 = vmax.f32 %v7949_v38, %v7971_v19  ;;  %v3862_v17 = vpop.f32.mrb[97].mxu1  ;;  %5657 = vmatprep.subr.bf16.mxu1 %v6336_v56  ;;  %v5035_v38 = vld [vmem:[%s8374_s9 + $0x150] sm:$0xff]  ;;  %v5040_v19 = vld [vmem:[%s8374_s9 + $0x178] sm:$0xff] }
 0x6da   : > { %v5700_v35 = vpack.c.bf16 %v5036_v16, %v5035_v38  ;;  %v5043_v17 = vld [vmem:[%s8374_s9 + $0x188] sm:$0xff]  ;;  %v4426_v16 = vld [vmem:[%s8376_s11 + $0x60] sm:$0xff] }
 0x6dc   : > { %5659 = vmatpush3.bf16.msra.mxu1 %v5658_v54  ;;  %v7984_v23 = vpop.f32.mrb[98].mxu1  ;;  %v5706_v54 = vpack.c.bf16 %v5040_v19, %v5039_v46 }
 0x6dd   : > { %v3882_v25 = vmax.f32 %v7951_v39, %v7984_v23  ;;  %v3867_v28 = vpop.f32.mrb[99].mxu1  ;;  %5660 = vmatprep.subr.bf16.mxu1 %v6336_v56  ;;  %v5048_v39 = vld [vmem:[%s8374_s9 + $0x1b0] sm:$0xff]  ;;  %v5049_v23 = vld [vmem:[%s8374_s9 + $0x1b8] sm:$0xff] }
 0x6e0   : > { %5662 = vmatpush3.bf16.msra.mxu1 %v5661_v24  ;;  %v7995_v62 = vpop.f32.mrb[100].mxu1  ;;  %v5045_v24 = vld [vmem:[%s8374_s9 + $0x198] sm:$0xff] }
 0x6e1   : > { %v3883_v1 = vmax.f32 %v7953_v44, %v7995_v62  ;;  %v3872_v4 = vpop.f32.mrb[101].mxu1  ;;  %5663 = vmatprep.subr.bf16.mxu1 %v6336_v56  ;;  %v5712_v28 = vpack.c.bf16 %v5045_v24, %v5044_v53  ;;  %v5061_v44 = vld [vmem:[%s8374_s9 + $0x210] sm:$0xff]  ;;  %v5062_v62 = vld [vmem:[%s8374_s9 + $0x218] sm:$0xff] }
 0x6e2   : > { %v5050_v4 = vld [vmem:[%s8374_s9 + $0x1c0] sm:$0xff] }
 0x6e3   : > { %v5721_v57 = vpack.c.bf16 %v5051_v5, %v5050_v4 }
 0x6e4   : > { %5665 = vmatpush3.bf16.msra.mxu1 %v5664_v60  ;;  %v8006_v3 = vpop.f32.mrb[102].mxu1  ;;  %v5715_v60 = vpack.c.bf16 %v5047_v30, %v5046_v29 }
 0x6e5   : > { %v3884_v32 = vmax.f32 %v7955_v18, %v8006_v3  ;;  %v3877_v58 = vpop.f32.mrb[103].mxu1  ;;  %5666 = vmatprep.subr.bf16.mxu1 %v6336_v56  ;;  %v4417_v18 = vld [vmem:[%s8376_s11 + $0x18] sm:$0xff] }
 0x6e6   : > { %v5053_v58 = vld [vmem:[%s8374_s9 + $0x1d8] sm:$0xff]  ;;  %v5748_v3 = vpack.c.bf16 %v4417_v18, %v4416_v26 }
 0x6e8   : > { %5668 = vmatpush3.bf16.msra.mxu1 %v5667_v43  ;;  %v5052_v43 = vld [vmem:[%s8374_s9 + $0x1d0] sm:$0xff] }
 0x6e9   : > { %5669 = vmatprep.subr.bf16.mxu1 %v6336_v56  ;;  %v5724_v63 = vpack.c.bf16 %v5053_v58, %v5052_v43  ;;  %v4512_v43 = vld [vmem:[%s8378_s13 + $0x8] sm:$0xff] }
 0x6ec   : > { %5671 = vmatpush3.bf16.msra.mxu1 %v5670_v8  ;;  %v5056_v8 = vld [vmem:[%s8374_s9 + $0x1e8] sm:$0xff] }
 0x6ed   : > { %5672 = vmatprep.subr.bf16.mxu1 %v6336_v56  ;;  %v5727_v22 = vpack.c.bf16 %v5056_v8, %v5055_v27  ;;  %v4513_v8 = vld [vmem:[%s8378_s13 + $0x10] sm:$0xff] }
 0x6ef   : > { %5236 = vmatmul.mubr.msk.f32.vlgmr.msra.gmra.mrb[106].mxu1 %vm3910_vm6, %v3879_v2  ;;  %v5694_v2 = vpack.c.bf16 %v5032_v6, %v5031_v59  ;;  %v4422_v6 = vld [vmem:[%s8376_s11 + $0x40] sm:$0xff] }
 0x6f0   : > { %5674 = vmatpush3.bf16.msra.mxu1 %v5673_v50  ;;  %5262 = vmatprep.mubr.msk.f32.mxu1 %vm6337_vm5, %v6335_v0  ;;  %v5058_v50 = vld [vmem:[%s8374_s9 + $0x1f8] sm:$0xff] }
 0x6f1   : > { %5675 = vmatprep.subr.bf16.mxu1 %v6336_v56  ;;  %v5730_v37 = vpack.c.bf16 %v5058_v50, %v5057_v34  ;;  %v4515_v50 = vld [vmem:[%s8378_s13 + $0x20] sm:$0xff] }
 0x6f4   : > { %5677 = vmatpush3.bf16.msra.mxu1 %v5676_v49  ;;  %v5060_v49 = vld [vmem:[%s8374_s9 + $0x208] sm:$0xff] }
 0x6f5   : > { %5678 = vmatprep.subr.bf16.mxu1 %v6336_v56  ;;  %v5733_v52 = vpack.c.bf16 %v5060_v49, %v5059_v40  ;;  %v4517_v49 = vld [vmem:[%s8378_s13 + $0x30] sm:$0xff] }
 0x6f8   : > { %5680 = vmatpush3.bf16.msra.mxu1 %v5679_v33  ;;  %v5064_v33 = vld [vmem:[%s8374_s9 + $0x228] sm:$0xff] }
 0x6f9   : > { %5681 = vmatprep.subr.bf16.mxu1 %v6336_v56  ;;  %v5739_v7 = vpack.c.bf16 %v5064_v33, %v5063_v45  ;;  %v4521_v33 = vld [vmem:[%s8378_s13 + $0x50] sm:$0xf] }
 0x6fc   : > { %5683 = vmatpush3.bf16.msra.mxu1 %v5682_v12  ;;  %v5066_v12 = vld [vmem:[%s8374_s9 + $0x238] sm:$0xff] }
 0x6fd   : > { %5684 = vmatprep.subr.bf16.mxu1 %v6336_v56  ;;  %v5742_v55 = vpack.c.bf16 %v5066_v12, %v5065_v9 }
 0x700   : > { %5686 = vmatpush3.bf16.msra.mxu1 %v5685_v48  ;;  %v4415_v48 = vld [vmem:[%s8376_s11 + $0x8] sm:$0xff] }
 0x701   : > { %5687 = vmatprep.subr.bf16.mxu1 %v6336_v56  ;;  %v5745_v21 = vpack.c.bf16 %v4415_v48, %v4414_v61 }
 0x704   : > { %5689 = vmatpush3.bf16.msra.mxu1 %v5688_v31  ;;  %v4419_v31 = vld [vmem:[%s8376_s11 + $0x28] sm:$0xff] }
 0x705   : > { %5690 = vmatprep.subr.bf16.mxu1 %v6336_v56 }
 0x707   : > { %5263 = vmatmul.mubr.msk.f32.vlgmr.msra.gmra.mrb[108].mxu1 %vm3910_vm6, %v3881_v11  ;;  %v5042_v11 = vld [vmem:[%s8374_s9 + $0x180] sm:$0xff] }
 0x708   : > { %5692 = vmatpush3.bf16.msra.mxu1 %v5691_v13  ;;  %5289 = vmatprep.mubr.msk.f32.mxu1 %vm6337_vm5, %v6335_v0  ;;  %v5709_v20 = vpack.c.bf16 %v5043_v17, %v5042_v11  ;;  %v4421_v13 = vld [vmem:[%s8376_s11 + $0x38] sm:$0xff] }
 0x709   : > { %5693 = vmatprep.subr.bf16.mxu1 %v6336_v56  ;;  %v5754_v59 = vpack.c.bf16 %v4421_v13, %v4420_v47 }
 0x70c   : > { %5695 = vmatpush3.bf16.msra.mxu1 %v5694_v2  ;;  %v4423_v2 = vld [vmem:[%s8376_s11 + $0x48] sm:$0xff] }
 0x70d   : > { %5696 = vmatprep.subr.bf16.mxu1 %v6336_v56  ;;  %v5757_v41 = vpack.c.bf16 %v4423_v2, %v4422_v6 }
 0x710   : > { %5698 = vmatpush3.bf16.msra.mxu1 %v5697_v14  ;;  %v4425_v14 = vld [vmem:[%s8376_s11 + $0x58] sm:$0xff] }
 0x711   : > { %5699 = vmatprep.subr.bf16.mxu1 %v6336_v56  ;;  %v5760_v38 = vpack.c.bf16 %v4425_v14, %v4424_v51 }
 0x714   : > { %5701 = vmatpush3.bf16.msra.mxu1 %v5700_v35  ;;  %v4427_v35 = vld [vmem:[%s8376_s11 + $0x68] sm:$0xff] }
 0x715   : > { %5702 = vmatprep.subr.bf16.mxu1 %v6336_v56  ;;  %v5763_v36 = vpack.c.bf16 %v4427_v35, %v4426_v16 }
 0x718   : > { %5704 = vmatpush3.bf16.msra.mxu1 %v5703_v42 }
 0x719   : > { %5705 = vmatprep.subr.bf16.mxu1 %v6336_v56 }
 0x71c   : > { %5707 = vmatpush3.bf16.msra.mxu1 %v5706_v54 }
 0x71d   : > { %5708 = vmatprep.subr.bf16.mxu1 %v6336_v56 }
 0x71f   : > { %5290 = vmatmul.mubr.msk.f32.vlgmr.msra.gmra.mrb[110].mxu1 %vm3910_vm6, %v3882_v25  ;;  %v5718_v25 = vpack.c.bf16 %v5049_v23, %v5048_v39 }
 0x720   : > { %5710 = vmatpush3.bf16.msra.mxu1 %v5709_v20  ;;  %5316 = vmatprep.mubr.msk.f32.mxu1 %vm6337_vm5, %v6335_v0 }
 0x721   : > { %5711 = vmatprep.subr.bf16.mxu1 %v6336_v56 }
 0x724   : > { %5713 = vmatpush3.bf16.msra.mxu1 %v5712_v28 }
 0x725   : > { %5714 = vmatprep.subr.bf16.mxu1 %v6336_v56 }
 0x728   : > { %5716 = vmatpush3.bf16.msra.mxu1 %v5715_v60 }
 0x729   : > { %5717 = vmatprep.subr.bf16.mxu1 %v6336_v56 }
 0x72c   : > { %5719 = vmatpush3.bf16.msra.mxu1 %v5718_v25  ;;  %v5068_v25 = vld [vmem:[%s8375_s10] ss:$0 sm:$0xff] }
 0x72d   : > { %5720 = vmatprep.subr.bf16.mxu1 %v6336_v56 }
 0x730   : > { %5722 = vmatpush3.bf16.msra.mxu1 %v5721_v57  ;;  %v4511_v57 = vld [vmem:[%s8378_s13] sm:$0xff] }
 0x731   : > { %5723 = vmatprep.subr.bf16.mxu1 %v6336_v56 }
 0x734   : > { %5725 = vmatpush3.bf16.msra.mxu1 %v5724_v63  ;;  %v5766_v63 = vpack.c.bf16 %v4512_v43, %v4511_v57 }
 0x735   : > { %5726 = vmatprep.subr.bf16.mxu1 %v6336_v56 }
 0x737   : > { %5317 = vmatmul.mubr.msk.f32.vlgmr.msra.gmra.mrb[112].mxu1 %vm3910_vm6, %v3883_v1  ;;  %v5736_v1 = vpack.c.bf16 %v5062_v62, %v5061_v44  ;;  %v4519_v62 = vld [vmem:[%s8378_s13 + $0x40] sm:$0xff] }
 0x738   : > { %5728 = vmatpush3.bf16.msra.mxu1 %v5727_v22  ;;  %5343 = vmatprep.mubr.msk.f32.mxu1 %vm6337_vm5, %v6335_v0  ;;  %v4514_v22 = vld [vmem:[%s8378_s13 + $0x18] sm:$0xff] }
 0x739   : > { %5729 = vmatprep.subr.bf16.mxu1 %v6336_v56  ;;  %v5769_v34 = vpack.c.bf16 %v4514_v22, %v4513_v8 }
 0x73c   : > { %5731 = vmatpush3.bf16.msra.mxu1 %v5730_v37  ;;  %v4516_v37 = vld [vmem:[%s8378_s13 + $0x28] sm:$0xff] }
 0x73d   : > { %5732 = vmatprep.subr.bf16.mxu1 %v6336_v56  ;;  %v5772_v40 = vpack.c.bf16 %v4516_v37, %v4515_v50 }
 0x740   : > { %5734 = vmatpush3.bf16.msra.mxu1 %v5733_v52  ;;  %v4518_v52 = vld [vmem:[%s8378_s13 + $0x38] sm:$0xff] }
 0x741   : > { %5735 = vmatprep.subr.bf16.mxu1 %v6336_v56  ;;  %v5775_v44 = vpack.c.bf16 %v4518_v52, %v4517_v49 }
 0x744   : > { %5737 = vmatpush3.bf16.msra.mxu1 %v5736_v1  ;;  %v4520_v1 = vld [vmem:[%s8378_s13 + $0x48] sm:$0xff] }
 0x745   : > { %5738 = vmatprep.subr.bf16.mxu1 %v6336_v56  ;;  %v5778_v45 = vpack.c.bf16 %v4520_v1, %v4519_v62 }
 0x748   : > { %5740 = vmatpush3.bf16.msra.mxu1 %v5739_v7 }
 0x749   : > { %5741 = vmatprep.subr.bf16.mxu1 %v6336_v56 }
 0x74c   : > { %5743 = vmatpush3.bf16.msra.mxu1 %v5742_v55 }
 0x74d   : > { %5744 = vmatprep.subr.bf16.mxu1 %v6336_v56 }
 0x74f   : > { %5344 = vmatmul.mubr.msk.f32.vlgmr.msra.gmra.mrb[114].mxu1 %vm3910_vm6, %v3884_v32  ;;  %v4418_v32 = vld [vmem:[%s8376_s11 + $0x20] sm:$0xff] }
 0x750   : > { %5376 = vmatprep.mubr.msk.f32.mxu1 %vm6337_vm5, %v6335_v0  ;;  %5746 = vmatpush3.bf16.msra.mxu1 %v5745_v21  ;;  %v5751_v10 = vpack.c.bf16 %v4419_v31, %v4418_v32 }
 0x751   : > { %5747 = vmatprep.subr.bf16.mxu1 %v6336_v56 }
 0x754   : > { %5749 = vmatpush3.bf16.msra.mxu1 %v5748_v3 }
 0x755   : > { %5750 = vmatprep.subr.bf16.mxu1 %v6336_v56 }
 0x758   : > { %5752 = vmatpush3.bf16.msra.mxu1 %v5751_v10 }
 0x759   : > { %5753 = vmatprep.subr.bf16.mxu1 %v6336_v56 }
 0x75c   : > { %5755 = vmatpush3.bf16.msra.mxu1 %v5754_v59 }
 0x75d   : > { %5756 = vmatprep.subr.bf16.mxu1 %v6336_v56 }
 0x760   : > { %5758 = vmatpush3.bf16.msra.mxu1 %v5757_v41 }
 0x761   : > { %5759 = vmatprep.subr.bf16.mxu1 %v6336_v56 }
 0x764   : > { %5761 = vmatpush3.bf16.msra.mxu1 %v5760_v38 }
 0x765   : > { %5762 = vmatprep.subr.bf16.mxu1 %v6336_v56 }
 0x768   : > { %5764 = vmatpush3.bf16.msra.mxu1 %v5763_v36 }
 0x769   : > { %5374 = vmatprep.subr.mxu1 %v6335_v0 }
 0x76c   : > { %5375 = vmatpush3.msra.mxu1 %v4428_v15 }
 0x76d   : > { %5765 = vmatprep.subr.bf16.mxu1 %v6336_v56 }
 0x7aa   : > { %v3980_v42 = vpop.f32.mrb[104].mxu1 }
 0x7ab   : > { %v5210_v46 = vpop.f32.mrb[105].mxu1 }
 0x7c2   : > { %v4053_v19 = vpop.f32.mrb[106].mxu1 }
 0x7c3   : > { %v4054_v54 = vadd.f32 %v4053_v19, %v3980_v42  ;;  %v5237_v11 = vpop.f32.mrb[107].mxu1 }
 0x7da   : > { %v4139_v17 = vpop.f32.mrb[108].mxu1 }
 0x7db   : > { %v4143_v20 = vadd.f32 %v4139_v17, %v4054_v54  ;;  %v5264_v53 = vpop.f32.mrb[109].mxu1 }
 0x7f2   : > { %v4226_v24 = vpop.f32.mrb[110].mxu1 }
 0x7f3   : > { %v4230_v28 = vadd.f32 %v4226_v24, %v4143_v20  ;;  %v5291_v29 = vpop.f32.mrb[111].mxu1 }
 0x80a   : > { %v4313_v30 = vpop.f32.mrb[112].mxu1 }
 0x80b   : > { %v4317_v60 = vadd.f32 %v4313_v30, %v4230_v28  ;;  %v5318_v39 = vpop.f32.mrb[113].mxu1 }
 0x822   : > { %v4400_v23 = vpop.f32.mrb[114].mxu1 }
 0x823   : > { %v4404_v4 = vadd.f32 %v4400_v23, %v4317_v60  ;;  %v5345_v5 = vpop.f32.mrb[115].mxu1 }
 0x825   : > { %v4412_v58 = vadd.f32 %v5068_v25, %v4404_v4 }
 0x827   : > { %v4413_v27 = vmax.f32 %v4412_v58, 0.0 }
 0x829   : > { %5377 = vmatmul.mubr.msk.f32.vlgmr.msra.gmra.mrb[116].mxu1 %vm4436_vm7, %v4413_v27 }
 0x82a   : > { %5767 = vmatpush3.bf16.msra.mxu1 %v5766_v63  ;;  %5401 = vmatprep.mubr.msk.f32.mxu1 %vm6337_vm5, %v6335_v0 }
 0x82b   : > { %5768 = vmatprep.subr.bf16.mxu1 %v6336_v56 }
 0x82e   : > { %5770 = vmatpush3.bf16.msra.mxu1 %v5769_v34 }
 0x82f   : > { %5771 = vmatprep.subr.bf16.mxu1 %v6336_v56 }
 0x832   : > { %5773 = vmatpush3.bf16.msra.mxu1 %v5772_v40 }
 0x833   : > { %5774 = vmatprep.subr.bf16.mxu1 %v6336_v56 }
 0x836   : > { %5776 = vmatpush3.bf16.msra.mxu1 %v5775_v44 }
 0x837   : > { %5777 = vmatprep.subr.bf16.mxu1 %v6336_v56  ;;  %v5069_v56 = vld [vmem:[%s8423_s14] ss:$0 sm:$0xff]  ;;  %s6255_s14 = sshll.u32 %s6338_s22, 4  ;;  %s6256_s14 = int_to_ptr.vmem [resolvable:$false] %s6255_s14 }
 0x838   : > { %s6257_s23 = scalar_lea.vmem %s6256_s14, 256  ;;  %p6258_p8 = scmp.lt.s32.totalorder %s8325_s28, %s6256_s14 }
 0x839   : > { %p6259_p11 = scmp.lt.s32.totalorder %s6257_s23, %s6251_s24 }
 0x83a   : > { %5779 = vmatpush3.bf16.msra.mxu1 %v5778_v45 }
 0x83b   : > { %5399 = vmatprep.subr.mxu1 %v6335_v0  ;;  %v5071_v0 = vld [vmem:[%s8425_s3] ss:$0 sm:$0xff]  ;;  %p6260_p5 = por %p6259_p11, %p6258_p8 }
 0x83d   : > { %p6261_p0 = pnand %p6260_p5, %p6254_p7 }
 0x83e   : > { %5400 = vmatpush3.msk.msra.mxu1 %vm3043_vm2, %v4521_v33 }
 0x8fc   : > { %v4506_v7 = vpop.f32.mrb[116].mxu1 }
 0x8fd   : > { %v4507_v9 = vadd.f32 %v5069_v56, %v4506_v7  ;;  %v5378_v12 = vpop.f32.mrb[117].mxu1 }
 0x8ff   : > { %v4510_v55 = vmax.f32 %v4507_v9, 0.0 }
 0x901   : > { %5402 = vmatmul.mubr.msk.f32.vlgmr.msra.gmra.mrb[118].mxu1 %vm3006_vm3, %v4510_v55 }
 0x9d4   : > { %v4601_v61 = vpop.f32.mrb[118].mxu1 }
 0x9d5   : > { %v4602_v48 = vadd.f32 %v5071_v0, %v4601_v61  ;;  %v5403_v21 = vpop.f32.mrb[119].mxu1 }
 0x9d7   : > { %4606 = vst.msk [vmem:[%s547_s18] sm:$0xff] %vm4605_vm8, %v4602_v48 }
 0x9d8   : > { %6264 = shalt.err (!%p6261_p0)
}
 0x9d9   : > { %s6265_s12 = scalar_lea.hbm %s8323_s15, 128  ;;  %s6269_s3 = scalar_lea.hbm %s8427_s17, 256 }
 0x9da   : > { %p6266_p6 = scmp.ne.s32.totalorder %s8323_s15, %s6265_s12  ;;  %p6270_p13 = scmp.lt.u32.totalorder %s8323_s15, %s8427_s17 }
 0x9db   : > { %p6271_p12 = scmp.lt.u32.totalorder %s6269_s3, %s6265_s12  ;;  %p6273_p2 = scmp.lt.u32.totalorder %s6265_s12, %s8323_s15 }
 0x9dc   : > { %p6267_p9 = pnand %p6266_p6, %p8428_p3 }
 0x9dd   : > { %p6272_p1 = por %p6271_p12, %p6270_p13 }
 0x9de   : > { %p6268_p10 = pneg %p6267_p9 }
 0x9df   : > { %p6274_p4 = por %p6273_p2, %p6272_p1 }
 0x9e1   : > { %p6275_p7 = pnand %p6274_p4, %p6268_p10 }
 0x9e3   : > { %6278 = shalt.err (!%p6275_p7)
}
 0x9e4   : > { %6068 = dma.vmem_to_hbm [thread:$0]  (%p8428_p3), %s8325_s28, 128, %s8323_s15, %s4608_s26  }
 0x9e5 PF: > { %s8429_s21 = sld [smem:[#allocation19_spill]]  ;;  %s8430_s29 = sld [smem:[#allocation17_spill]] }
 0x9e6   : > { %s8431_s20 = sld [smem:[#allocation23_spill]] }
 0x9eb   : > { %p6095_p8 = scmp.ge.s32.totalorder %s8429_s21, 2  ;;  %s4633_s24 = sand.u32 1, %s8430_s29  }
 0x9ec   : > { %p8432_p11 = scmp.ne.s32.totalorder %s8431_s20, 0  ;;  %s4634_s22 = scalar_lea.sflag [#allocation6], %s4633_s24 }
 0x9ee   : > { %p6084_p5 = pnand %p6095_p8, %p8432_p11 }
 0x9f0   : > { %6308 = dma.done.wait (!%p6084_p5), %s4634_s22, 128  }
 0x9f1   : > { %6310 = vsyncadd (!%p6084_p5), %s4634_s22, 4294967168  ;;  %s8433_s21 = sld [smem:[#allocation20_spill]]  ;;  %s8434_s14 = sld [smem:[#allocation18_spill]] }
 0x9f2   : > { %s8435_s20 = sld [smem:[#allocation21_spill]]  ;;  %s8436_s18 = smov %s6317_s19 }
 0x9f7   : > { %p28_p0 = scmp.ge.s32.totalorder %s8433_s21, 4   ;;  %s8437_s19 = smov %s8434_s14 }
 0x9f9   :  { %30 = sbr.rel (!%p28_p0) target bundleno = 11 (0xb), region = 143 }
 0xa00   :  { %4639 = vsyncpa [#allocation5], 1 }
 0xa01   :  { %4641 = vsyncpa [#allocation5 + $0x1], 1 }
 0xa02   :  { %4642 = vsyncpa [#allocation8], 1 }
 0xa03   :  { %4643 = vsyncpa [#allocation11], 1 }
 0xa04   :  { %4644 = vsyncpa [#allocation6], 1 }
 0xa05   :  { %4646 = vsyncpa [#allocation6 + $0x1], 1 }

</bundles_post_ra>
